<compile_context>
chip_gen: v7x
topology: tpu7x:2x2x1
jax: 0.10.0
libtpu: 0.0.40
codegen_flags: <defaults>
</compile_context>

<pallas_src>
import math

import jax
import jax.numpy as jnp
import numpy as np
from jax.experimental import pallas as pl
from jax.experimental.pallas import tpu as pltpu

# ----- problem sizes (fixed by the PyTorch module) -----
C1, C2, K, NCLS = 8, 32, 3, 10
H0 = 28                  # input spatial
H1 = H0 - 2              # 26 after conv1
HP1 = H1 // 2            # 13 after pool1
H2 = HP1 - 2             # 11 after conv2
HP2 = H2 // 2            # 5  after pool2
assert H1 % 2 == 0 and 2 * HP1 == H1 and 2 * HP2 + 1 == H2  # pooling parity assumptions

# ----- kernel tiling -----
NB = 8                   # images folded into the matmul M dimension per grid step
K1 = K * H0              # 84    conv1 contraction (kw-concatenated input taps)
N1 = C1 * HP1            # 104   conv1 output lanes per parity: (ci, h//2)
KBLK = 128               # lane-aligned kw-block width for the conv2 input
K2P = K * KBLK           # 384   conv2 contraction (zero-padded to lane tiles)
N2 = C2 * HP2            # 160   conv2 output lanes per parity: (co, i//2)
FBLK = 256               # lane-aligned per-pooled-column block width for the FC input
NFP = HP2 * FBLK         # 1280  fc contraction (zero-padded)

R1 = NB * H1             # 208   conv1 rows per step (image-major: b*26 + w)
RP1 = NB * HP1           # 104   pool1 rows per step (b*13 + w')
R2 = NB * HP1 - 2        # 102   conv2 rows per step (b*13 + j; j=11,12 are junk rows)
RP2 = NB * HP2           # 40    pool2 rows per step (v-major: v*NB + b)


def cnn_kernel(x_ref, a1e_ref, a1o_ref, b1r_ref, sr1e_ref, sr1o_ref,
               w2e_ref, w2o_ref, b2r_ref, sr2e_ref, sr2o_ref, wf_ref, bf_ref,
               out_ref, pcat_ref, fcin_ref):
    f32 = jnp.float32
    xc = x_ref[0]                                                       # (R1, 84)

    # conv1 + bias + ReLU.  The pool-over-h selection is folded into even/odd weight
    # halves, so a single jnp.maximum performs the lane-direction 2x pooling.
    ye = jnp.dot(xc, a1e_ref[...], preferred_element_type=f32) + b1r_ref[...]
    yo = jnp.dot(xc, a1o_ref[...], preferred_element_type=f32) + b1r_ref[...]
    z1 = jnp.maximum(jnp.maximum(ye, yo), 0.0)                          # (R1, 104)

    # pool1 over w: 0/1 even/odd row selectors (output rows stay image-major b*13+w').
    p1 = jnp.maximum(jnp.dot(sr1e_ref[...], z1, preferred_element_type=f32),
                     jnp.dot(sr1o_ref[...], z1, preferred_element_type=f32))  # (RP1, 104)

    # conv2 input: kw-concatenated taps written into lane-aligned 128-wide blocks.
    # Rows b*13+j with j in {11,12} mix adjacent images (finite junk) and are never
    # selected by the pool2 row selectors.
    pcat_ref[...] = jnp.zeros_like(pcat_ref)
    pcat_ref[:, 0 * KBLK:0 * KBLK + N1] = p1[0:R2, :]
    pcat_ref[:, 1 * KBLK:1 * KBLK + N1] = p1[1:R2 + 1, :]
    pcat_ref[:, 2 * KBLK:2 * KBLK + N1] = p1[2:R2 + 2, :]
    lhs2 = pcat_ref[...]                                                # (R2, 384)

    # conv2 + bias + ReLU; pool-over-i folded into even/odd weight halves.
    oe = jnp.dot(lhs2, w2e_ref[...], preferred_element_type=f32) + b2r_ref[...]
    oo = jnp.dot(lhs2, w2o_ref[...], preferred_element_type=f32) + b2r_ref[...]
    n2 = jnp.maximum(jnp.maximum(oe, oo), 0.0)                          # (R2, 160)

    # pool2 over j: even/odd row selectors; output rows are v-major (v*NB + b) so the
    # FC input packs with contiguous sublane slices.
    p2 = jnp.maximum(jnp.dot(sr2e_ref[...], n2, preferred_element_type=f32),
                     jnp.dot(sr2o_ref[...], n2, preferred_element_type=f32))  # (RP2, 160)

    # FC: pack each image's 5 pooled columns into one 1280-lane row, single matmul,
    # and write all NB logits of this step with one (NB, 10) store.
    fcin_ref[...] = jnp.zeros_like(fcin_ref)
    for v in range(HP2):
        fcin_ref[:, v * FBLK:v * FBLK + N2] = p2[v * NB:(v + 1) * NB, :]
    out_ref[0] = (jnp.dot(fcin_ref[...], wf_ref[...], preferred_element_type=f32)
                  + bf_ref[...])


# ---------------- host-side relayout (layout plumbing only, run once) ----------------

def _conv1_weights(w1):
    # a1e/a1o[kw*28 + (h+kh), ci*13 + t] = w1[ci, 0, kh, kw] with h = 2t / 2t+1.
    w1 = np.asarray(w1, np.float32)
    a1e = np.zeros((K1, N1), np.float32)
    a1o = np.zeros((K1, N1), np.float32)
    for ci in range(C1):
        for t in range(HP1):
            for kh in range(K):
                for kw in range(K):
                    a1e[kw * H0 + 2 * t + kh, ci * HP1 + t] = w1[ci, 0, kh, kw]
                    a1o[kw * H0 + 2 * t + 1 + kh, ci * HP1 + t] = w1[ci, 0, kh, kw]
    return jnp.asarray(a1e), jnp.asarray(a1o)


def _conv2_weights(w2):
    # w2e/w2o[kw*128 + ci*13 + (i+kh), co*5 + u] = w2[co, ci, kh, kw] with i = 2u / 2u+1.
    w2 = np.asarray(w2, np.float32)
    w2e = np.zeros((K2P, N2), np.float32)
    w2o = np.zeros((K2P, N2), np.float32)
    for co in range(C2):
        for ci in range(C1):
            for u in range(HP2):
                for kh in range(K):
                    for kw in range(K):
                        w2e[kw * KBLK + ci * HP1 + 2 * u + kh, co * HP2 + u] = w2[co, ci, kh, kw]
                        w2o[kw * KBLK + ci * HP1 + 2 * u + 1 + kh, co * HP2 + u] = w2[co, ci, kh, kw]
    return jnp.asarray(w2e), jnp.asarray(w2o)


def _fc_weights(wf):
    # wfc[v*256 + co*5 + u, k] = wf[k, co*25 + u*5 + v]  (torch (C,H,W) flatten order)
    wf = np.asarray(wf, np.float32)
    wfc = np.zeros((NFP, NCLS), np.float32)
    for v in range(HP2):
        for co in range(C2):
            for u in range(HP2):
                wfc[v * FBLK + co * HP2 + u, :] = wf[:, co * HP2 * HP2 + u * HP2 + v]
    return jnp.asarray(wfc)


def _row_selectors():
    # pool1: output row b*13+s picks conv1 row b*26 + 2s (even) / 2s+1 (odd).
    sr1e = np.zeros((RP1, R1), np.float32)
    sr1o = np.zeros((RP1, R1), np.float32)
    for b in range(NB):
        for s in range(HP1):
            sr1e[b * HP1 + s, b * H1 + 2 * s] = 1.0
            sr1o[b * HP1 + s, b * H1 + 2 * s + 1] = 1.0
    # pool2: output row v*NB+b picks conv2 row b*13 + 2v (even) / 2v+1 (odd).
    sr2e = np.zeros((RP2, R2), np.float32)
    sr2o = np.zeros((RP2, R2), np.float32)
    for b in range(NB):
        for v in range(HP2):
            sr2e[v * NB + b, b * HP1 + 2 * v] = 1.0
            sr2o[v * NB + b, b * HP1 + 2 * v + 1] = 1.0
    return tuple(map(jnp.asarray, (sr1e, sr1o, sr2e, sr2o)))


def prepare_params(params):
    """One-time relayout of the torch-style parameters into kernel operands."""
    w1, b1, w2, b2, wf, bf = params
    a1e, a1o = _conv1_weights(w1)
    w2e, w2o = _conv2_weights(w2)
    wfc = _fc_weights(wf)
    sr1e, sr1o, sr2e, sr2o = _row_selectors()
    b1r = jnp.asarray(np.repeat(np.asarray(b1, np.float32), HP1)[None, :])   # (1, 104)
    b2r = jnp.asarray(np.repeat(np.asarray(b2, np.float32), HP2)[None, :])   # (1, 160)
    bfr = jnp.asarray(np.asarray(bf, np.float32)[None, :])                   # (1, 10)
    return (a1e, a1o, b1r, sr1e, sr1o, w2e, w2o, b2r, sr2e, sr2o, wfc, bfr)


# ---------------- forward wrapper ----------------

def cnn_forward(x, prepped):
    bsz = x.shape[0]
    steps = (bsz + NB - 1) // NB
    bpad = steps * NB

    # Layout plumbing only: W-major transpose + kw-tap im2col of the raw input, then
    # fold NB images into the matmul M dimension.
    xt = jnp.swapaxes(x[:, 0], 1, 2).astype(jnp.float32)              # (bsz, W, H)
    if bpad != bsz:
        xt = jnp.concatenate(
            [xt, jnp.zeros((bpad - bsz, H0, H0), jnp.float32)], axis=0)
    xcat = jnp.concatenate([xt[:, 0:H1], xt[:, 1:H1 + 1], xt[:, 2:H1 + 2]], axis=2)
    xcat = xcat.reshape(steps, R1, K1)                                # (steps, 208, 84)

    (a1e, a1o, b1r, sr1e, sr1o, w2e, w2o, b2r, sr2e, sr2o, wfc, bfr) = prepped

    out = pl.pallas_call(
        cnn_kernel,
        out_shape=jax.ShapeDtypeStruct((steps, NB, NCLS), jnp.float32),
        grid=(steps,),
        in_specs=[
            pl.BlockSpec((1, R1, K1), lambda i: (i, 0, 0)),    # kw-im2col'd input
            pl.BlockSpec((K1, N1), lambda i: (0, 0)),          # conv1 weights (even h)
            pl.BlockSpec((K1, N1), lambda i: (0, 0)),          # conv1 weights (odd h)
            pl.BlockSpec((1, N1), lambda i: (0, 0)),           # conv1 bias row
            pl.BlockSpec((RP1, R1), lambda i: (0, 0)),         # pool1 row sel (even w)
            pl.BlockSpec((RP1, R1), lambda i: (0, 0)),         # pool1 row sel (odd w)
            pl.BlockSpec((K2P, N2), lambda i: (0, 0)),         # conv2 weights (even i)
            pl.BlockSpec((K2P, N2), lambda i: (0, 0)),         # conv2 weights (odd i)
            pl.BlockSpec((1, N2), lambda i: (0, 0)),           # conv2 bias row
            pl.BlockSpec((RP2, R2), lambda i: (0, 0)),         # pool2 row sel (even j)
            pl.BlockSpec((RP2, R2), lambda i: (0, 0)),         # pool2 row sel (odd j)
            pl.BlockSpec((NFP, NCLS), lambda i: (0, 0)),       # fc weights
            pl.BlockSpec((1, NCLS), lambda i: (0, 0)),         # fc bias
        ],
        out_specs=pl.BlockSpec((1, NB, NCLS), lambda i: (i, 0, 0)),
        scratch_shapes=[
            pltpu.VMEM((R2, K2P), jnp.float32),                # conv2 kw-concat input
            pltpu.VMEM((NB, NFP), jnp.float32),                # fc packed input
        ],
        compiler_params=pltpu.CompilerParams(dimension_semantics=("parallel",)),
    )(xcat, a1e, a1o, b1r, sr1e, sr1o, w2e, w2o, b2r, sr2e, sr2o, wfc, bfr)
    return out.reshape(bpad, NCLS)[:bsz]


# ---------------- pure-JAX reference + params ----------------

def cnn_reference(x, params):
    w1, b1, w2, b2, wf, bf = params
    dn = ("NCHW", "OIHW", "NCHW")
    y = jax.lax.conv_general_dilated(x, w1, (1, 1), "VALID", dimension_numbers=dn)
    y = jnp.maximum(y + b1[None, :, None, None], 0.0)
    y = jax.lax.reduce_window(y, -jnp.inf, jax.lax.max, (1, 1, 2, 2), (1, 1, 2, 2), "VALID")
    y = jax.lax.conv_general_dilated(y, w2, (1, 1), "VALID", dimension_numbers=dn)
    y = jnp.maximum(y + b2[None, :, None, None], 0.0)
    y = jax.lax.reduce_window(y, -jnp.inf, jax.lax.max, (1, 1, 2, 2), (1, 1, 2, 2), "VALID")
    y = y.reshape(y.shape[0], -1)
    return y @ wf.T + bf


def init_params(key):
    ks = jax.random.split(key, 6)
    u = jax.random.uniform
    k1 = 1.0 / math.sqrt(1 * K * K)
    k2 = 1.0 / math.sqrt(C1 * K * K)
    k3 = 1.0 / math.sqrt(C2 * HP2 * HP2)
    w1 = u(ks[0], (C1, 1, K, K), jnp.float32, -k1, k1)
    b1 = u(ks[1], (C1,), jnp.float32, -k1, k1)
    w2 = u(ks[2], (C2, C1, K, K), jnp.float32, -k2, k2)
    b2 = u(ks[3], (C2,), jnp.float32, -k2, k2)
    wf = u(ks[4], (NCLS, C2 * HP2 * HP2), jnp.float32, -k3, k3)
    bf = u(ks[5], (NCLS,), jnp.float32, -k3, k3)
    return (w1, b1, w2, b2, wf, bf)


if __name__ == "__main__":
    key = jax.random.PRNGKey(0)
    kp, kx = jax.random.split(key)
    params = init_params(kp)
    prepped = prepare_params(params)          # hoisted: once per parameter set

    B = 16                                    # two grid steps of NB=8 images each
    x = jax.random.normal(kx, (B, 1, H0, H0), jnp.float32)

    fwd = jax.jit(cnn_forward)
    out = jax.block_until_ready(fwd(x, prepped))
    ref = jax.block_until_ready(cnn_reference(x, params))

    assert out.shape == (B, NCLS), out.shape
    np.testing.assert_allclose(np.asarray(out), np.asarray(ref), rtol=5e-3, atol=5e-3)
    print("KERNEL_OK")
</pallas_src>

<mosaic_0001>
module attributes {stable_mosaic.version = 11 : i64} {
  func.func @cnn_kernel(%arg0: i32, %arg1: memref<1x208x84xf32, #tpu.memory_space<vmem>>, %arg2: memref<84x104xf32, #tpu.memory_space<vmem>>, %arg3: memref<84x104xf32, #tpu.memory_space<vmem>>, %arg4: memref<1x104xf32, #tpu.memory_space<vmem>>, %arg5: memref<104x208xf32, #tpu.memory_space<vmem>>, %arg6: memref<104x208xf32, #tpu.memory_space<vmem>>, %arg7: memref<384x160xf32, #tpu.memory_space<vmem>>, %arg8: memref<384x160xf32, #tpu.memory_space<vmem>>, %arg9: memref<1x160xf32, #tpu.memory_space<vmem>>, %arg10: memref<40x102xf32, #tpu.memory_space<vmem>>, %arg11: memref<40x102xf32, #tpu.memory_space<vmem>>, %arg12: memref<1280x10xf32, #tpu.memory_space<vmem>>, %arg13: memref<1x10xf32, #tpu.memory_space<vmem>>, %arg14: memref<1x8x10xf32, #tpu.memory_space<vmem>>, %arg15: memref<102x384xf32, #tpu.memory_space<vmem>>, %arg16: memref<8x1280xf32, #tpu.memory_space<vmem>>) attributes {dimension_semantics = [#tpu.dimension_semantics<parallel>], iteration_bounds = array<i64: 2>, scalar_prefetch = 0 : i64, scratch_operands = 2 : i64, tpu.core_type = #tpu.core_type<tc>, window_params = [{transform_indices = @transform_0, window_bounds = array<i64: 1, 208, 84>}, {pipeline_mode = #tpu.pipeline_mode<synchronous>, transform_indices = @transform_1, window_bounds = array<i64: 84, 104>}, {pipeline_mode = #tpu.pipeline_mode<synchronous>, transform_indices = @transform_2, window_bounds = array<i64: 84, 104>}, {pipeline_mode = #tpu.pipeline_mode<synchronous>, transform_indices = @transform_3, window_bounds = array<i64: 1, 104>}, {pipeline_mode = #tpu.pipeline_mode<synchronous>, transform_indices = @transform_4, window_bounds = array<i64: 104, 208>}, {pipeline_mode = #tpu.pipeline_mode<synchronous>, transform_indices = @transform_5, window_bounds = array<i64: 104, 208>}, {pipeline_mode = #tpu.pipeline_mode<synchronous>, transform_indices = @transform_6, window_bounds = array<i64: 384, 160>}, {pipeline_mode = #tpu.pipeline_mode<synchronous>, transform_indices = @transform_7, window_bounds = array<i64: 384, 160>}, {pipeline_mode = #tpu.pipeline_mode<synchronous>, transform_indices = @transform_8, window_bounds = array<i64: 1, 160>}, {pipeline_mode = #tpu.pipeline_mode<synchronous>, transform_indices = @transform_9, window_bounds = array<i64: 40, 102>}, {pipeline_mode = #tpu.pipeline_mode<synchronous>, transform_indices = @transform_10, window_bounds = array<i64: 40, 102>}, {pipeline_mode = #tpu.pipeline_mode<synchronous>, transform_indices = @transform_11, window_bounds = array<i64: 1280, 10>}, {pipeline_mode = #tpu.pipeline_mode<synchronous>, transform_indices = @transform_12, window_bounds = array<i64: 1, 10>}, {transform_indices = @transform_13, window_bounds = array<i64: 1, 8, 10>}]} {
    %c0 = arith.constant 0 : index
    %c0_0 = arith.constant 0 : index
    %c0_1 = arith.constant 0 : index
    %0 = vector.load %arg1[%c0, %c0_0, %c0_1] : memref<1x208x84xf32, #tpu.memory_space<vmem>>, vector<1x208x84xf32>
    %1 = vector.shape_cast %0 : vector<1x208x84xf32> to vector<208x84xf32>
    %c0_2 = arith.constant 0 : index
    %c0_3 = arith.constant 0 : index
    %2 = vector.load %arg2[%c0_2, %c0_3] : memref<84x104xf32, #tpu.memory_space<vmem>>, vector<84x104xf32>
    %cst = arith.constant dense<0.000000e+00> : vector<208x104xf32>
    %3 = tpu.matmul %1, %2, %cst {dimension_numbers = #tpu.dot_dimension_numbers<[1], [0], [0], [1], [0, 0, 1, 1], [], []>} : vector<208x84xf32>, vector<84x104xf32>, vector<208x104xf32> -> vector<208x104xf32>
    %c0_4 = arith.constant 0 : index
    %c0_5 = arith.constant 0 : index
    %4 = vector.load %arg4[%c0_4, %c0_5] : memref<1x104xf32, #tpu.memory_space<vmem>>, vector<1x104xf32>
    %5 = vector.broadcast %4 : vector<1x104xf32> to vector<208x104xf32>
    %6 = arith.addf %3, %5 : vector<208x104xf32>
    %c0_6 = arith.constant 0 : index
    %c0_7 = arith.constant 0 : index
    %7 = vector.load %arg3[%c0_6, %c0_7] : memref<84x104xf32, #tpu.memory_space<vmem>>, vector<84x104xf32>
    %cst_8 = arith.constant dense<0.000000e+00> : vector<208x104xf32>
    %8 = tpu.matmul %1, %7, %cst_8 {dimension_numbers = #tpu.dot_dimension_numbers<[1], [0], [0], [1], [0, 0, 1, 1], [], []>} : vector<208x84xf32>, vector<84x104xf32>, vector<208x104xf32> -> vector<208x104xf32>
    %c0_9 = arith.constant 0 : index
    %c0_10 = arith.constant 0 : index
    %9 = vector.load %arg4[%c0_9, %c0_10] : memref<1x104xf32, #tpu.memory_space<vmem>>, vector<1x104xf32>
    %10 = vector.broadcast %9 : vector<1x104xf32> to vector<208x104xf32>
    %11 = arith.addf %8, %10 : vector<208x104xf32>
    %12 = arith.maximumf %6, %11 : vector<208x104xf32>
    %cst_11 = arith.constant 0.000000e+00 : f32
    %13 = vector.broadcast %cst_11 : f32 to vector<208x104xf32>
    %14 = arith.maximumf %12, %13 : vector<208x104xf32>
    %c0_12 = arith.constant 0 : index
    %c0_13 = arith.constant 0 : index
    %15 = vector.load %arg5[%c0_12, %c0_13] : memref<104x208xf32, #tpu.memory_space<vmem>>, vector<104x208xf32>
    %cst_14 = arith.constant dense<0.000000e+00> : vector<104x104xf32>
    %16 = tpu.matmul %15, %14, %cst_14 {dimension_numbers = #tpu.dot_dimension_numbers<[1], [0], [0], [1], [0, 0, 1, 1], [], []>} : vector<104x208xf32>, vector<208x104xf32>, vector<104x104xf32> -> vector<104x104xf32>
    %c0_15 = arith.constant 0 : index
    %c0_16 = arith.constant 0 : index
    %17 = vector.load %arg6[%c0_15, %c0_16] : memref<104x208xf32, #tpu.memory_space<vmem>>, vector<104x208xf32>
    %cst_17 = arith.constant dense<0.000000e+00> : vector<104x104xf32>
    %18 = tpu.matmul %17, %14, %cst_17 {dimension_numbers = #tpu.dot_dimension_numbers<[1], [0], [0], [1], [0, 0, 1, 1], [], []>} : vector<104x208xf32>, vector<208x104xf32>, vector<104x104xf32> -> vector<104x104xf32>
    %19 = arith.maximumf %16, %18 : vector<104x104xf32>
    %cst_18 = arith.constant 0.000000e+00 : f32
    %20 = vector.broadcast %cst_18 : f32 to vector<102x384xf32>
    %c0_19 = arith.constant 0 : index
    %c0_20 = arith.constant 0 : index
    %21 = vector.load %arg15[%c0_19, %c0_20] : memref<102x384xf32, #tpu.memory_space<vmem>>, vector<102x384xf32>
    tpu.vector_store %arg15[%c0_19, %c0_20], %20 {strides = array<i32>} : memref<102x384xf32, #tpu.memory_space<vmem>>, vector<102x384xf32>,
    %22 = vector.extract_strided_slice %19 {offsets = [0, 0], sizes = [102, 104], strides = [1, 1]} : vector<104x104xf32> to vector<102x104xf32>
    %c0_21 = arith.constant 0 : index
    %c0_22 = arith.constant 0 : index
    %23 = vector.load %arg15[%c0_21, %c0_22] : memref<102x384xf32, #tpu.memory_space<vmem>>, vector<102x104xf32>
    tpu.vector_store %arg15[%c0_21, %c0_22], %22 {strides = array<i32>} : memref<102x384xf32, #tpu.memory_space<vmem>>, vector<102x104xf32>,
    %24 = vector.extract_strided_slice %19 {offsets = [1, 0], sizes = [102, 104], strides = [1, 1]} : vector<104x104xf32> to vector<102x104xf32>
    %c0_23 = arith.constant 0 : index
    %c128 = arith.constant 128 : index
    %25 = vector.load %arg15[%c0_23, %c128] : memref<102x384xf32, #tpu.memory_space<vmem>>, vector<102x104xf32>
    tpu.vector_store %arg15[%c0_23, %c128], %24 {strides = array<i32>} : memref<102x384xf32, #tpu.memory_space<vmem>>, vector<102x104xf32>,
    %26 = vector.extract_strided_slice %19 {offsets = [2, 0], sizes = [102, 104], strides = [1, 1]} : vector<104x104xf32> to vector<102x104xf32>
    %c0_24 = arith.constant 0 : index
    %c256 = arith.constant 256 : index
    %27 = vector.load %arg15[%c0_24, %c256] : memref<102x384xf32, #tpu.memory_space<vmem>>, vector<102x104xf32>
    tpu.vector_store %arg15[%c0_24, %c256], %26 {strides = array<i32>} : memref<102x384xf32, #tpu.memory_space<vmem>>, vector<102x104xf32>,
    %c0_25 = arith.constant 0 : index
    %c0_26 = arith.constant 0 : index
    %28 = vector.load %arg15[%c0_25, %c0_26] : memref<102x384xf32, #tpu.memory_space<vmem>>, vector<102x384xf32>
    %c0_27 = arith.constant 0 : index
    %c0_28 = arith.constant 0 : index
    %29 = vector.load %arg7[%c0_27, %c0_28] : memref<384x160xf32, #tpu.memory_space<vmem>>, vector<384x160xf32>
    %cst_29 = arith.constant dense<0.000000e+00> : vector<102x160xf32>
    %30 = tpu.matmul %28, %29, %cst_29 {dimension_numbers = #tpu.dot_dimension_numbers<[1], [0], [0], [1], [0, 0, 1, 1], [], []>} : vector<102x384xf32>, vector<384x160xf32>, vector<102x160xf32> -> vector<102x160xf32>
    %c0_30 = arith.constant 0 : index
    %c0_31 = arith.constant 0 : index
    %31 = vector.load %arg9[%c0_30, %c0_31] : memref<1x160xf32, #tpu.memory_space<vmem>>, vector<1x160xf32>
    %32 = vector.broadcast %31 : vector<1x160xf32> to vector<102x160xf32>
    %33 = arith.addf %30, %32 : vector<102x160xf32>
    %c0_32 = arith.constant 0 : index
    %c0_33 = arith.constant 0 : index
    %34 = vector.load %arg8[%c0_32, %c0_33] : memref<384x160xf32, #tpu.memory_space<vmem>>, vector<384x160xf32>
    %cst_34 = arith.constant dense<0.000000e+00> : vector<102x160xf32>
    %35 = tpu.matmul %28, %34, %cst_34 {dimension_numbers = #tpu.dot_dimension_numbers<[1], [0], [0], [1], [0, 0, 1, 1], [], []>} : vector<102x384xf32>, vector<384x160xf32>, vector<102x160xf32> -> vector<102x160xf32>
    %c0_35 = arith.constant 0 : index
    %c0_36 = arith.constant 0 : index
    %36 = vector.load %arg9[%c0_35, %c0_36] : memref<1x160xf32, #tpu.memory_space<vmem>>, vector<1x160xf32>
    %37 = vector.broadcast %36 : vector<1x160xf32> to vector<102x160xf32>
    %38 = arith.addf %35, %37 : vector<102x160xf32>
    %39 = arith.maximumf %33, %38 : vector<102x160xf32>
    %cst_37 = arith.constant 0.000000e+00 : f32
    %40 = vector.broadcast %cst_37 : f32 to vector<102x160xf32>
    %41 = arith.maximumf %39, %40 : vector<102x160xf32>
    %c0_38 = arith.constant 0 : index
    %c0_39 = arith.constant 0 : index
    %42 = vector.load %arg10[%c0_38, %c0_39] : memref<40x102xf32, #tpu.memory_space<vmem>>, vector<40x102xf32>
    %cst_40 = arith.constant dense<0.000000e+00> : vector<40x160xf32>
    %43 = tpu.matmul %42, %41, %cst_40 {dimension_numbers = #tpu.dot_dimension_numbers<[1], [0], [0], [1], [0, 0, 1, 1], [], []>} : vector<40x102xf32>, vector<102x160xf32>, vector<40x160xf32> -> vector<40x160xf32>
    %c0_41 = arith.constant 0 : index
    %c0_42 = arith.constant 0 : index
    %44 = vector.load %arg11[%c0_41, %c0_42] : memref<40x102xf32, #tpu.memory_space<vmem>>, vector<40x102xf32>
    %cst_43 = arith.constant dense<0.000000e+00> : vector<40x160xf32>
    %45 = tpu.matmul %44, %41, %cst_43 {dimension_numbers = #tpu.dot_dimension_numbers<[1], [0], [0], [1], [0, 0, 1, 1], [], []>} : vector<40x102xf32>, vector<102x160xf32>, vector<40x160xf32> -> vector<40x160xf32>
    %46 = arith.maximumf %43, %45 : vector<40x160xf32>
    %cst_44 = arith.constant 0.000000e+00 : f32
    %47 = vector.broadcast %cst_44 : f32 to vector<8x1280xf32>
    %c0_45 = arith.constant 0 : index
    %c0_46 = arith.constant 0 : index
    %48 = vector.load %arg16[%c0_45, %c0_46] : memref<8x1280xf32, #tpu.memory_space<vmem>>, vector<8x1280xf32>
    tpu.vector_store %arg16[%c0_45, %c0_46], %47 {strides = array<i32>} : memref<8x1280xf32, #tpu.memory_space<vmem>>, vector<8x1280xf32>,
    %49 = vector.extract_strided_slice %46 {offsets = [0, 0], sizes = [8, 160], strides = [1, 1]} : vector<40x160xf32> to vector<8x160xf32>
    %c0_47 = arith.constant 0 : index
    %c0_48 = arith.constant 0 : index
    %50 = vector.load %arg16[%c0_47, %c0_48] : memref<8x1280xf32, #tpu.memory_space<vmem>>, vector<8x160xf32>
    tpu.vector_store %arg16[%c0_47, %c0_48], %49 {strides = array<i32>} : memref<8x1280xf32, #tpu.memory_space<vmem>>, vector<8x160xf32>,
    %51 = vector.extract_strided_slice %46 {offsets = [8, 0], sizes = [8, 160], strides = [1, 1]} : vector<40x160xf32> to vector<8x160xf32>
    %c0_49 = arith.constant 0 : index
    %c256_50 = arith.constant 256 : index
    %52 = vector.load %arg16[%c0_49, %c256_50] : memref<8x1280xf32, #tpu.memory_space<vmem>>, vector<8x160xf32>
    tpu.vector_store %arg16[%c0_49, %c256_50], %51 {strides = array<i32>} : memref<8x1280xf32, #tpu.memory_space<vmem>>, vector<8x160xf32>,
    %53 = vector.extract_strided_slice %46 {offsets = [16, 0], sizes = [8, 160], strides = [1, 1]} : vector<40x160xf32> to vector<8x160xf32>
    %c0_51 = arith.constant 0 : index
    %c512 = arith.constant 512 : index
    %54 = vector.load %arg16[%c0_51, %c512] : memref<8x1280xf32, #tpu.memory_space<vmem>>, vector<8x160xf32>
    tpu.vector_store %arg16[%c0_51, %c512], %53 {strides = array<i32>} : memref<8x1280xf32, #tpu.memory_space<vmem>>, vector<8x160xf32>,
    %55 = vector.extract_strided_slice %46 {offsets = [24, 0], sizes = [8, 160], strides = [1, 1]} : vector<40x160xf32> to vector<8x160xf32>
    %c0_52 = arith.constant 0 : index
    %c768 = arith.constant 768 : index
    %56 = vector.load %arg16[%c0_52, %c768] : memref<8x1280xf32, #tpu.memory_space<vmem>>, vector<8x160xf32>
    tpu.vector_store %arg16[%c0_52, %c768], %55 {strides = array<i32>} : memref<8x1280xf32, #tpu.memory_space<vmem>>, vector<8x160xf32>,
    %57 = vector.extract_strided_slice %46 {offsets = [32, 0], sizes = [8, 160], strides = [1, 1]} : vector<40x160xf32> to vector<8x160xf32>
    %c0_53 = arith.constant 0 : index
    %c1024 = arith.constant 1024 : index
    %58 = vector.load %arg16[%c0_53, %c1024] : memref<8x1280xf32, #tpu.memory_space<vmem>>, vector<8x160xf32>
    tpu.vector_store %arg16[%c0_53, %c1024], %57 {strides = array<i32>} : memref<8x1280xf32, #tpu.memory_space<vmem>>, vector<8x160xf32>,
    %c0_54 = arith.constant 0 : index
    %c0_55 = arith.constant 0 : index
    %59 = vector.load %arg16[%c0_54, %c0_55] : memref<8x1280xf32, #tpu.memory_space<vmem>>, vector<8x1280xf32>
    %c0_56 = arith.constant 0 : index
    %c0_57 = arith.constant 0 : index
    %60 = vector.load %arg12[%c0_56, %c0_57] : memref<1280x10xf32, #tpu.memory_space<vmem>>, vector<1280x10xf32>
    %cst_58 = arith.constant dense<0.000000e+00> : vector<8x10xf32>
    %61 = tpu.matmul %59, %60, %cst_58 {dimension_numbers = #tpu.dot_dimension_numbers<[1], [0], [0], [1], [0, 0, 1, 1], [], []>} : vector<8x1280xf32>, vector<1280x10xf32>, vector<8x10xf32> -> vector<8x10xf32>
    %c0_59 = arith.constant 0 : index
    %c0_60 = arith.constant 0 : index
    %62 = vector.load %arg13[%c0_59, %c0_60] : memref<1x10xf32, #tpu.memory_space<vmem>>, vector<1x10xf32>
    %63 = vector.broadcast %62 : vector<1x10xf32> to vector<8x10xf32>
    %64 = arith.addf %61, %63 : vector<8x10xf32>
    %c0_61 = arith.constant 0 : index
    %c0_62 = arith.constant 0 : index
    %c0_63 = arith.constant 0 : index
    %65 = vector.load %arg14[%c0_61, %c0_62, %c0_63] : memref<1x8x10xf32, #tpu.memory_space<vmem>>, vector<1x8x10xf32>
    %66 = vector.shape_cast %65 : vector<1x8x10xf32> to vector<8x10xf32>
    %67 = vector.shape_cast %64 : vector<8x10xf32> to vector<1x8x10xf32>
    tpu.vector_store %arg14[%c0_61, %c0_62, %c0_63], %67 {strides = array<i32>} : memref<1x8x10xf32, #tpu.memory_space<vmem>>, vector<1x8x10xf32>,
    return
  }
  func.func @transform_0(%arg0: i32) -> (i32, i32, i32) {
    %c0_i32 = arith.constant 0 : i32
    %c0_i32_0 = arith.constant 0 : i32
    %c0_i32_1 = arith.constant 0 : i32
    return %arg0, %c0_i32, %c0_i32_0 : i32, i32, i32
  }
  func.func @transform_1(%arg0: i32) -> (i32, i32) {
    %c0_i32 = arith.constant 0 : i32
    %c0_i32_0 = arith.constant 0 : i32
    %c0_i32_1 = arith.constant 0 : i32
    return %c0_i32, %c0_i32_0 : i32, i32
  }
  func.func @transform_2(%arg0: i32) -> (i32, i32) {
    %c0_i32 = arith.constant 0 : i32
    %c0_i32_0 = arith.constant 0 : i32
    %c0_i32_1 = arith.constant 0 : i32
    return %c0_i32, %c0_i32_0 : i32, i32
  }
  func.func @transform_3(%arg0: i32) -> (i32, i32) {
    %c0_i32 = arith.constant 0 : i32
    %c0_i32_0 = arith.constant 0 : i32
    %c0_i32_1 = arith.constant 0 : i32
    return %c0_i32, %c0_i32_0 : i32, i32
  }
  func.func @transform_4(%arg0: i32) -> (i32, i32) {
    %c0_i32 = arith.constant 0 : i32
    %c0_i32_0 = arith.constant 0 : i32
    %c0_i32_1 = arith.constant 0 : i32
    return %c0_i32, %c0_i32_0 : i32, i32
  }
  func.func @transform_5(%arg0: i32) -> (i32, i32) {
    %c0_i32 = arith.constant 0 : i32
    %c0_i32_0 = arith.constant 0 : i32
    %c0_i32_1 = arith.constant 0 : i32
    return %c0_i32, %c0_i32_0 : i32, i32
  }
  func.func @transform_6(%arg0: i32) -> (i32, i32) {
    %c0_i32 = arith.constant 0 : i32
    %c0_i32_0 = arith.constant 0 : i32
    %c0_i32_1 = arith.constant 0 : i32
    return %c0_i32, %c0_i32_0 : i32, i32
  }
  func.func @transform_7(%arg0: i32) -> (i32, i32) {
    %c0_i32 = arith.constant 0 : i32
    %c0_i32_0 = arith.constant 0 : i32
    %c0_i32_1 = arith.constant 0 : i32
    return %c0_i32, %c0_i32_0 : i32, i32
  }
  func.func @transform_8(%arg0: i32) -> (i32, i32) {
    %c0_i32 = arith.constant 0 : i32
    %c0_i32_0 = arith.constant 0 : i32
    %c0_i32_1 = arith.constant 0 : i32
    return %c0_i32, %c0_i32_0 : i32, i32
  }
  func.func @transform_9(%arg0: i32) -> (i32, i32) {
    %c0_i32 = arith.constant 0 : i32
    %c0_i32_0 = arith.constant 0 : i32
    %c0_i32_1 = arith.constant 0 : i32
    return %c0_i32, %c0_i32_0 : i32, i32
  }
  func.func @transform_10(%arg0: i32) -> (i32, i32) {
    %c0_i32 = arith.constant 0 : i32
    %c0_i32_0 = arith.constant 0 : i32
    %c0_i32_1 = arith.constant 0 : i32
    return %c0_i32, %c0_i32_0 : i32, i32
  }
  func.func @transform_11(%arg0: i32) -> (i32, i32) {
    %c0_i32 = arith.constant 0 : i32
    %c0_i32_0 = arith.constant 0 : i32
    %c0_i32_1 = arith.constant 0 : i32
    return %c0_i32, %c0_i32_0 : i32, i32
  }
  func.func @transform_12(%arg0: i32) -> (i32, i32) {
    %c0_i32 = arith.constant 0 : i32
    %c0_i32_0 = arith.constant 0 : i32
    %c0_i32_1 = arith.constant 0 : i32
    return %c0_i32, %c0_i32_0 : i32, i32
  }
  func.func @transform_13(%arg0: i32) -> (i32, i32, i32) {
    %c0_i32 = arith.constant 0 : i32
    %c0_i32_0 = arith.constant 0 : i32
    %c0_i32_1 = arith.constant 0 : i32
    return %arg0, %c0_i32, %c0_i32_0 : i32, i32, i32
  }
}

</mosaic_0001>

<bundles_post_ra>
// kernel: cnn_forward.1
= control target key start
LH: loop header
LB: loop body
LE: loop exit
PB: predicated region body
PF: predicated region fallthrough
CT: control target
= control target key end

     0   :  { %18 = vsyncpa [#allocation5], 0  ;;  %s6648_s0 = inlined_call_operand.vmem [shape: f32[2,208,84], index: 0, kind: input, shape index: {}]   ;;  %s6649_s1 = inlined_call_operand.vmem [shape: f32[84,104], index: 1, kind: input, shape index: {}]   ;;  %s6650_s2 = inlined_call_operand.vmem [shape: f32[84,104], index: 2, kind: input, shape index: {}]   ;;  %s6651_s3 = inlined_call_operand.vmem [shape: f32[1,104], index: 3, kind: input, shape index: {}]   ;;  %s6652_s4 = inlined_call_operand.vmem [shape: f32[104,208], index: 4, kind: input, shape index: {}]   ;;  %s6653_s5 = inlined_call_operand.vmem [shape: f32[104,208], index: 5, kind: input, shape index: {}]   ;;  %s6654_s6 = inlined_call_operand.vmem [shape: f32[384,160], index: 6, kind: input, shape index: {}]   ;;  %s6655_s7 = inlined_call_operand.vmem [shape: f32[384,160], index: 7, kind: input, shape index: {}]   ;;  %s6656_s8 = inlined_call_operand.vmem [shape: f32[1,160], index: 8, kind: input, shape index: {}]   ;;  %s6657_s9 = inlined_call_operand.vmem [shape: f32[40,102], index: 9, kind: input, shape index: {}]   ;;  %s6658_s10 = inlined_call_operand.vmem [shape: f32[40,102], index: 10, kind: input, shape index: {}]   ;;  %s6659_s11 = inlined_call_operand.vmem [shape: f32[1280,10], index: 11, kind: input, shape index: {}]   ;;  %s6660_s12 = inlined_call_operand.vmem [shape: f32[1,10], index: 12, kind: input, shape index: {}]   ;;  %s6661_s13 = inlined_call_operand.hbm [shape: f32[2,8,10], index: 13, kind: output, shape index: {}]  }
   0x1   :  { %20 = vsyncpa [#allocation5 + $0x1], 0  ;;  %s4613_s25 = smov 0   ;;  %s4615_s26 = smov 0  }
   0x2   :  { %s4617_s27 = smov 0   ;;  %s4619_s28 = smov 0  }
   0x3 LB: > { %6666 = sst [smem:[#allocation7_spill]] %s4534_s27  ;;  %s4634_s29 = sadd.s32 4294967295, %s4538_s28   ;;  %s4538_s28 = sphi %s4619_s28, %s6673_s28   ;;  %s4534_s27 = sphi %s4617_s27, %s6675_s27   ;;  %s4530_s26 = sphi %s4615_s26, %s6677_s26   ;;  %s4526_s25 = sphi %s4613_s25, %s6676_s25  }
   0x4   : > { %s3334_s30 = sadd.s32 4294967294, %s4538_s28   ;;  %s4638_s14 = sadd.s32 1, %s4538_s28  }
   0x5   : > { %6667 = sst [smem:[#allocation8_spill]] %s4638_s14  ;;  %s311_s15 = sadd.s32 1, %s4534_s27 }
   0x6   : > { %s308_s16 = ssub.s32 %s4538_s28, %s4638_s14  ;;  %p321_p0 = scmp.ne.s32.totalorder %s4534_s27, %s4530_s26 }
   0x7   : > { %p309_p1 = scmp.eq.s32.totalorder %s308_s16, 0  ;;  %p322_p2 = scmp.eq.s32.totalorder %s4634_s29, 1 }
   0x8   : > { %p327_p3 = scmp.ne.s32.totalorder %s4530_s26, %s4526_s25  ;;  %p328_p4 = scmp.eq.s32.totalorder %s3334_s30, 1 }
   0x9   : > { %s4649_s17 = scalar_select %p309_p1, %s4534_s27, %s311_s15  }
   0xa   : > { %p4651_p5 = por %p322_p2, %p321_p0  ;;  %p4655_p6 = por %p328_p4, %p327_p3 }
   0xb   : > { %6668 = sst [smem:[#allocation9_spill]] %s4649_s17  ;;  %p3337_p7 = scmp.ge.s32.totalorder %s4538_s28, 1 }
   0xc   : > { %s6670_s19 = scalar_select %p4655_p6, 1, 0 }
   0xd   : > { %p390_p8 = scmp.lt.s32.totalorder %s4538_s28, 3 }
   0xe   : > { %6671 = sst [smem:[#allocation10_spill]] %s6670_s19 }
   0xf   : > { %p391_p9 = pnand %p3337_p7, %p390_p8 }
  0x10   : > { %v465_v0 = vld [vmem:[%s6649_s1] sm:$0xff] (!%p391_p9)  ;;  %v466_v1 = vld [vmem:[%s6649_s1 + $0x8] sm:$0xff] (!%p391_p9)  ;;  %p434_p10 = scmp.lt.s32.totalorder (!%p391_p9), %s4634_s29, 1  ;;  %v467_v5 = vld [vmem:[%s6649_s1 + $0x10] sm:$0xff] (!%p391_p9)  ;;  %vm483_vm0 = vcmask (!%p391_p9), 687104   ;;  %vm562_vm1 = vcmask (!%p391_p9), 1043456  }
  0x11   : > { %394 = sbr.rel (%p391_p9) target bundleno = 1412 (0x584), region = 72  ;;  %v761_v2 = vld [vmem:[%s6650_s2] sm:$0xff] (!%p391_p9)  ;;  %v3811_v3 = vpack.c.bf16 (!%p391_p9), %v466_v1, %v465_v0  ;;  %v762_v4 = vld [vmem:[%s6650_s2 + $0x8] sm:$0xff] (!%p391_p9)  ;;  %v468_v6 = vld [vmem:[%s6649_s1 + $0x18] sm:$0xff] (!%p391_p9)  ;;  %v4540_v58 = vmov (!%p391_p9), 0.0|0.0   ;;  %vm1048_vm2 = vcmask (!%p391_p9), 654336  }
  0x12   : > { %v3831_v7 = vpack.c.bf16 (!%p391_p9), %v762_v4, %v761_v2  ;;  %v3815_v8 = vpack.c.bf16 (!%p391_p9), %v468_v6, %v467_v5  ;;  %v763_v9 = vld [vmem:[%s6650_s2 + $0x10] sm:$0xff] (!%p391_p9)  ;;  %v764_v10 = vld [vmem:[%s6650_s2 + $0x18] sm:$0xff] (!%p391_p9)  ;;  %v469_v11 = vld [vmem:[%s6649_s1 + $0x20] sm:$0xff] (!%p391_p9)  ;;  %vm1465_vm3 = vcmask (!%p391_p9), 850944   ;;  %vm1493_vm4 = vcmask (!%p391_p9), 1046528   ;;  %s431_s17 = sand.u32 (!%p391_p9), 1, %s4530_s26  }
  0x13   : > { %3812 = vmatprep.subr.bf16.mxu0 (!%p391_p9), %v3811_v3  ;;  %v3835_v12 = vpack.c.bf16 (!%p391_p9), %v764_v10, %v763_v9  ;;  %v470_v13 = vld [vmem:[%s6649_s1 + $0x28] sm:$0xff] (!%p391_p9)  ;;  %v765_v14 = vld [vmem:[%s6650_s2 + $0x20] sm:$0xff] (!%p391_p9)  ;;  %v471_v18 = vld [vmem:[%s6649_s1 + $0x30] sm:$0xff] (!%p391_p9)  ;;  %vm1545_vm5 = vcmask (!%p391_p9), 1045504   ;;  %vm1478_vm6 = vcmask (!%p391_p9), 848896   ;;  %vm2469_vm7 = vcmask (!%p391_p9), 834560  }
  0x14   : > { %v766_v15 = vld [vmem:[%s6650_s2 + $0x28] sm:$0xff] (!%p391_p9)  ;;  %3832 = vmatprep.subr.bf16.mxu1 (!%p391_p9), %v3831_v7  ;;  %3814 = vmatpush3.bf16.msra.mxu0 (!%p391_p9), %v3811_v3  ;;  %v3819_v16 = vpack.c.bf16 (!%p391_p9), %v470_v13, %v469_v11  ;;  %v472_v19 = vld [vmem:[%s6649_s1 + $0x38] sm:$0xff] (!%p391_p9)  ;;  %v767_v20 = vld [vmem:[%s6650_s2 + $0x30] sm:$0xff] (!%p391_p9)  ;;  %vm2722_vm8 = vcmask (!%p391_p9), 261120   ;;  %s3338_s20 = sshll.u32 (!%p391_p9), %s431_s17, 3  ;;  %vm3259_vm9 = vcmask (!%p391_p9), 80896  }
  0x15   : > { %3834 = vmatpush3.bf16.msra.mxu1 (!%p391_p9), %v3831_v7  ;;  %3816 = vmatprep.subr.bf16.mxu0 (!%p391_p9), %v3815_v8  ;;  %v3839_v17 = vpack.c.bf16 (!%p391_p9), %v766_v15, %v765_v14  ;;  %v768_v21 = vld [vmem:[%s6650_s2 + $0x38] sm:$0xff] (!%p391_p9)  ;;  %v3823_v23 = vpack.c.bf16 (!%p391_p9), %v472_v19, %v471_v18  ;;  %v473_v25 = vld [vmem:[%s6649_s1 + $0x40] sm:$0xff] (!%p391_p9)  ;;  %v474_v26 = vld [vmem:[%s6649_s1 + $0x48] sm:$0xff] (!%p391_p9)  ;;  %s433_s22 = scalar_lea.vmem (!%p391_p9), [#allocation4], %s3338_s20  ;;  %s3262_s16 = scalar_lea.sflag (!%p391_p9), [#allocation5], %s431_s17 }
  0x16   : > { %3836 = vmatprep.subr.bf16.mxu1 (!%p391_p9), %v3835_v12  ;;  %v3843_v24 = vpack.c.bf16 (!%p391_p9), %v768_v21, %v767_v20  ;;  %v769_v27 = vld [vmem:[%s6650_s2 + $0x40] sm:$0xff] (!%p391_p9)  ;;  %v770_v28 = vld [vmem:[%s6650_s2 + $0x48] sm:$0xff] (!%p391_p9)  ;;  %v3827_v29 = vpack.c.bf16 (!%p391_p9), %v474_v26, %v473_v25  ;;  %v475_v31 = vld [vmem:[%s6649_s1 + $0x50] sm:$0xf] (!%p391_p9)  ;;  %s3275_s23 = sshll.u32 (!%p391_p9), %s433_s22, 4  ;;  %s6608_s23 = int_to_ptr.vmem [resolvable:$true] %s3275_s23 }
  0x17   : > { %v3847_v30 = vpack.c.bf16 (!%p391_p9), %v770_v28, %v769_v27  ;;  %v771_v32 = vld [vmem:[%s6650_s2 + $0x50] sm:$0xf] (!%p391_p9)  ;;  %v1023_v59 = vld [vmem:[%s6652_s4 + $0x8] sm:$0xff] (!%p391_p9)  ;;  %v4825_v61 = vld [vmem:[%s6651_s3] ss:$0 sm:$0xff] (!%p391_p9)  ;;  %s4476_s19 = scalar_lea.vmem (!%p391_p9), %s6608_s23, 128 }
  0x18   : > { %s435_s27 = scalar_select %p434_p10, %s4634_s29, 1  ;;  %3818 = vmatpush3.bf16.msra.mxu0 %v3815_v8  ;;  %v1219_v60 = vld [vmem:[%s6653_s5 + $0x8] sm:$0xff] }
  0x19   : > { %3838 = vmatpush3.bf16.msra.mxu1 %v3835_v12  ;;  %3820 = vmatprep.subr.bf16.mxu0 %v3819_v16  ;;  %p4477_p11 = scmp.ne.s32.totalorder %s6608_s23, %s4476_s19 }
  0x1a   : > { %s4433_s24 = smul.u32 208, %s435_s27  ;;  %3840 = vmatprep.subr.bf16.mxu1 %v3839_v17  ;;  %s3437_s27 = sshll.u32 %s4634_s29, 7 }
  0x1b   : > { %s6606_s15 = scalar_lea.hbm %s6661_s13, %s3437_s27  ;;  %p4478_p12 = pnand %p4477_p11, %p4651_p5 }
  0x1c   : > { %s4708_s21 = scalar_lea.vmem %s6648_s0, %s4433_s24  ;;  %3822 = vmatpush3.bf16.msra.mxu0 %v3819_v16  ;;  %s4542_s29 = smov [#allocation4]  }
  0x1d   : > { %v439_v22 = vld [vmem:[%s4708_s21] sm:$0xff]  ;;  %3842 = vmatpush3.bf16.msra.mxu1 %v3839_v17  ;;  %3824 = vmatprep.subr.bf16.mxu0 %v3823_v23  ;;  %v440_v33 = vld [vmem:[%s4708_s21 + $0x8] sm:$0xff]  ;;  %v441_v34 = vld [vmem:[%s4708_s21 + $0x10] sm:$0xff]  ;;  %p4479_p13 = pneg %p4478_p12 }
  0x1e   : > { %3711 = vmatprep.mubr.msk.f32.mxu0 %vm483_vm0, %v439_v22  ;;  %3772 = vmatprep.mubr.msk.f32.mxu1 %vm483_vm0, %v439_v22  ;;  %v442_v35 = vld [vmem:[%s4708_s21 + $0x18] sm:$0xff]  ;;  %v443_v36 = vld [vmem:[%s4708_s21 + $0x20] sm:$0xff]  ;;  %v444_v37 = vld [vmem:[%s4708_s21 + $0x28] sm:$0xff] }
  0x1f   : > { %3844 = vmatprep.subr.bf16.mxu1 %v3843_v24  ;;  %v445_v38 = vld [vmem:[%s4708_s21 + $0x30] sm:$0xff]  ;;  %v446_v39 = vld [vmem:[%s4708_s21 + $0x38] sm:$0xff]  ;;  %v447_v40 = vld [vmem:[%s4708_s21 + $0x40] sm:$0xff] }
  0x20   : > { %3826 = vmatpush3.bf16.msra.mxu0 %v3823_v23  ;;  %v448_v41 = vld [vmem:[%s4708_s21 + $0x48] sm:$0xff]  ;;  %v449_v42 = vld [vmem:[%s4708_s21 + $0x50] sm:$0xff]  ;;  %v450_v43 = vld [vmem:[%s4708_s21 + $0x58] sm:$0xff] }
  0x21   : > { %3846 = vmatpush3.bf16.msra.mxu1 %v3843_v24  ;;  %3828 = vmatprep.subr.bf16.mxu0 %v3827_v29  ;;  %v451_v44 = vld [vmem:[%s4708_s21 + $0x60] sm:$0xff]  ;;  %v452_v45 = vld [vmem:[%s4708_s21 + $0x68] sm:$0xff]  ;;  %v453_v46 = vld [vmem:[%s4708_s21 + $0x70] sm:$0xff] }
  0x22   : > { %3848 = vmatprep.subr.bf16.mxu1 %v3847_v30  ;;  %v454_v47 = vld [vmem:[%s4708_s21 + $0x78] sm:$0xff]  ;;  %v455_v48 = vld [vmem:[%s4708_s21 + $0x80] sm:$0xff]  ;;  %v456_v49 = vld [vmem:[%s4708_s21 + $0x88] sm:$0xff] }
  0x23   : > { %v457_v50 = vld [vmem:[%s4708_s21 + $0x90] sm:$0xff]  ;;  %v458_v51 = vld [vmem:[%s4708_s21 + $0x98] sm:$0xff]  ;;  %v459_v52 = vld [vmem:[%s4708_s21 + $0xa0] sm:$0xff] }
  0x24   : > { %3830 = vmatpush3.bf16.msra.mxu0 %v3827_v29  ;;  %v460_v53 = vld [vmem:[%s4708_s21 + $0xa8] sm:$0xff]  ;;  %v461_v54 = vld [vmem:[%s4708_s21 + $0xb0] sm:$0xff]  ;;  %v462_v55 = vld [vmem:[%s4708_s21 + $0xb8] sm:$0xff] }
  0x25   : > { %3850 = vmatpush3.bf16.msra.mxu1 %v3847_v30  ;;  %3709 = vmatprep.subr.msk.mxu0 %vm562_vm1, %v475_v31  ;;  %v463_v56 = vld [vmem:[%s4708_s21 + $0xc0] sm:$0xff]  ;;  %v464_v57 = vld [vmem:[%s4708_s21 + $0xc8] sm:$0xff]  ;;  %s4480_s21 = sshll.u32 %s4542_s29, 4  ;;  %s4481_s21 = int_to_ptr.vmem [resolvable:$false] %s4480_s21 }
  0x26   : > { %3770 = vmatprep.subr.msk.mxu1 %vm562_vm1, %v771_v32  ;;  %s4482_s14 = scalar_lea.vmem %s4481_s21, 256  ;;  %p4483_p0 = scmp.lt.s32.totalorder %s6608_s23, %s4481_s21 }
  0x27   : > { %p4484_p1 = scmp.lt.s32.totalorder %s4482_s14, %s4476_s19 }
  0x28   : > { %3710 = vmatpush3.msk.msra.mxu0 %vm562_vm1, %v475_v31 }
  0x29   : > { %3771 = vmatpush3.msk.msra.mxu1 %vm562_vm1, %v771_v32  ;;  %3712 = vmatmul.mubr.msk.f32.vlgmr.msra.gmra.mrb[0].mxu0 %vm483_vm0, %v440_v33  ;;  %p4485_p2 = por %p4484_p1, %p4483_p0 }
  0x2a   : > { %3773 = vmatmul.mubr.msk.f32.vlgmr.msra.gmra.mrb[0].mxu1 %vm483_vm0, %v440_v33  ;;  %3714 = vmatprep.mubr.msk.f32.mxu0 %vm483_vm0, %v441_v34 }
  0x2b   : > { %3775 = vmatprep.mubr.msk.f32.mxu1 %vm483_vm0, %v441_v34  ;;  %3851 = vmatprep.subr.bf16.mxu0 %v4540_v58  ;;  %p4486_p3 = pnand %p4485_p2, %p4479_p13 }
  0x2c   : > { %3890 = vmatprep.subr.bf16.mxu1 %v4540_v58 }
  0x2d   : > { %3715 = vmatmul.mubr.msk.f32.gmra.mrb[2].mxu0 %vm483_vm0, %v442_v35 }
  0x2e   : > { %3776 = vmatmul.mubr.msk.f32.gmra.mrb[2].mxu1 %vm483_vm0, %v442_v35  ;;  %3717 = vmatprep.mubr.msk.f32.mxu0 %vm483_vm0, %v443_v36 }
  0x2f   : > { %3778 = vmatprep.mubr.msk.f32.mxu1 %vm483_vm0, %v443_v36 }
  0x31   : > { %3718 = vmatmul.mubr.msk.f32.gmra.mrb[4].mxu0 %vm483_vm0, %v444_v37 }
  0x32   : > { %3779 = vmatmul.mubr.msk.f32.gmra.mrb[4].mxu1 %vm483_vm0, %v444_v37  ;;  %3720 = vmatprep.mubr.msk.f32.mxu0 %vm483_vm0, %v445_v38 }
  0x33   : > { %3781 = vmatprep.mubr.msk.f32.mxu1 %vm483_vm0, %v445_v38 }
  0x35   : > { %3721 = vmatmul.mubr.msk.f32.gmra.mrb[6].mxu0 %vm483_vm0, %v446_v39 }
  0x36   : > { %3782 = vmatmul.mubr.msk.f32.gmra.mrb[6].mxu1 %vm483_vm0, %v446_v39  ;;  %3723 = vmatprep.mubr.msk.f32.mxu0 %vm483_vm0, %v447_v40 }
  0x37   : > { %3784 = vmatprep.mubr.msk.f32.mxu1 %vm483_vm0, %v447_v40 }
  0x39   : > { %3724 = vmatmul.mubr.msk.f32.gmra.mrb[8].mxu0 %vm483_vm0, %v448_v41 }
  0x3a   : > { %3785 = vmatmul.mubr.msk.f32.gmra.mrb[8].mxu1 %vm483_vm0, %v448_v41  ;;  %3726 = vmatprep.mubr.msk.f32.mxu0 %vm483_vm0, %v449_v42 }
  0x3b   : > { %3787 = vmatprep.mubr.msk.f32.mxu1 %vm483_vm0, %v449_v42 }
  0x3d   : > { %3727 = vmatmul.mubr.msk.f32.gmra.mrb[10].mxu0 %vm483_vm0, %v450_v43 }
  0x3e   : > { %3788 = vmatmul.mubr.msk.f32.gmra.mrb[10].mxu1 %vm483_vm0, %v450_v43  ;;  %3729 = vmatprep.mubr.msk.f32.mxu0 %vm483_vm0, %v451_v44 }
  0x3f   : > { %3790 = vmatprep.mubr.msk.f32.mxu1 %vm483_vm0, %v451_v44 }
  0x41   : > { %3730 = vmatmul.mubr.msk.f32.gmra.mrb[12].mxu0 %vm483_vm0, %v452_v45 }
  0x42   : > { %3791 = vmatmul.mubr.msk.f32.gmra.mrb[12].mxu1 %vm483_vm0, %v452_v45  ;;  %3732 = vmatprep.mubr.msk.f32.mxu0 %vm483_vm0, %v453_v46 }
  0x43   : > { %3793 = vmatprep.mubr.msk.f32.mxu1 %vm483_vm0, %v453_v46 }
  0x45   : > { %3733 = vmatmul.mubr.msk.f32.gmra.mrb[14].mxu0 %vm483_vm0, %v454_v47 }
  0x46   : > { %3794 = vmatmul.mubr.msk.f32.gmra.mrb[14].mxu1 %vm483_vm0, %v454_v47  ;;  %3735 = vmatprep.mubr.msk.f32.mxu0 %vm483_vm0, %v455_v48 }
  0x47   : > { %3796 = vmatprep.mubr.msk.f32.mxu1 %vm483_vm0, %v455_v48 }
  0x49   : > { %3736 = vmatmul.mubr.msk.f32.gmra.mrb[16].mxu0 %vm483_vm0, %v456_v49 }
  0x4a   : > { %3797 = vmatmul.mubr.msk.f32.gmra.mrb[16].mxu1 %vm483_vm0, %v456_v49  ;;  %3738 = vmatprep.mubr.msk.f32.mxu0 %vm483_vm0, %v457_v50 }
  0x4b   : > { %3799 = vmatprep.mubr.msk.f32.mxu1 %vm483_vm0, %v457_v50 }
  0x4d   : > { %3739 = vmatmul.mubr.msk.f32.gmra.mrb[18].mxu0 %vm483_vm0, %v458_v51 }
  0x4e   : > { %3800 = vmatmul.mubr.msk.f32.gmra.mrb[18].mxu1 %vm483_vm0, %v458_v51  ;;  %3741 = vmatprep.mubr.msk.f32.mxu0 %vm483_vm0, %v459_v52 }
  0x4f   : > { %3802 = vmatprep.mubr.msk.f32.mxu1 %vm483_vm0, %v459_v52 }
  0x51   : > { %3742 = vmatmul.mubr.msk.f32.gmra.mrb[20].mxu0 %vm483_vm0, %v460_v53 }
  0x52   : > { %3803 = vmatmul.mubr.msk.f32.gmra.mrb[20].mxu1 %vm483_vm0, %v460_v53  ;;  %3744 = vmatprep.mubr.msk.f32.mxu0 %vm483_vm0, %v461_v54 }
  0x53   : > { %3805 = vmatprep.mubr.msk.f32.mxu1 %vm483_vm0, %v461_v54 }
  0x55   : > { %3745 = vmatmul.mubr.msk.f32.gmra.mrb[22].mxu0 %vm483_vm0, %v462_v55 }
  0x56   : > { %3806 = vmatmul.mubr.msk.f32.gmra.mrb[22].mxu1 %vm483_vm0, %v462_v55  ;;  %3747 = vmatprep.mubr.msk.f32.mxu0 %vm483_vm0, %v463_v56 }
  0x57   : > { %3808 = vmatprep.mubr.msk.f32.mxu1 %vm483_vm0, %v463_v56 }
  0x59   : > { %3748 = vmatmul.mubr.msk.f32.gmra.mrb[24].mxu0 %vm483_vm0, %v464_v57 }
  0x5a   : > { %3809 = vmatmul.mubr.msk.f32.gmra.mrb[24].mxu1 %vm483_vm0, %v464_v57  ;;  %3395 = vmatprep.mubr.msk.f32.mxu0 %vm1048_vm2, %v1023_v59 }
  0x5b   : > { %3408 = vmatprep.mubr.msk.f32.mxu1 %vm1048_vm2, %v1219_v60 }
  0xfc   : > { %v3713_v62 = vpop.f32.mrb[0].mxu0 }
  0xfd   : > { %v638_v63 = vadd.f32 %v3713_v62, %v4825_v61  ;;  %v3774_v0 = vpop.f32.mrb[0].mxu1  ;;  %v632_v1 = vpop.f32.mrb[1].mxu0 }
  0xfe   : > { %v847_v2 = vadd.f32 %v3774_v0, %v4825_v61  ;;  %v633_v3 = vadd.f32 %v4825_v61, %v632_v1  ;;  %v841_v4 = vpop.f32.mrb[1].mxu1 }
  0xff   : > { %v842_v5 = vadd.f32 %v4825_v61, %v841_v4 }
 0x100   : > { %v971_v6 = vmax.f32 %v638_v63, %v847_v2  ;;  %v3716_v7 = vpop.f32.mrb[2].mxu0 }
 0x101   : > { %v970_v8 = vmax.f32 %v633_v3, %v842_v5  ;;  %v648_v9 = vadd.f32 %v3716_v7, %v4825_v61  ;;  %v3777_v10 = vpop.f32.mrb[2].mxu1  ;;  %v642_v11 = vpop.f32.mrb[3].mxu0 }
 0x102   : > { %v997_v12 = vmax.f32 %v971_v6, 0.0  ;;  %v857_v13 = vadd.f32 %v3777_v10, %v4825_v61  ;;  %v643_v14 = vadd.f32 %v4825_v61, %v642_v11  ;;  %v851_v15 = vpop.f32.mrb[3].mxu1 }
 0x103   : > { %v996_v16 = vmax.f32 %v970_v8, 0.0  ;;  %v852_v17 = vadd.f32 %v4825_v61, %v851_v15 }
 0x104   : > { %v973_v18 = vmax.f32 %v648_v9, %v857_v13  ;;  %v3719_v19 = vpop.f32.mrb[4].mxu0 }
 0x105   : > { %v3852_v20 = vpack.c.bf16 %v997_v12, %v996_v16  ;;  %v972_v21 = vmax.f32 %v643_v14, %v852_v17  ;;  %v658_v22 = vadd.f32 %v3719_v19, %v4825_v61  ;;  %v3780_v23 = vpop.f32.mrb[4].mxu1  ;;  %v652_v24 = vpop.f32.mrb[5].mxu0 }
 0x106   : > { %v999_v25 = vmax.f32 %v973_v18, 0.0  ;;  %v867_v26 = vadd.f32 %v3780_v23, %v4825_v61  ;;  %v653_v27 = vadd.f32 %v4825_v61, %v652_v24  ;;  %v861_v28 = vpop.f32.mrb[5].mxu1 }
 0x107   : > { %v998_v29 = vmax.f32 %v972_v21, 0.0  ;;  %v862_v30 = vadd.f32 %v4825_v61, %v861_v28  ;;  %3853 = vmatpush1.bf16.msra.mxu0 %v3852_v20  ;;  %3892 = vmatpush1.bf16.msra.mxu1 %v3852_v20 }
 0x108   : > { %v975_v31 = vmax.f32 %v658_v22, %v867_v26  ;;  %v3722_v32 = vpop.f32.mrb[6].mxu0  ;;  %3854 = vmatprep.subr.bf16.mxu0 %v4540_v58  ;;  %3893 = vmatprep.subr.bf16.mxu1 %v4540_v58 }
 0x109   : > { %v3855_v33 = vpack.c.bf16 %v999_v25, %v998_v29  ;;  %v974_v34 = vmax.f32 %v653_v27, %v862_v30  ;;  %v668_v35 = vadd.f32 %v3722_v32, %v4825_v61  ;;  %v3783_v36 = vpop.f32.mrb[6].mxu1  ;;  %v662_v37 = vpop.f32.mrb[7].mxu0 }
 0x10a   : > { %v1001_v38 = vmax.f32 %v975_v31, 0.0  ;;  %v877_v39 = vadd.f32 %v3783_v36, %v4825_v61  ;;  %v663_v40 = vadd.f32 %v4825_v61, %v662_v37  ;;  %v871_v41 = vpop.f32.mrb[7].mxu1 }
 0x10b   : > { %v1000_v42 = vmax.f32 %v974_v34, 0.0  ;;  %v872_v43 = vadd.f32 %v4825_v61, %v871_v41  ;;  %3856 = vmatpush1.bf16.msra.mxu0 %v3855_v33  ;;  %3895 = vmatpush1.bf16.msra.mxu1 %v3855_v33 }
 0x10c   : > { %v977_v44 = vmax.f32 %v668_v35, %v877_v39  ;;  %v3725_v45 = vpop.f32.mrb[8].mxu0  ;;  %3857 = vmatprep.subr.bf16.mxu0 %v4540_v58  ;;  %3896 = vmatprep.subr.bf16.mxu1 %v4540_v58 }
 0x10d   : > { %v3858_v46 = vpack.c.bf16 %v1001_v38, %v1000_v42  ;;  %v976_v47 = vmax.f32 %v663_v40, %v872_v43  ;;  %v678_v48 = vadd.f32 %v3725_v45, %v4825_v61  ;;  %v3786_v49 = vpop.f32.mrb[8].mxu1  ;;  %v672_v50 = vpop.f32.mrb[9].mxu0 }
 0x10e   : > { %v1003_v51 = vmax.f32 %v977_v44, 0.0  ;;  %v887_v52 = vadd.f32 %v3786_v49, %v4825_v61  ;;  %v673_v53 = vadd.f32 %v4825_v61, %v672_v50  ;;  %v881_v54 = vpop.f32.mrb[9].mxu1 }
 0x10f   : > { %v1002_v55 = vmax.f32 %v976_v47, 0.0  ;;  %v882_v56 = vadd.f32 %v4825_v61, %v881_v54  ;;  %3859 = vmatpush1.bf16.msra.mxu0 %v3858_v46  ;;  %3898 = vmatpush1.bf16.msra.mxu1 %v3858_v46 }
 0x110   : > { %v979_v57 = vmax.f32 %v678_v48, %v887_v52  ;;  %v3728_v59 = vpop.f32.mrb[10].mxu0  ;;  %3860 = vmatprep.subr.bf16.mxu0 %v4540_v58  ;;  %3899 = vmatprep.subr.bf16.mxu1 %v4540_v58 }
 0x111   : > { %v3861_v60 = vpack.c.bf16 %v1003_v51, %v1002_v55  ;;  %v978_v62 = vmax.f32 %v673_v53, %v882_v56  ;;  %v688_v63 = vadd.f32 %v3728_v59, %v4825_v61  ;;  %v3789_v0 = vpop.f32.mrb[10].mxu1  ;;  %v682_v1 = vpop.f32.mrb[11].mxu0 }
 0x112   : > { %v1005_v2 = vmax.f32 %v979_v57, 0.0  ;;  %v897_v3 = vadd.f32 %v3789_v0, %v4825_v61  ;;  %v683_v4 = vadd.f32 %v4825_v61, %v682_v1  ;;  %v891_v5 = vpop.f32.mrb[11].mxu1 }
 0x113   : > { %v1004_v6 = vmax.f32 %v978_v62, 0.0  ;;  %v892_v7 = vadd.f32 %v4825_v61, %v891_v5  ;;  %3862 = vmatpush1.bf16.msra.mxu0 %v3861_v60  ;;  %3901 = vmatpush1.bf16.msra.mxu1 %v3861_v60 }
 0x114   : > { %v981_v8 = vmax.f32 %v688_v63, %v897_v3  ;;  %v3731_v9 = vpop.f32.mrb[12].mxu0  ;;  %3863 = vmatprep.subr.bf16.mxu0 %v4540_v58  ;;  %3902 = vmatprep.subr.bf16.mxu1 %v4540_v58 }
 0x115   : > { %v3864_v10 = vpack.c.bf16 %v1005_v2, %v1004_v6  ;;  %v980_v11 = vmax.f32 %v683_v4, %v892_v7  ;;  %v698_v12 = vadd.f32 %v3731_v9, %v4825_v61  ;;  %v3792_v13 = vpop.f32.mrb[12].mxu1  ;;  %v692_v14 = vpop.f32.mrb[13].mxu0 }
 0x116   : > { %v1007_v15 = vmax.f32 %v981_v8, 0.0  ;;  %v907_v16 = vadd.f32 %v3792_v13, %v4825_v61  ;;  %v693_v17 = vadd.f32 %v4825_v61, %v692_v14  ;;  %v901_v18 = vpop.f32.mrb[13].mxu1 }
 0x117   : > { %v1006_v19 = vmax.f32 %v980_v11, 0.0  ;;  %v902_v20 = vadd.f32 %v4825_v61, %v901_v18  ;;  %3865 = vmatpush1.bf16.msra.mxu0 %v3864_v10  ;;  %3904 = vmatpush1.bf16.msra.mxu1 %v3864_v10 }
 0x118   : > { %v983_v21 = vmax.f32 %v698_v12, %v907_v16  ;;  %v3734_v22 = vpop.f32.mrb[14].mxu0  ;;  %3866 = vmatprep.subr.bf16.mxu0 %v4540_v58  ;;  %3905 = vmatprep.subr.bf16.mxu1 %v4540_v58 }
 0x119   : > { %v3867_v23 = vpack.c.bf16 %v1007_v15, %v1006_v19  ;;  %v982_v24 = vmax.f32 %v693_v17, %v902_v20  ;;  %v708_v25 = vadd.f32 %v3734_v22, %v4825_v61  ;;  %v3795_v26 = vpop.f32.mrb[14].mxu1  ;;  %v702_v27 = vpop.f32.mrb[15].mxu0 }
 0x11a   : > { %v1009_v28 = vmax.f32 %v983_v21, 0.0  ;;  %v917_v29 = vadd.f32 %v3795_v26, %v4825_v61  ;;  %v703_v30 = vadd.f32 %v4825_v61, %v702_v27  ;;  %v911_v31 = vpop.f32.mrb[15].mxu1 }
 0x11b   : > { %v1008_v32 = vmax.f32 %v982_v24, 0.0  ;;  %v912_v33 = vadd.f32 %v4825_v61, %v911_v31  ;;  %3868 = vmatpush1.bf16.msra.mxu0 %v3867_v23  ;;  %3907 = vmatpush1.bf16.msra.mxu1 %v3867_v23 }
 0x11c   : > { %v985_v34 = vmax.f32 %v708_v25, %v917_v29  ;;  %v3737_v35 = vpop.f32.mrb[16].mxu0  ;;  %3869 = vmatprep.subr.bf16.mxu0 %v4540_v58  ;;  %3908 = vmatprep.subr.bf16.mxu1 %v4540_v58 }
 0x11d   : > { %v3870_v36 = vpack.c.bf16 %v1009_v28, %v1008_v32  ;;  %v984_v37 = vmax.f32 %v703_v30, %v912_v33  ;;  %v718_v38 = vadd.f32 %v3737_v35, %v4825_v61  ;;  %v3798_v39 = vpop.f32.mrb[16].mxu1  ;;  %v712_v40 = vpop.f32.mrb[17].mxu0 }
 0x11e   : > { %v1011_v41 = vmax.f32 %v985_v34, 0.0  ;;  %v927_v42 = vadd.f32 %v3798_v39, %v4825_v61  ;;  %v713_v43 = vadd.f32 %v4825_v61, %v712_v40  ;;  %v921_v44 = vpop.f32.mrb[17].mxu1 }
 0x11f   : > { %v1010_v45 = vmax.f32 %v984_v37, 0.0  ;;  %v922_v46 = vadd.f32 %v4825_v61, %v921_v44  ;;  %3871 = vmatpush1.bf16.msra.mxu0 %v3870_v36  ;;  %3910 = vmatpush1.bf16.msra.mxu1 %v3870_v36 }
 0x120   : > { %v987_v47 = vmax.f32 %v718_v38, %v927_v42  ;;  %v3740_v48 = vpop.f32.mrb[18].mxu0  ;;  %3872 = vmatprep.subr.bf16.mxu0 %v4540_v58  ;;  %3911 = vmatprep.subr.bf16.mxu1 %v4540_v58  ;;  %v1637_v38 = vld [vmem:[%s6654_s6 + $0x8] sm:$0xff]  ;;  %v2033_v42 = vld [vmem:[%s6655_s7 + $0x18] sm:$0xff] }
 0x121   : > { %v3873_v49 = vpack.c.bf16 %v1011_v41, %v1010_v45  ;;  %v986_v50 = vmax.f32 %v713_v43, %v922_v46  ;;  %v728_v51 = vadd.f32 %v3740_v48, %v4825_v61  ;;  %v3801_v52 = vpop.f32.mrb[18].mxu1  ;;  %v722_v53 = vpop.f32.mrb[19].mxu0  ;;  %v1639_v41 = vld [vmem:[%s6654_s6 + $0x18] sm:$0xff]  ;;  %v1638_v48 = vld [vmem:[%s6654_s6 + $0x10] sm:$0xff] }
 0x122   : > { %v1013_v54 = vmax.f32 %v987_v47, 0.0  ;;  %v937_v55 = vadd.f32 %v3801_v52, %v4825_v61  ;;  %v723_v56 = vadd.f32 %v4825_v61, %v722_v53  ;;  %v931_v57 = vpop.f32.mrb[19].mxu1  ;;  %v3929_v45 = vpack.c.bf16 %v1639_v41, %v1637_v38  ;;  %v1636_v47 = vld [vmem:[%s6654_s6] sm:$0xff]  ;;  %v1643_v52 = vld [vmem:[%s6654_s6 + $0x38] sm:$0xff]  ;;  %v2035_v53 = vld [vmem:[%s6655_s7 + $0x28] sm:$0xff] }
 0x123   : > { %v1012_v59 = vmax.f32 %v986_v50, 0.0  ;;  %v932_v60 = vadd.f32 %v4825_v61, %v931_v57  ;;  %3874 = vmatpush1.bf16.msra.mxu0 %v3873_v49  ;;  %3913 = vmatpush1.bf16.msra.mxu1 %v3873_v49  ;;  %v2030_v50 = vld [vmem:[%s6655_s7] sm:$0xff]  ;;  %v1025_v57 = vld [vmem:[%s6652_s4 + $0x18] sm:$0xff]  ;;  %v1028_v41 = vld [vmem:[%s6652_s4 + $0x30] sm:$0xff] }
 0x124   : > { %v989_v62 = vmax.f32 %v728_v51, %v937_v55  ;;  %v3743_v63 = vpop.f32.mrb[20].mxu0  ;;  %3875 = vmatprep.subr.bf16.mxu0 %v4540_v58  ;;  %3914 = vmatprep.subr.bf16.mxu1 %v4540_v58  ;;  %v2032_v51 = vld [vmem:[%s6655_s7 + $0x10] sm:$0xff]  ;;  %v1022_v55 = vld [vmem:[%s6652_s4] sm:$0xff]  ;;  %v1655_v38 = vld [vmem:[%s6654_s6 + $0x98] sm:$0xff] }
 0x125   : > { %v3876_v0 = vpack.c.bf16 %v1013_v54, %v1012_v59  ;;  %v988_v1 = vmax.f32 %v723_v56, %v932_v60  ;;  %v738_v2 = vadd.f32 %v3743_v63, %v4825_v61  ;;  %v3804_v3 = vpop.f32.mrb[20].mxu1  ;;  %v732_v4 = vpop.f32.mrb[21].mxu0  ;;  %v2037_v54 = vld [vmem:[%s6655_s7 + $0x38] sm:$0xff]  ;;  %v1218_v56 = vld [vmem:[%s6653_s5] sm:$0xff]  ;;  %v3931_v60 = vpack.c.bf16 %v1638_v48, %v1636_v47  ;;  %v1654_v47 = vld [vmem:[%s6654_s6 + $0x90] sm:$0xff] }
 0x126   : > { %v1015_v5 = vmax.f32 %v989_v62, 0.0  ;;  %v947_v6 = vadd.f32 %v3804_v3, %v4825_v61  ;;  %v733_v7 = vadd.f32 %v4825_v61, %v732_v4  ;;  %v941_v8 = vpop.f32.mrb[21].mxu1  ;;  %v1221_v59 = vld [vmem:[%s6653_s5 + $0x18] sm:$0xff]  ;;  %v4027_v62 = vpack.c.bf16 %v2032_v51, %v2030_v50  ;;  %v1640_v63 = vld [vmem:[%s6654_s6 + $0x20] sm:$0xff]  ;;  %v2036_v4 = vld [vmem:[%s6655_s7 + $0x30] sm:$0xff] }
 0x127   : > { %v1014_v9 = vmax.f32 %v988_v1, 0.0  ;;  %v942_v10 = vadd.f32 %v4825_v61, %v941_v8  ;;  %3877 = vmatpush1.bf16.msra.mxu0 %v3876_v0  ;;  %3916 = vmatpush1.bf16.msra.mxu1 %v3876_v0  ;;  %v1642_v0 = vld [vmem:[%s6654_s6 + $0x30] sm:$0xff]  ;;  %v2034_v3 = vld [vmem:[%s6655_s7 + $0x20] sm:$0xff]  ;;  %v2041_v8 = vld [vmem:[%s6655_s7 + $0x58] sm:$0xff] }
 0x128   : > { %v991_v11 = vmax.f32 %v738_v2, %v947_v6  ;;  %v3746_v12 = vpop.f32.mrb[22].mxu0  ;;  %3878 = vmatprep.subr.bf16.mxu0 %v4540_v58  ;;  %3917 = vmatprep.subr.bf16.mxu1 %v4540_v58  ;;  %v4029_v2 = vpack.c.bf16 %v2037_v54, %v2035_v53  ;;  %v1647_v6 = vld [vmem:[%s6654_s6 + $0x58] sm:$0xff]  ;;  %v2046_v50 = vld [vmem:[%s6655_s7 + $0x80] sm:$0xff]  ;;  %v2048_v51 = vld [vmem:[%s6655_s7 + $0x90] sm:$0xff] }
 0x129   : > { %v3879_v13 = vpack.c.bf16 %v1015_v5, %v1014_v9  ;;  %v990_v14 = vmax.f32 %v733_v7, %v942_v10  ;;  %v748_v15 = vadd.f32 %v3746_v12, %v4825_v61  ;;  %v3807_v16 = vpop.f32.mrb[22].mxu1  ;;  %v742_v17 = vpop.f32.mrb[23].mxu0  ;;  %v1645_v5 = vld [vmem:[%s6654_s6 + $0x48] sm:$0xff]  ;;  %v1024_v9 = vld [vmem:[%s6652_s4 + $0x10] sm:$0xff]  ;;  %v2053_v54 = vld [vmem:[%s6655_s7 + $0xb8] sm:$0xff] }
 0x12a   : > { %v1017_v18 = vmax.f32 %v991_v11, 0.0  ;;  %v957_v19 = vadd.f32 %v3807_v16, %v4825_v61  ;;  %v743_v20 = vadd.f32 %v4825_v61, %v742_v17  ;;  %v951_v21 = vpop.f32.mrb[23].mxu1  ;;  %v2039_v7 = vld [vmem:[%s6655_s7 + $0x48] sm:$0xff]  ;;  %v1220_v10 = vld [vmem:[%s6653_s5 + $0x10] sm:$0xff]  ;;  %v3937_v17 = vpack.c.bf16 %v1647_v6, %v1645_v5  ;;  %v1663_v6 = vld [vmem:[%s6654_s6 + $0xd8] sm:$0xff] }
 0x12b   : > { %v1016_v22 = vmax.f32 %v990_v14, 0.0  ;;  %v952_v23 = vadd.f32 %v4825_v61, %v951_v21  ;;  %3880 = vmatpush1.bf16.msra.mxu0 %v3879_v13  ;;  %3919 = vmatpush1.bf16.msra.mxu1 %v3879_v13  ;;  %v1027_v11 = vld [vmem:[%s6652_s4 + $0x28] sm:$0xff]  ;;  %v3935_v13 = vpack.c.bf16 %v1642_v0, %v1640_v63  ;;  %v4031_v14 = vpack.c.bf16 %v2036_v4, %v2034_v3  ;;  %v1646_v16 = vld [vmem:[%s6654_s6 + $0x50] sm:$0xff]  ;;  %v1656_v63 = vld [vmem:[%s6654_s6 + $0xa0] sm:$0xff] }
 0x12c   : > { %v993_v24 = vmax.f32 %v748_v15, %v957_v19  ;;  %v3749_v25 = vpop.f32.mrb[24].mxu0  ;;  %3881 = vmatprep.subr.bf16.mxu0 %v4540_v58  ;;  %3920 = vmatprep.subr.bf16.mxu1 %v4540_v58  ;;  %v1223_v12 = vld [vmem:[%s6653_s5 + $0x28] sm:$0xff]  ;;  %v1644_v15 = vld [vmem:[%s6654_s6 + $0x40] sm:$0xff]  ;;  %v1658_v0 = vld [vmem:[%s6654_s6 + $0xb0] sm:$0xff] }
 0x12d   : > { %v3882_v26 = vpack.c.bf16 %v1017_v18, %v1016_v22  ;;  %v992_v27 = vmax.f32 %v743_v20, %v952_v23  ;;  %v758_v28 = vadd.f32 %v3749_v25, %v4825_v61  ;;  %v3810_v29 = vpop.f32.mrb[24].mxu1  ;;  %v752_v30 = vpop.f32.mrb[25].mxu0  ;;  %v4033_v18 = vpack.c.bf16 %v2041_v8, %v2039_v7  ;;  %v2038_v19 = vld [vmem:[%s6655_s7 + $0x40] sm:$0xff]  ;;  %v2040_v20 = vld [vmem:[%s6655_s7 + $0x50] sm:$0xff]  ;;  %v1649_v21 = vld [vmem:[%s6654_s6 + $0x68] sm:$0xff] }
 0x12e   : > { %v1019_v31 = vmax.f32 %v993_v24, 0.0  ;;  %v967_v32 = vadd.f32 %v3810_v29, %v4825_v61  ;;  %v753_v33 = vadd.f32 %v4825_v61, %v752_v30  ;;  %v961_v34 = vpop.f32.mrb[25].mxu1  ;;  %v1651_v22 = vld [vmem:[%s6654_s6 + $0x78] sm:$0xff]  ;;  %v2043_v23 = vld [vmem:[%s6655_s7 + $0x68] sm:$0xff]  ;;  %v1026_v25 = vld [vmem:[%s6652_s4 + $0x20] sm:$0xff]  ;;  %v3939_v29 = vpack.c.bf16 %v1646_v16, %v1644_v15 }
 0x12f   : > { %v1018_v35 = vmax.f32 %v992_v27, 0.0  ;;  %v962_v36 = vadd.f32 %v4825_v61, %v961_v34  ;;  %3883 = vmatpush1.bf16.msra.mxu0 %v3882_v26  ;;  %3922 = vmatpush1.bf16.msra.mxu1 %v3882_v26  ;;  %v2031_v61 = vld [vmem:[%s6655_s7 + $0x8] sm:$0xff]  ;;  %v2045_v24 = vld [vmem:[%s6655_s7 + $0x78] sm:$0xff]  ;;  %v1222_v26 = vld [vmem:[%s6653_s5 + $0x20] sm:$0xff]  ;;  %v4035_v30 = vpack.c.bf16 %v2040_v20, %v2038_v19 }
 0x130   : > { %v995_v37 = vmax.f32 %v758_v28, %v967_v32  ;;  %3884 = vmatprep.subr.bf16.mxu0 %v4540_v58  ;;  %3923 = vmatprep.subr.bf16.mxu1 %v4540_v58  ;;  %v4025_v46 = vpack.c.bf16 %v2033_v42, %v2031_v61  ;;  %v1029_v27 = vld [vmem:[%s6652_s4 + $0x38] sm:$0xff]  ;;  %v1650_v32 = vld [vmem:[%s6654_s6 + $0x70] sm:$0xff]  ;;  %v4037_v34 = vpack.c.bf16 %v2045_v24, %v2043_v23  ;;  %v1031_v42 = vld [vmem:[%s6652_s4 + $0x48] sm:$0xff] }
 0x131   : > { %v3885_v39 = vpack.c.bf16 %v1019_v31, %v1018_v35  ;;  %v994_v40 = vmax.f32 %v753_v33, %v962_v36  ;;  %v1225_v28 = vld [vmem:[%s6653_s5 + $0x38] sm:$0xff]  ;;  %v1648_v31 = vld [vmem:[%s6654_s6 + $0x60] sm:$0xff]  ;;  %v3941_v33 = vpack.c.bf16 %v1651_v22, %v1649_v21  ;;  %v2044_v36 = vld [vmem:[%s6655_s7 + $0x70] sm:$0xff] }
 0x132   : > { %v1021_v43 = vmax.f32 %v995_v37, 0.0  ;;  %v2042_v35 = vld [vmem:[%s6655_s7 + $0x60] sm:$0xff]  ;;  %v1653_v37 = vld [vmem:[%s6654_s6 + $0x88] sm:$0xff]  ;;  %v1224_v61 = vld [vmem:[%s6653_s5 + $0x30] sm:$0xff] }
 0x133   : > { %v1020_v44 = vmax.f32 %v994_v40, 0.0  ;;  %3886 = vmatpush1.bf16.msra.mxu0 %v3885_v39  ;;  %3925 = vmatpush1.bf16.msra.mxu1 %v3885_v39  ;;  %v2047_v39 = vld [vmem:[%s6655_s7 + $0x88] sm:$0xff]  ;;  %v2049_v40 = vld [vmem:[%s6655_s7 + $0x98] sm:$0xff]  ;;  %v3945_v48 = vpack.c.bf16 %v1655_v38, %v1653_v37  ;;  %v2050_v3 = vld [vmem:[%s6655_s7 + $0xa0] sm:$0xff] }
 0x134   : > { %3887 = vmatprep.subr.bf16.mxu0 %v4540_v58  ;;  %3926 = vmatprep.subr.bf16.mxu1 %v4540_v58  ;;  %v1641_v58 = vld [vmem:[%s6654_s6 + $0x28] sm:$0xff]  ;;  %v2052_v4 = vld [vmem:[%s6655_s7 + $0xb0] sm:$0xff]  ;;  %v2057_v8 = vld [vmem:[%s6655_s7 + $0xd8] sm:$0xff] }
 0x135   : > { %v3888_v49 = vpack.c.bf16 %v1021_v43, %v1020_v44  ;;  %v3933_v1 = vpack.c.bf16 %v1643_v52, %v1641_v58  ;;  %v1227_v43 = vld [vmem:[%s6653_s5 + $0x48] sm:$0xff]  ;;  %v3943_v44 = vpack.c.bf16 %v1650_v32, %v1648_v31  ;;  %v1659_v52 = vld [vmem:[%s6654_s6 + $0xb8] sm:$0xff]  ;;  %v1660_v15 = vld [vmem:[%s6654_s6 + $0xc0] sm:$0xff] }
 0x136   : > { %v1657_v58 = vld [vmem:[%s6654_s6 + $0xa8] sm:$0xff]  ;;  %v1662_v16 = vld [vmem:[%s6654_s6 + $0xd0] sm:$0xff]  ;;  %v2054_v19 = vld [vmem:[%s6655_s7 + $0xc0] sm:$0xff] }
 0x137   : > { %3889 = vmatpush1.bf16.msra.mxu0 %v3888_v49  ;;  %3928 = vmatpush1.bf16.msra.mxu1 %v3888_v49  ;;  %v4041_v49 = vpack.c.bf16 %v2049_v40, %v2047_v39  ;;  %v2051_v53 = vld [vmem:[%s6655_s7 + $0xa8] sm:$0xff]  ;;  %v2056_v20 = vld [vmem:[%s6655_s7 + $0xd0] sm:$0xff]  ;;  %v1667_v22 = vld [vmem:[%s6654_s6 + $0xf8] sm:$0xff] }
 0x138   : > { %3930 = vmatprep.subr.bf16.mxu0 %v3929_v45  ;;  %4026 = vmatprep.subr.bf16.mxu1 %v4025_v46  ;;  %v4039_v45 = vpack.c.bf16 %v2044_v36, %v2042_v35  ;;  %v1652_v46 = vld [vmem:[%s6654_s6 + $0x80] sm:$0xff]  ;;  %v1661_v5 = vld [vmem:[%s6654_s6 + $0xc8] sm:$0xff]  ;;  %v2061_v24 = vld [vmem:[%s6655_s7 + $0xf8] sm:$0xff] }
 0x139   : > { %v2055_v7 = vld [vmem:[%s6655_s7 + $0xc8] sm:$0xff]  ;;  %v1664_v31 = vld [vmem:[%s6654_s6 + $0xe0] sm:$0xff]  ;;  %v1666_v32 = vld [vmem:[%s6654_s6 + $0xf0] sm:$0xff] }
 0x13a   : > { %1153 = vmatmul.mubr.f32.vlgmr.msra.gmra.mrb[26].mxu0 %v1022_v55  ;;  %1348 = vmatmul.mubr.f32.vlgmr.msra.gmra.mrb[26].mxu1 %v1218_v56  ;;  %v1030_v55 = vld [vmem:[%s6652_s4 + $0x40] sm:$0xff]  ;;  %v1665_v21 = vld [vmem:[%s6654_s6 + $0xe8] sm:$0xff]  ;;  %v2060_v36 = vld [vmem:[%s6655_s7 + $0xf0] sm:$0xff] }
 0x13b   : > { %3396 = vmatprep.mubr.msk.f32.mxu0 %vm1048_vm2, %v1025_v57  ;;  %3409 = vmatprep.mubr.msk.f32.mxu1 %vm1048_vm2, %v1221_v59  ;;  %v1226_v56 = vld [vmem:[%s6653_s5 + $0x40] sm:$0xff]  ;;  %v1033_v57 = vld [vmem:[%s6652_s4 + $0x58] sm:$0xff]  ;;  %v2059_v23 = vld [vmem:[%s6655_s7 + $0xe8] sm:$0xff] }
 0x13c   : > { %3932 = vmatpush1.bf16.msra.mxu0 %v3931_v60  ;;  %4028 = vmatpush1.bf16.msra.mxu1 %v4027_v62  ;;  %v1229_v59 = vld [vmem:[%s6653_s5 + $0x58] sm:$0xff]  ;;  %v3947_v60 = vpack.c.bf16 %v1654_v47, %v1652_v46  ;;  %v4043_v62 = vpack.c.bf16 %v2048_v51, %v2046_v50  ;;  %v2058_v35 = vld [vmem:[%s6655_s7 + $0xe0] sm:$0xff]  ;;  %v1669_v37 = vld [vmem:[%s6654_s6 + $0x108] sm:$0xff] }
 0x13d   : > { %3934 = vmatprep.subr.bf16.mxu0 %v3933_v1  ;;  %4030 = vmatprep.subr.bf16.mxu1 %v4029_v2  ;;  %v3949_v1 = vpack.c.bf16 %v1659_v52, %v1657_v58  ;;  %v4045_v2 = vpack.c.bf16 %v2053_v54, %v2051_v53  ;;  %v1671_v38 = vld [vmem:[%s6654_s6 + $0x118] sm:$0xff]  ;;  %v2063_v39 = vld [vmem:[%s6655_s7 + $0x108] sm:$0xff]  ;;  %v1668_v46 = vld [vmem:[%s6654_s6 + $0x100] sm:$0xff] }
 0x13e   : > { %1158 = vmatmul.mubr.f32.gmra.mrb[28].mxu0 %v1024_v9  ;;  %1353 = vmatmul.mubr.f32.gmra.mrb[28].mxu1 %v1220_v10  ;;  %v1032_v9 = vld [vmem:[%s6652_s4 + $0x50] sm:$0xff]  ;;  %v2065_v40 = vld [vmem:[%s6655_s7 + $0x118] sm:$0xff]  ;;  %v2062_v50 = vld [vmem:[%s6655_s7 + $0x100] sm:$0xff] }
 0x13f   : > { %3397 = vmatprep.mubr.msk.f32.mxu0 %vm1048_vm2, %v1027_v11  ;;  %3410 = vmatprep.mubr.msk.f32.mxu1 %vm1048_vm2, %v1223_v12  ;;  %v1228_v10 = vld [vmem:[%s6653_s5 + $0x50] sm:$0xff]  ;;  %v1035_v11 = vld [vmem:[%s6652_s4 + $0x68] sm:$0xff]  ;;  %v1675_v52 = vld [vmem:[%s6654_s6 + $0x138] sm:$0xff] }
 0x140   : > { %3936 = vmatpush1.bf16.msra.mxu0 %v3935_v13  ;;  %4032 = vmatpush1.bf16.msra.mxu1 %v4031_v14  ;;  %v1231_v12 = vld [vmem:[%s6653_s5 + $0x68] sm:$0xff]  ;;  %v3951_v13 = vpack.c.bf16 %v1658_v0, %v1656_v63  ;;  %v4047_v14 = vpack.c.bf16 %v2052_v4, %v2050_v3  ;;  %v1670_v47 = vld [vmem:[%s6654_s6 + $0x110] sm:$0xff]  ;;  %v2069_v54 = vld [vmem:[%s6655_s7 + $0x138] sm:$0xff] }
 0x141   : > { %3938 = vmatprep.subr.bf16.mxu0 %v3937_v17  ;;  %4034 = vmatprep.subr.bf16.mxu1 %v4033_v18  ;;  %v3953_v17 = vpack.c.bf16 %v1663_v6, %v1661_v5  ;;  %v4049_v18 = vpack.c.bf16 %v2057_v8, %v2055_v7  ;;  %v2064_v51 = vld [vmem:[%s6655_s7 + $0x110] sm:$0xff]  ;;  %v1673_v58 = vld [vmem:[%s6654_s6 + $0x128] sm:$0xff]  ;;  %v1672_v63 = vld [vmem:[%s6654_s6 + $0x120] sm:$0xff] }
 0x142   : > { %1163 = vmatmul.mubr.f32.gmra.mrb[30].mxu0 %v1026_v25  ;;  %1358 = vmatmul.mubr.f32.gmra.mrb[30].mxu1 %v1222_v26  ;;  %v1034_v25 = vld [vmem:[%s6652_s4 + $0x60] sm:$0xff]  ;;  %v2067_v53 = vld [vmem:[%s6655_s7 + $0x128] sm:$0xff]  ;;  %v1674_v0 = vld [vmem:[%s6654_s6 + $0x130] sm:$0xff] }
 0x143   : > { %3398 = vmatprep.mubr.msk.f32.mxu0 %vm1048_vm2, %v1029_v27  ;;  %3411 = vmatprep.mubr.msk.f32.mxu1 %vm1048_vm2, %v1225_v28  ;;  %v1230_v26 = vld [vmem:[%s6653_s5 + $0x60] sm:$0xff]  ;;  %v1037_v27 = vld [vmem:[%s6652_s4 + $0x78] sm:$0xff]  ;;  %v2068_v4 = vld [vmem:[%s6655_s7 + $0x130] sm:$0xff] }
 0x144   : > { %3940 = vmatpush1.bf16.msra.mxu0 %v3939_v29  ;;  %4036 = vmatpush1.bf16.msra.mxu1 %v4035_v30  ;;  %v1233_v28 = vld [vmem:[%s6653_s5 + $0x78] sm:$0xff]  ;;  %v3955_v29 = vpack.c.bf16 %v1662_v16, %v1660_v15  ;;  %v4051_v30 = vpack.c.bf16 %v2056_v20, %v2054_v19  ;;  %v2066_v3 = vld [vmem:[%s6655_s7 + $0x120] sm:$0xff]  ;;  %v1677_v5 = vld [vmem:[%s6654_s6 + $0x148] sm:$0xff] }
 0x145   : > { %3942 = vmatprep.subr.bf16.mxu0 %v3941_v33  ;;  %4038 = vmatprep.subr.bf16.mxu1 %v4037_v34  ;;  %v3957_v33 = vpack.c.bf16 %v1667_v22, %v1665_v21  ;;  %v4053_v34 = vpack.c.bf16 %v2061_v24, %v2059_v23  ;;  %v1679_v6 = vld [vmem:[%s6654_s6 + $0x158] sm:$0xff]  ;;  %v2071_v7 = vld [vmem:[%s6655_s7 + $0x148] sm:$0xff]  ;;  %v1676_v15 = vld [vmem:[%s6654_s6 + $0x140] sm:$0xff] }
 0x146   : > { %1168 = vmatmul.mubr.f32.gmra.mrb[32].mxu0 %v1028_v41  ;;  %1363 = vmatmul.mubr.f32.gmra.mrb[32].mxu1 %v1224_v61  ;;  %v1036_v41 = vld [vmem:[%s6652_s4 + $0x70] sm:$0xff]  ;;  %v2073_v8 = vld [vmem:[%s6655_s7 + $0x158] sm:$0xff]  ;;  %v2070_v19 = vld [vmem:[%s6655_s7 + $0x140] sm:$0xff] }
 0x147   : > { %3399 = vmatprep.mubr.msk.f32.mxu0 %vm1048_vm2, %v1031_v42  ;;  %3412 = vmatprep.mubr.msk.f32.mxu1 %vm1048_vm2, %v1227_v43  ;;  %v1232_v61 = vld [vmem:[%s6653_s5 + $0x70] sm:$0xff]  ;;  %v1039_v42 = vld [vmem:[%s6652_s4 + $0x88] sm:$0xff]  ;;  %v1683_v22 = vld [vmem:[%s6654_s6 + $0x178] sm:$0xff] }
 0x148   : > { %3944 = vmatpush1.bf16.msra.mxu0 %v3943_v44  ;;  %4040 = vmatpush1.bf16.msra.mxu1 %v4039_v45  ;;  %v1235_v43 = vld [vmem:[%s6653_s5 + $0x88] sm:$0xff]  ;;  %v3959_v44 = vpack.c.bf16 %v1666_v32, %v1664_v31  ;;  %v4055_v45 = vpack.c.bf16 %v2060_v36, %v2058_v35  ;;  %v1678_v16 = vld [vmem:[%s6654_s6 + $0x150] sm:$0xff]  ;;  %v2077_v24 = vld [vmem:[%s6655_s7 + $0x178] sm:$0xff] }
 0x149   : > { %3946 = vmatprep.subr.bf16.mxu0 %v3945_v48  ;;  %4042 = vmatprep.subr.bf16.mxu1 %v4041_v49  ;;  %v3961_v48 = vpack.c.bf16 %v1671_v38, %v1669_v37  ;;  %v4057_v49 = vpack.c.bf16 %v2065_v40, %v2063_v39  ;;  %v2072_v20 = vld [vmem:[%s6655_s7 + $0x150] sm:$0xff]  ;;  %v1681_v21 = vld [vmem:[%s6654_s6 + $0x168] sm:$0xff]  ;;  %v1046_v37 = vld [vmem:[%s6652_s4 + $0xc0] sm:$0xff] }
 0x14a   : > { %1173 = vmatmul.mubr.f32.gmra.mrb[34].mxu0 %v1030_v55  ;;  %1368 = vmatmul.mubr.f32.gmra.mrb[34].mxu1 %v1226_v56  ;;  %v1038_v55 = vld [vmem:[%s6652_s4 + $0x80] sm:$0xff]  ;;  %v2075_v23 = vld [vmem:[%s6655_s7 + $0x168] sm:$0xff]  ;;  %v3973_v31 = vpack.c.bf16 %v1683_v22, %v1681_v21  ;;  %v1682_v40 = vld [vmem:[%s6654_s6 + $0x170] sm:$0xff] }
 0x14b   : > { %3400 = vmatprep.mubr.msk.f32.mxu0 %vm1048_vm2, %v1033_v57  ;;  %3413 = vmatprep.mubr.msk.f32.mxu1 %vm1048_vm2, %v1229_v59  ;;  %v1234_v56 = vld [vmem:[%s6653_s5 + $0x80] sm:$0xff]  ;;  %v1041_v57 = vld [vmem:[%s6652_s4 + $0x98] sm:$0xff]  ;;  %v4069_v32 = vpack.c.bf16 %v2077_v24, %v2075_v23  ;;  %v1047_v35 = vld [vmem:[%s6652_s4 + $0xc8] sm:$0xff] }
 0x14c   : > { %3948 = vmatpush1.bf16.msra.mxu0 %v3947_v60  ;;  %4044 = vmatpush1.bf16.msra.mxu1 %v4043_v62  ;;  %v1237_v59 = vld [vmem:[%s6653_s5 + $0x98] sm:$0xff]  ;;  %v3963_v60 = vpack.c.bf16 %v1670_v47, %v1668_v46  ;;  %v4059_v62 = vpack.c.bf16 %v2064_v51, %v2062_v50  ;;  %v1243_v36 = vld [vmem:[%s6653_s5 + $0xc8] sm:$0xff]  ;;  %v1242_v38 = vld [vmem:[%s6653_s5 + $0xc0] sm:$0xff]  ;;  %v4541_v51 = vmov 0.0  }
 0x14d   : > { %3950 = vmatprep.subr.bf16.mxu0 %v3949_v1  ;;  %4046 = vmatprep.subr.bf16.mxu1 %v4045_v2  ;;  %v3965_v1 = vpack.c.bf16 %v1675_v52, %v1673_v58  ;;  %v4061_v2 = vpack.c.bf16 %v2069_v54, %v2067_v53  ;;  %v1680_v39 = vld [vmem:[%s6654_s6 + $0x160] sm:$0xff]  ;;  %v2079_v46 = vld [vmem:[%s6655_s7 + $0x188] sm:$0xff]  ;;  %v1686_v50 = vld [vmem:[%s6654_s6 + $0x190] sm:$0xff]  ;;  %1426 = vst [vmem:[#allocation2] sm:$0xff] %v4541_v51 }
 0x14e   : > { %1178 = vmatmul.mubr.f32.gmra.mrb[36].mxu0 %v1032_v9  ;;  %1373 = vmatmul.mubr.f32.gmra.mrb[36].mxu1 %v1228_v10  ;;  %v1040_v9 = vld [vmem:[%s6652_s4 + $0x90] sm:$0xff]  ;;  %1427 = vst [vmem:[#allocation2 + $0x8] sm:$0xff] %v4541_v51  ;;  %1428 = vst [vmem:[#allocation2 + $0x10] sm:$0xff] %v4541_v51  ;;  %v2078_v53 = vld [vmem:[%s6655_s7 + $0x180] sm:$0xff] }
 0x14f   : > { %3401 = vmatprep.mubr.msk.f32.mxu0 %vm1048_vm2, %v1035_v11  ;;  %3414 = vmatprep.mubr.msk.f32.mxu1 %vm1048_vm2, %v1231_v12  ;;  %v1236_v10 = vld [vmem:[%s6653_s5 + $0x90] sm:$0xff]  ;;  %v1043_v11 = vld [vmem:[%s6652_s4 + $0xa8] sm:$0xff]  ;;  %1429 = vst [vmem:[#allocation2 + $0x18] sm:$0xff] %v4541_v51  ;;  %1430 = vst [vmem:[#allocation2 + $0x20] sm:$0xff] %v4541_v51 }
 0x150   : > { %3952 = vmatpush1.bf16.msra.mxu0 %v3951_v13  ;;  %4048 = vmatpush1.bf16.msra.mxu1 %v4047_v14  ;;  %v1239_v12 = vld [vmem:[%s6653_s5 + $0xa8] sm:$0xff]  ;;  %v3967_v13 = vpack.c.bf16 %v1674_v0, %v1672_v63  ;;  %v4063_v14 = vpack.c.bf16 %v2068_v4, %v2066_v3  ;;  %1431 = vst [vmem:[#allocation2 + $0x28] sm:$0xff] %v4541_v51  ;;  %1432 = vst [vmem:[#allocation2 + $0x30] sm:$0xff] %v4541_v51  ;;  %v2080_v54 = vld [vmem:[%s6655_s7 + $0x190] sm:$0xff] }
 0x151   : > { %3954 = vmatprep.subr.bf16.mxu0 %v3953_v17  ;;  %4050 = vmatprep.subr.bf16.mxu1 %v4049_v18  ;;  %v3969_v17 = vpack.c.bf16 %v1679_v6, %v1677_v5  ;;  %v4065_v18 = vpack.c.bf16 %v2073_v8, %v2071_v7  ;;  %1433 = vst [vmem:[#allocation2 + $0x38] sm:$0xff] %v4541_v51  ;;  %1434 = vst [vmem:[#allocation2 + $0x40] sm:$0xff] %v4541_v51  ;;  %v1688_v63 = vld [vmem:[%s6654_s6 + $0x1a0] sm:$0xff]  ;;  %v1690_v0 = vld [vmem:[%s6654_s6 + $0x1b0] sm:$0xff] }
 0x152   : > { %1183 = vmatmul.mubr.f32.gmra.mrb[38].mxu0 %v1034_v25  ;;  %1378 = vmatmul.mubr.f32.gmra.mrb[38].mxu1 %v1230_v26  ;;  %v1042_v25 = vld [vmem:[%s6652_s4 + $0xa0] sm:$0xff]  ;;  %1435 = vst [vmem:[#allocation2 + $0x48] sm:$0xff] %v4541_v51  ;;  %1436 = vst [vmem:[#allocation2 + $0x50] sm:$0xff] %v4541_v51  ;;  %v2084_v4 = vld [vmem:[%s6655_s7 + $0x1b0] sm:$0xff] }
 0x153   : > { %3402 = vmatprep.mubr.msk.f32.mxu0 %vm1048_vm2, %v1037_v27  ;;  %3415 = vmatprep.mubr.msk.f32.mxu1 %vm1048_vm2, %v1233_v28  ;;  %v1238_v26 = vld [vmem:[%s6653_s5 + $0xa0] sm:$0xff]  ;;  %v1045_v27 = vld [vmem:[%s6652_s4 + $0xb8] sm:$0xff]  ;;  %1437 = vst [vmem:[#allocation2 + $0x58] sm:$0xff] %v4541_v51  ;;  %1438 = vst [vmem:[#allocation2 + $0x60] sm:$0xff] %v4541_v51 }
 0x154   : > { %3956 = vmatpush1.bf16.msra.mxu0 %v3955_v29  ;;  %4052 = vmatpush1.bf16.msra.mxu1 %v4051_v30  ;;  %v1241_v28 = vld [vmem:[%s6653_s5 + $0xb8] sm:$0xff]  ;;  %v3971_v29 = vpack.c.bf16 %v1678_v16, %v1676_v15  ;;  %v4067_v30 = vpack.c.bf16 %v2072_v20, %v2070_v19  ;;  %1439 = vst [vmem:[#allocation2 + $0x68] sm:$0xff] %v4541_v51  ;;  %1440 = vst [vmem:[#allocation2 + $0x70] sm:$0xff] %v4541_v51  ;;  %v2082_v3 = vld [vmem:[%s6655_s7 + $0x1a0] sm:$0xff] }
 0x155   : > { %3958 = vmatprep.subr.bf16.mxu0 %v3957_v33  ;;  %4054 = vmatprep.subr.bf16.mxu1 %v4053_v34  ;;  %v1044_v33 = vld [vmem:[%s6652_s4 + $0xb0] sm:$0xff]  ;;  %1441 = vst [vmem:[#allocation2 + $0x78] sm:$0xff] %v4541_v51  ;;  %1442 = vst [vmem:[#allocation2 + $0x80] sm:$0xff] %v4541_v51  ;;  %v4079_v5 = vpack.c.bf16 %v2084_v4, %v2082_v3  ;;  %v1693_v6 = vld [vmem:[%s6654_s6 + $0x1c8] sm:$0xff] }
 0x156   : > { %1188 = vmatmul.mubr.f32.gmra.mrb[40].mxu0 %v1036_v41  ;;  %1383 = vmatmul.mubr.f32.gmra.mrb[40].mxu1 %v1232_v61  ;;  %v1240_v34 = vld [vmem:[%s6653_s5 + $0xb0] sm:$0xff]  ;;  %v2074_v41 = vld [vmem:[%s6655_s7 + $0x160] sm:$0xff]  ;;  %v3975_v61 = vpack.c.bf16 %v1682_v40, %v1680_v39  ;;  %1443 = vst [vmem:[#allocation2 + $0x88] sm:$0xff] %v4541_v51  ;;  %1444 = vst [vmem:[#allocation2 + $0x90] sm:$0xff] %v4541_v51 }
 0x157   : > { %3403 = vmatprep.mubr.msk.f32.mxu0 %vm1048_vm2, %v1039_v42  ;;  %3416 = vmatprep.mubr.msk.f32.mxu1 %vm1048_vm2, %v1235_v43  ;;  %v2076_v42 = vld [vmem:[%s6655_s7 + $0x170] sm:$0xff]  ;;  %1445 = vst [vmem:[#allocation2 + $0x98] sm:$0xff] %v4541_v51  ;;  %1446 = vst [vmem:[#allocation2 + $0xa0] sm:$0xff] %v4541_v51  ;;  %v1695_v7 = vld [vmem:[%s6654_s6 + $0x1d8] sm:$0xff] }
 0x158   : > { %3960 = vmatpush1.bf16.msra.mxu0 %v3959_v44  ;;  %4056 = vmatpush1.bf16.msra.mxu1 %v4055_v45  ;;  %v4071_v43 = vpack.c.bf16 %v2076_v42, %v2074_v41  ;;  %v1685_v44 = vld [vmem:[%s6654_s6 + $0x188] sm:$0xff]  ;;  %v1687_v45 = vld [vmem:[%s6654_s6 + $0x198] sm:$0xff]  ;;  %1447 = vst [vmem:[#allocation2 + $0xa8] sm:$0xff] %v4541_v51  ;;  %1448 = vst [vmem:[#allocation2 + $0xb0] sm:$0xff] %v4541_v51 }
 0x159   : > { %3962 = vmatprep.subr.bf16.mxu0 %v3961_v48  ;;  %4058 = vmatprep.subr.bf16.mxu1 %v4057_v49  ;;  %v3977_v47 = vpack.c.bf16 %v1687_v45, %v1685_v44  ;;  %v2081_v48 = vld [vmem:[%s6655_s7 + $0x198] sm:$0xff]  ;;  %v1684_v49 = vld [vmem:[%s6654_s6 + $0x180] sm:$0xff]  ;;  %1449 = vst [vmem:[#allocation2 + $0xb8] sm:$0xff] %v4541_v51  ;;  %1450 = vst [vmem:[#allocation2 + $0xc0] sm:$0xff] %v4541_v51 }
 0x15a   : > { %1193 = vmatmul.mubr.f32.gmra.mrb[42].mxu0 %v1038_v55  ;;  %1388 = vmatmul.mubr.f32.gmra.mrb[42].mxu1 %v1234_v56  ;;  %1451 = vst [vmem:[#allocation2 + $0xc8] sm:$0xff] %v4541_v51  ;;  %1452 = vst [vmem:[#allocation2 + $0xd0] sm:$0xff] %v4541_v51  ;;  %v4073_v58 = vpack.c.bf16 %v2081_v48, %v2079_v46  ;;  %v3979_v52 = vpack.c.bf16 %v1686_v50, %v1684_v49  ;;  %v1689_v56 = vld [vmem:[%s6654_s6 + $0x1a8] sm:$0xff]  ;;  %v2086_v15 = vld [vmem:[%s6655_s7 + $0x1c0] sm:$0xff] }
 0x15b   : > { %3404 = vmatprep.mubr.msk.f32.mxu0 %vm1048_vm2, %v1041_v57  ;;  %3417 = vmatprep.mubr.msk.f32.mxu1 %vm1048_vm2, %v1237_v59  ;;  %1453 = vst [vmem:[#allocation2 + $0xd8] sm:$0xff] %v4541_v51  ;;  %1454 = vst [vmem:[#allocation2 + $0xe0] sm:$0xff] %v4541_v51  ;;  %v4075_v55 = vpack.c.bf16 %v2080_v54, %v2078_v53  ;;  %v1691_v57 = vld [vmem:[%s6654_s6 + $0x1b8] sm:$0xff]  ;;  %v2083_v59 = vld [vmem:[%s6655_s7 + $0x1a8] sm:$0xff] }
 0x15c   : > { %3964 = vmatpush1.bf16.msra.mxu0 %v3963_v60  ;;  %4060 = vmatpush1.bf16.msra.mxu1 %v4059_v62  ;;  %1455 = vst [vmem:[#allocation2 + $0xe8] sm:$0xff] %v4541_v51  ;;  %1456 = vst [vmem:[#allocation2 + $0xf0] sm:$0xff] %v4541_v51  ;;  %v3981_v60 = vpack.c.bf16 %v1691_v57, %v1689_v56  ;;  %v2085_v62 = vld [vmem:[%s6655_s7 + $0x1b8] sm:$0xff]  ;;  %v2087_v8 = vld [vmem:[%s6655_s7 + $0x1c8] sm:$0xff] }
 0x15d   : > { %3966 = vmatprep.subr.bf16.mxu0 %v3965_v1  ;;  %4062 = vmatprep.subr.bf16.mxu1 %v4061_v2  ;;  %1457 = vst [vmem:[#allocation2 + $0xf8] sm:$0xff] %v4541_v51  ;;  %1458 = vst [vmem:[#allocation2 + $0x100] sm:$0xff] %v4541_v51  ;;  %v4077_v1 = vpack.c.bf16 %v2085_v62, %v2083_v59  ;;  %v3983_v2 = vpack.c.bf16 %v1690_v0, %v1688_v63  ;;  %v2088_v16 = vld [vmem:[%s6655_s7 + $0x1d0] sm:$0xff]  ;;  %v1699_v19 = vld [vmem:[%s6654_s6 + $0x1f8] sm:$0xff] }
 0x15e   : > { %1198 = vmatmul.mubr.f32.gmra.mrb[44].mxu0 %v1040_v9  ;;  %1393 = vmatmul.mubr.f32.gmra.mrb[44].mxu1 %v1236_v10  ;;  %1459 = vst [vmem:[#allocation2 + $0x108] sm:$0xff] %v4541_v51  ;;  %1460 = vst [vmem:[#allocation2 + $0x110] sm:$0xff] %v4541_v51  ;;  %v3985_v9 = vpack.c.bf16 %v1695_v7, %v1693_v6  ;;  %v2089_v10 = vld [vmem:[%s6655_s7 + $0x1d8] sm:$0xff]  ;;  %v2091_v20 = vld [vmem:[%s6655_s7 + $0x1e8] sm:$0xff] }
 0x15f   : > { %3405 = vmatprep.mubr.msk.f32.mxu0 %vm1048_vm2, %v1043_v11  ;;  %3418 = vmatprep.mubr.msk.f32.mxu1 %vm1048_vm2, %v1239_v12  ;;  %1461 = vst [vmem:[#allocation2 + $0x118] sm:$0xff] %v4541_v51  ;;  %1462 = vst [vmem:[#allocation2 + $0x120] sm:$0x3f] %v4541_v51  ;;  %v1692_v11 = vld [vmem:[%s6654_s6 + $0x1c0] sm:$0xff]  ;;  %v1694_v12 = vld [vmem:[%s6654_s6 + $0x1d0] sm:$0xff] }
 0x160   : > { %3968 = vmatpush1.bf16.msra.mxu0 %v3967_v13  ;;  %4064 = vmatpush1.bf16.msra.mxu1 %v4063_v14  ;;  %1463 = vst [vmem:[#allocation2 + $0x128] sm:$0x3f] %v4541_v51  ;;  %1464 = vst [vmem:[#allocation2 + $0x130] sm:$0x3f] %v4541_v51  ;;  %v4081_v13 = vpack.c.bf16 %v2089_v10, %v2087_v8  ;;  %v3987_v14 = vpack.c.bf16 %v1694_v12, %v1692_v11  ;;  %v2093_v22 = vld [vmem:[%s6655_s7 + $0x1f8] sm:$0xff]  ;;  %v1696_v23 = vld [vmem:[%s6654_s6 + $0x1e0] sm:$0xff] }
 0x161   : > { %3970 = vmatprep.subr.bf16.mxu0 %v3969_v17  ;;  %4066 = vmatprep.subr.bf16.mxu1 %v4065_v18  ;;  %2712 = vst [vmem:[#allocation3 + $0x8] sm:$0xff] %v4541_v51  ;;  %2714 = vst [vmem:[#allocation3 + $0x18] sm:$0xff] %v4541_v51  ;;  %v4083_v17 = vpack.c.bf16 %v2088_v16, %v2086_v15  ;;  %v1697_v18 = vld [vmem:[%s6654_s6 + $0x1e8] sm:$0xff]  ;;  %v1698_v24 = vld [vmem:[%s6654_s6 + $0x1f0] sm:$0xff] }
 0x162   : > { %1203 = vmatmul.mubr.f32.gmra.mrb[46].mxu0 %v1042_v25  ;;  %1398 = vmatmul.mubr.f32.gmra.mrb[46].mxu1 %v1238_v26  ;;  %2716 = vst [vmem:[#allocation3 + $0x28] sm:$0xff] %v4541_v51  ;;  %2718 = vst [vmem:[#allocation3 + $0x38] sm:$0xff] %v4541_v51  ;;  %v3989_v21 = vpack.c.bf16 %v1699_v19, %v1697_v18  ;;  %v4085_v25 = vpack.c.bf16 %v2093_v22, %v2091_v20  ;;  %v1700_v62 = vld [vmem:[%s6654_s6 + $0x200] sm:$0xff]  ;;  %v1702_v63 = vld [vmem:[%s6654_s6 + $0x210] sm:$0xff] }
 0x163   : > { %3406 = vmatprep.mubr.msk.f32.mxu0 %vm1048_vm2, %v1045_v27  ;;  %3419 = vmatprep.mubr.msk.f32.mxu1 %vm1048_vm2, %v1241_v28  ;;  %2720 = vst [vmem:[#allocation3 + $0x48] sm:$0xff] %v4541_v51  ;;  %v3991_v26 = vpack.c.bf16 %v1698_v24, %v1696_v23  ;;  %v2090_v27 = vld [vmem:[%s6655_s7 + $0x1e0] sm:$0xff]  ;;  %v2092_v28 = vld [vmem:[%s6655_s7 + $0x1f0] sm:$0xff]  ;;  %v1705_v7 = vld [vmem:[%s6654_s6 + $0x228] sm:$0xff]  ;;  %v3995_v18 = vpack.c.bf16 %v1702_v63, %v1700_v62 }
 0x164   : > { %3972 = vmatpush1.bf16.msra.mxu0 %v3971_v29  ;;  %4068 = vmatpush1.bf16.msra.mxu1 %v4067_v30  ;;  %v4087_v29 = vpack.c.bf16 %v2092_v28, %v2090_v27  ;;  %v1701_v30 = vld [vmem:[%s6654_s6 + $0x208] sm:$0xff]  ;;  %v2094_v0 = vld [vmem:[%s6655_s7 + $0x200] sm:$0xff]  ;;  %v2096_v6 = vld [vmem:[%s6655_s7 + $0x210] sm:$0xff] }
 0x165   : > { %3974 = vmatprep.subr.bf16.mxu0 %v3973_v31  ;;  %4070 = vmatprep.subr.bf16.mxu1 %v4069_v32  ;;  %v1703_v31 = vld [vmem:[%s6654_s6 + $0x218] sm:$0xff]  ;;  %v2095_v32 = vld [vmem:[%s6655_s7 + $0x208] sm:$0xff]  ;;  %v5566_v15 = vld [vmem:[%s6655_s7 + $0x220] sm:$0xff]  ;;  %v4091_v19 = vpack.c.bf16 %v2096_v6, %v2094_v0 }
 0x166   : > { %1208 = vmatmul.mubr.f32.gmra.mrb[48].mxu0 %v1044_v33  ;;  %1403 = vmatmul.mubr.f32.gmra.mrb[48].mxu1 %v1240_v34  ;;  %v3993_v33 = vpack.c.bf16 %v1703_v31, %v1701_v30  ;;  %v2097_v34 = vld [vmem:[%s6655_s7 + $0x218] sm:$0xff]  ;;  %v5576_v22 = vld [vmem:[%s6654_s6 + $0x248] sm:$0xff]  ;;  %v5671_v62 = vld [vmem:[%s6654_s6 + $0x270] sm:$0xff] }
 0x167   : > { %3407 = vmatprep.mubr.msk.f32.mxu0 %vm1048_vm2, %v1047_v35  ;;  %3420 = vmatprep.mubr.msk.f32.mxu1 %vm1048_vm2, %v1243_v36  ;;  %v4089_v35 = vpack.c.bf16 %v2097_v34, %v2095_v32  ;;  %v1707_v8 = vld [vmem:[%s6654_s6 + $0x238] sm:$0xff]  ;;  %v5590_v31 = vld [vmem:[%s6655_s7 + $0x248] sm:$0xff]  ;;  %v5676_v63 = vld [vmem:[%s6655_s7 + $0x260] sm:$0xff] }
 0x168   : > { %3976 = vmatpush1.bf16.msra.mxu0 %v3975_v61  ;;  %4072 = vmatpush1.bf16.msra.mxu1 %v4071_v43  ;;  %v2101_v10 = vld [vmem:[%s6655_s7 + $0x238] sm:$0xff]  ;;  %v3997_v20 = vpack.c.bf16 %v1707_v8, %v1705_v7  ;;  %v5692_v6 = vld [vmem:[%s6654_s6 + $0x288] sm:$0xff] }
 0x169   : > { %3978 = vmatprep.subr.bf16.mxu0 %v3977_v47  ;;  %4074 = vmatprep.subr.bf16.mxu1 %v4073_v58  ;;  %v5581_v23 = vld [vmem:[%s6654_s6 + $0x258] sm:$0xff] }
 0x16a   : > { %1213 = vmatmul.mubr.f32.gmra.mrb[50].mxu0 %v1046_v37  ;;  %1408 = vmatmul.mubr.f32.gmra.mrb[50].mxu1 %v1242_v38  ;;  %v5595_v32 = vld [vmem:[%s6655_s7 + $0x258] sm:$0xff] }
 0x16b   : > { %v5697_v7 = vld [vmem:[%s6654_s6 + $0x298] sm:$0xff] }
 0x16c   : > { %3980 = vmatpush1.bf16.msra.mxu0 %v3979_v52  ;;  %4076 = vmatpush1.bf16.msra.mxu1 %v4075_v55 }
 0x16d   : > { %3982 = vmatprep.subr.bf16.mxu0 %v3981_v60  ;;  %4078 = vmatprep.subr.bf16.mxu1 %v4077_v1 }
 0x170   : > { %3984 = vmatpush1.bf16.msra.mxu0 %v3983_v2  ;;  %4080 = vmatpush1.bf16.msra.mxu1 %v4079_v5 }
 0x171   : > { %3986 = vmatprep.subr.bf16.mxu0 %v3985_v9  ;;  %4082 = vmatprep.subr.bf16.mxu1 %v4081_v13  ;;  %v2099_v9 = vld [vmem:[%s6655_s7 + $0x228] sm:$0xff]  ;;  %v5556_v13 = vld [vmem:[%s6654_s6 + $0x220] sm:$0xff] }
 0x172   : > { %v4093_v30 = vpack.c.bf16 %v2101_v10, %v2099_v9 }
 0x174   : > { %3988 = vmatpush1.bf16.msra.mxu0 %v3987_v14  ;;  %4084 = vmatpush1.bf16.msra.mxu1 %v4083_v17  ;;  %v5561_v14 = vld [vmem:[%s6654_s6 + $0x230] sm:$0xff] }
 0x175   : > { %3990 = vmatprep.subr.bf16.mxu0 %v3989_v21  ;;  %4086 = vmatprep.subr.bf16.mxu1 %v4085_v25  ;;  %v5571_v21 = vld [vmem:[%s6655_s7 + $0x230] sm:$0xff] }
 0x178   : > { %3992 = vmatpush1.bf16.msra.mxu0 %v3991_v26  ;;  %4088 = vmatpush1.bf16.msra.mxu1 %v4087_v29 }
 0x179   : > { %3994 = vmatprep.subr.bf16.mxu0 %v3993_v33  ;;  %4090 = vmatprep.subr.bf16.mxu1 %v4089_v35 }
 0x20d   : > { %v1154_v36 = vpop.f32.mrb[26].mxu0  ;;  %v1349_v37 = vpop.f32.mrb[26].mxu1 }
 0x20e   : > { %v1413_v38 = vmax.f32 %v1154_v36, %v1349_v37  ;;  %v1156_v39 = vpop.f32.mrb[27].mxu0  ;;  %v1351_v40 = vpop.f32.mrb[27].mxu1  ;;  %v3999_v36 = vpack.c.bf16 %v5561_v14, %v5556_v13  ;;  %v5608_v37 = vld [vmem:[%s6654_s6 + $0x240] sm:$0xff]  ;;  %v5706_v14 = vld [vmem:[%s6655_s7 + $0x288] sm:$0xff] }
 0x20f   : > { %v5618_v39 = vld [vmem:[%s6655_s7 + $0x240] sm:$0xff] }
 0x210   : > { %1466 = vst.msk [vmem:[#allocation2] sm:$0xff] %vm1465_vm3, %v1413_v38  ;;  %v1494_v45 = vrot.slane %v1413_v38, 1  ;;  %v1546_v46 = vrot.slane %v1413_v38, 2  ;;  %v5613_v38 = vld [vmem:[%s6654_s6 + $0x250] sm:$0xff] }
 0x211   : > { %v1159_v41 = vpop.f32.mrb[28].mxu0  ;;  %v1354_v61 = vpop.f32.mrb[28].mxu1 }
 0x212   : > { %v1414_v42 = vmax.f32 %v1159_v41, %v1354_v61  ;;  %v1161_v43 = vpop.f32.mrb[29].mxu0  ;;  %v1356_v44 = vpop.f32.mrb[29].mxu1  ;;  %v4095_v61 = vpack.c.bf16 %v5571_v21, %v5566_v15  ;;  %v5711_v15 = vld [vmem:[%s6655_s7 + $0x298] sm:$0xff]  ;;  %v5729_v21 = vld [vmem:[%s6654_s6 + $0x290] sm:$0xff] }
 0x213   : > { %v4097_v43 = vpack.c.bf16 %v5595_v32, %v5590_v31  ;;  %v5629_v44 = vld [vmem:[%s6655_s7 + $0x250] sm:$0xff] }
 0x214   : > { %1467 = vst.msk [vmem:[#allocation2 + $0x18] sm:$0xff] %vm1465_vm3, %v1414_v42  ;;  %v1495_v47 = vrot.slane %v1414_v42, 1  ;;  %v1547_v48 = vrot.slane %v1414_v42, 2  ;;  %v4001_v42 = vpack.c.bf16 %v5581_v23, %v5576_v22  ;;  %v5734_v22 = vld [vmem:[%s6655_s7 + $0x280] sm:$0xff] }
 0x215   : > { %v1164_v49 = vpop.f32.mrb[30].mxu0  ;;  %v1359_v50 = vpop.f32.mrb[30].mxu1 }
 0x216   : > { %v1496_v58 = vsel %vm1493_vm4, %v1494_v45, %v1495_v47  ;;  %v1548_v52 = vsel %vm1545_vm5, %v1546_v46, %v1547_v48  ;;  %v1415_v53 = vmax.f32 %v1164_v49, %v1359_v50  ;;  %v1166_v54 = vpop.f32.mrb[31].mxu0  ;;  %v1361_v55 = vpop.f32.mrb[31].mxu1  ;;  %v5634_v45 = vld [vmem:[%s6654_s6 + $0x268] sm:$0xff]  ;;  %v5639_v46 = vld [vmem:[%s6654_s6 + $0x278] sm:$0xff] }
 0x217   : > { %1532 = vst.msk [vmem:[#allocation2 + $0x8] sm:$0xff] %vm1465_vm3, %v1496_v58  ;;  %1584 = vst.msk [vmem:[#allocation2 + $0x10] sm:$0xff] %vm1465_vm3, %v1548_v52  ;;  %v1597_v33 = vld [vmem:[#allocation2] sm:$0xff]  ;;  %v5653_v54 = vld [vmem:[%s6655_s7 + $0x278] sm:$0xff] }
 0x218   : > { %1468 = vst.msk [vmem:[#allocation2 + $0x30] sm:$0xff] %vm1465_vm3, %v1415_v53  ;;  %v1497_v56 = vrot.slane %v1415_v53, 1  ;;  %v1549_v57 = vrot.slane %v1415_v53, 2  ;;  %v5648_v53 = vld [vmem:[%s6655_s7 + $0x268] sm:$0xff] }
 0x219   : > { %v1169_v59 = vpop.f32.mrb[32].mxu0  ;;  %v1364_v60 = vpop.f32.mrb[32].mxu1 }
 0x21a   : > { %v1498_v1 = vsel %vm1493_vm4, %v1495_v47, %v1497_v56  ;;  %v1550_v2 = vsel %vm1545_vm5, %v1547_v48, %v1549_v57  ;;  %v1416_v3 = vmax.f32 %v1169_v59, %v1364_v60  ;;  %v1171_v4 = vpop.f32.mrb[33].mxu0  ;;  %v1366_v5 = vpop.f32.mrb[33].mxu1  ;;  %v4003_v59 = vpack.c.bf16 %v5613_v38, %v5608_v37  ;;  %v5666_v60 = vld [vmem:[%s6654_s6 + $0x260] sm:$0xff]  ;;  %v5764_v37 = vld [vmem:[%s6655_s7 + $0x2a8] sm:$0xff]  ;;  %v5769_v38 = vld [vmem:[%s6655_s7 + $0x2b8] sm:$0xff] }
 0x21b   : > { %1533 = vst.msk [vmem:[#allocation2 + $0x20] sm:$0xff] %vm1465_vm3, %v1498_v1  ;;  %1585 = vst.msk [vmem:[#allocation2 + $0x28] sm:$0xff] %vm1465_vm3, %v1550_v2  ;;  %v1600_v55 = vld [vmem:[#allocation2 + $0x18] sm:$0xff]  ;;  %v4099_v2 = vpack.c.bf16 %v5629_v44, %v5618_v39  ;;  %v4101_v4 = vpack.c.bf16 %v5653_v54, %v5648_v53  ;;  %v5687_v5 = vld [vmem:[%s6655_s7 + $0x270] sm:$0xff] }
 0x21c   : > { %1469 = vst.msk [vmem:[#allocation2 + $0x48] sm:$0xff] %vm1465_vm3, %v1416_v3  ;;  %v1499_v11 = vrot.slane %v1416_v3, 1  ;;  %v1551_v12 = vrot.slane %v1416_v3, 2  ;;  %v4005_v3 = vpack.c.bf16 %v5639_v46, %v5634_v45  ;;  %v5792_v44 = vld [vmem:[%s6655_s7 + $0x2a0] sm:$0xff] }
 0x21d   : > { %v1174_v16 = vpop.f32.mrb[34].mxu0  ;;  %v1369_v17 = vpop.f32.mrb[34].mxu1 }
 0x21e   : > { %v1500_v24 = vsel %vm1493_vm4, %v1497_v56, %v1499_v11  ;;  %v1552_v25 = vsel %vm1545_vm5, %v1549_v57, %v1551_v12  ;;  %v5585_v26 = vmax.f32 %v1174_v16, %v1369_v17  ;;  %v1176_v27 = vpop.f32.mrb[35].mxu0  ;;  %v1371_v28 = vpop.f32.mrb[35].mxu1  ;;  %v1598_v29 = vld [vmem:[#allocation2 + $0x8] sm:$0xff] }
 0x21f   : > { %1534 = vst.msk [vmem:[#allocation2 + $0x38] sm:$0xff] %vm1465_vm3, %v1500_v24  ;;  %1586 = vst.msk [vmem:[#allocation2 + $0x40] sm:$0xff] %vm1465_vm3, %v1552_v25  ;;  %1808 = vmatprep.mubr.f32.mxu0 %v1598_v29  ;;  %2190 = vmatprep.mubr.f32.mxu1 %v1598_v29  ;;  %v1603_v16 = vld [vmem:[#allocation2 + $0x30] sm:$0xff]  ;;  %v4103_v25 = vpack.c.bf16 %v5687_v5, %v5676_v63  ;;  %v4105_v27 = vpack.c.bf16 %v5711_v15, %v5706_v14  ;;  %v5750_v29 = vld [vmem:[%s6654_s6 + $0x2a8] sm:$0xff] }
 0x220   : > { %1470 = vst.msk [vmem:[#allocation2 + $0x60] sm:$0xff] %vm1465_vm3, %v5585_v26  ;;  %v1501_v34 = vrot.slane %v5585_v26, 1  ;;  %v1553_v35 = vrot.slane %v5585_v26, 2  ;;  %1809 = vmatmul.mubr.f32.vlgmr.msra.gmra.mrb[52].mxu0 %v1597_v33  ;;  %2191 = vmatmul.mubr.f32.vlgmr.msra.gmra.mrb[52].mxu1 %v1597_v33  ;;  %v4009_v26 = vpack.c.bf16 %v5697_v7, %v5692_v6  ;;  %v5745_v28 = vld [vmem:[%s6655_s7 + $0x290] sm:$0xff]  ;;  %v5846_v5 = vld [vmem:[%s6655_s7 + $0x2c0] sm:$0xff] }
 0x221   : > { %v1179_v40 = vpop.f32.mrb[36].mxu0  ;;  %v1374_v41 = vpop.f32.mrb[36].mxu1  ;;  %3996 = vmatpush1.bf16.msra.mxu0 %v3995_v18  ;;  %4092 = vmatpush1.bf16.msra.mxu1 %v4091_v19  ;;  %v4007_v19 = vpack.c.bf16 %v5671_v62, %v5666_v60  ;;  %v5820_v60 = vld [vmem:[%s6655_s7 + $0x2c8] sm:$0xff]  ;;  %v2121_v62 = vld [vmem:[%s6655_s7 + $0x2d8] sm:$0xff] }
 0x222   : > { %v1502_v47 = vsel %vm1493_vm4, %v1499_v11, %v1501_v34  ;;  %v1554_v48 = vsel %vm1545_vm5, %v1551_v12, %v1553_v35  ;;  %v5643_v49 = vmax.f32 %v1179_v40, %v1374_v41  ;;  %v1181_v50 = vpop.f32.mrb[37].mxu0  ;;  %v1376_v58 = vpop.f32.mrb[37].mxu1  ;;  %v1601_v52 = vld [vmem:[#allocation2 + $0x20] sm:$0xff]  ;;  %3998 = vmatprep.subr.bf16.mxu0 %v3997_v20  ;;  %4094 = vmatprep.subr.bf16.mxu1 %v4093_v30  ;;  %v5755_v30 = vld [vmem:[%s6654_s6 + $0x2b8] sm:$0xff] }
 0x223   : > { %1535 = vst.msk [vmem:[#allocation2 + $0x50] sm:$0xff] %vm1465_vm3, %v1502_v47  ;;  %1587 = vst.msk [vmem:[#allocation2 + $0x58] sm:$0xff] %vm1465_vm3, %v1554_v48  ;;  %1814 = vmatprep.mubr.f32.mxu0 %v1601_v52  ;;  %2196 = vmatprep.mubr.f32.mxu1 %v1601_v52  ;;  %v5724_v20 = vld [vmem:[%s6654_s6 + $0x280] sm:$0xff]  ;;  %v1606_v39 = vld [vmem:[#allocation2 + $0x48] sm:$0xff]  ;;  %v4107_v47 = vpack.c.bf16 %v5745_v28, %v5734_v22  ;;  %v4013_v48 = vpack.c.bf16 %v5755_v30, %v5750_v29 }
 0x224   : > { %1471 = vst.msk [vmem:[#allocation2 + $0x78] sm:$0xff] %vm1465_vm3, %v5643_v49  ;;  %v1503_v56 = vrot.slane %v5643_v49, 1  ;;  %v1555_v57 = vrot.slane %v5643_v49, 2  ;;  %1815 = vmatmul.mubr.f32.gmra.mrb[54].mxu0 %v1600_v55  ;;  %2197 = vmatmul.mubr.f32.gmra.mrb[54].mxu1 %v1600_v55  ;;  %v4109_v49 = vpack.c.bf16 %v5769_v38, %v5764_v37  ;;  %v2116_v50 = vld [vmem:[%s6655_s7 + $0x2b0] sm:$0xff]  ;;  %v5806_v58 = vld [vmem:[%s6654_s6 + $0x2c8] sm:$0xff]  ;;  %v5811_v52 = vld [vmem:[%s6654_s6 + $0x2d8] sm:$0xff] }
 0x225   : > { %v1184_v0 = vpop.f32.mrb[38].mxu0  ;;  %v1379_v1 = vpop.f32.mrb[38].mxu1  ;;  %4000 = vmatpush1.bf16.msra.mxu0 %v3999_v36  ;;  %4096 = vmatpush1.bf16.msra.mxu1 %v4095_v61  ;;  %v4011_v61 = vpack.c.bf16 %v5729_v21, %v5724_v20  ;;  %v2123_v20 = vld [vmem:[%s6655_s7 + $0x2e8] sm:$0xff]  ;;  %v2125_v21 = vld [vmem:[%s6655_s7 + $0x2f8] sm:$0xff] }
 0x226   : > { %v1504_v8 = vsel %vm1493_vm4, %v1501_v34, %v1503_v56  ;;  %v1556_v9 = vsel %vm1545_vm5, %v1553_v35, %v1555_v57  ;;  %v5701_v10 = vmax.f32 %v1184_v0, %v1379_v1  ;;  %v1186_v11 = vpop.f32.mrb[39].mxu0  ;;  %v1381_v12 = vpop.f32.mrb[39].mxu1  ;;  %v1604_v13 = vld [vmem:[#allocation2 + $0x38] sm:$0xff]  ;;  %4002 = vmatprep.subr.bf16.mxu0 %v4001_v42  ;;  %4098 = vmatprep.subr.bf16.mxu1 %v4097_v43  ;;  %v5782_v42 = vld [vmem:[%s6654_s6 + $0x2a0] sm:$0xff]  ;;  %v5787_v43 = vld [vmem:[%s6654_s6 + $0x2b0] sm:$0xff] }
 0x227   : > { %1536 = vst.msk [vmem:[#allocation2 + $0x68] sm:$0xff] %vm1465_vm3, %v1504_v8  ;;  %1588 = vst.msk [vmem:[#allocation2 + $0x70] sm:$0xff] %vm1465_vm3, %v1556_v9  ;;  %1820 = vmatprep.mubr.f32.mxu0 %v1604_v13  ;;  %2202 = vmatprep.mubr.f32.mxu1 %v1604_v13  ;;  %v1609_v63 = vld [vmem:[#allocation2 + $0x60] sm:$0xff]  ;;  %v4111_v8 = vpack.c.bf16 %v2116_v50, %v5792_v44  ;;  %v4017_v9 = vpack.c.bf16 %v5811_v52, %v5806_v58  ;;  %v2120_v11 = vld [vmem:[%s6655_s7 + $0x2d0] sm:$0xff] }
 0x228   : > { %1472 = vst.msk [vmem:[#allocation2 + $0x90] sm:$0xff] %vm1465_vm3, %v5701_v10  ;;  %v1505_v17 = vrot.slane %v5701_v10, 1  ;;  %v1557_v18 = vrot.slane %v5701_v10, 2  ;;  %1821 = vmatmul.mubr.f32.gmra.mrb[56].mxu0 %v1603_v16  ;;  %2203 = vmatmul.mubr.f32.gmra.mrb[56].mxu1 %v1603_v16  ;;  %v4113_v10 = vpack.c.bf16 %v2121_v62, %v5820_v60  ;;  %v5858_v12 = vld [vmem:[%s6654_s6 + $0x2e8] sm:$0xff]  ;;  %v5863_v13 = vld [vmem:[%s6654_s6 + $0x2f8] sm:$0xff]  ;;  %v4115_v28 = vpack.c.bf16 %v2120_v11, %v5846_v5 }
 0x229   : > { %v1189_v23 = vpop.f32.mrb[40].mxu0  ;;  %v1384_v24 = vpop.f32.mrb[40].mxu1  ;;  %4004 = vmatpush1.bf16.msra.mxu0 %v4003_v59  ;;  %4100 = vmatpush1.bf16.msra.mxu1 %v4099_v2  ;;  %v4015_v2 = vpack.c.bf16 %v5787_v43, %v5782_v42  ;;  %v4021_v29 = vpack.c.bf16 %v5863_v13, %v5858_v12  ;;  %v4117_v30 = vpack.c.bf16 %v2125_v21, %v2123_v20 }
 0x22a   : > { %v1506_v31 = vsel %vm1493_vm4, %v1503_v56, %v1505_v17  ;;  %v1558_v32 = vsel %vm1545_vm5, %v1555_v57, %v1557_v18  ;;  %v5759_v33 = vmax.f32 %v1189_v23, %v1384_v24  ;;  %v1191_v34 = vpop.f32.mrb[41].mxu0  ;;  %v1386_v35 = vpop.f32.mrb[41].mxu1  ;;  %v1607_v36 = vld [vmem:[#allocation2 + $0x50] sm:$0xff]  ;;  %4006 = vmatprep.subr.bf16.mxu0 %v4005_v3  ;;  %4102 = vmatprep.subr.bf16.mxu1 %v4101_v4  ;;  %v5836_v3 = vld [vmem:[%s6654_s6 + $0x2c0] sm:$0xff] }
 0x22b   : > { %1537 = vst.msk [vmem:[#allocation2 + $0x80] sm:$0xff] %vm1465_vm3, %v1506_v31  ;;  %1589 = vst.msk [vmem:[#allocation2 + $0x88] sm:$0xff] %vm1465_vm3, %v1558_v32  ;;  %1826 = vmatprep.mubr.f32.mxu0 %v1607_v36  ;;  %2208 = vmatprep.mubr.f32.mxu1 %v1607_v36  ;;  %v5841_v4 = vld [vmem:[%s6654_s6 + $0x2d0] sm:$0xff]  ;;  %v1612_v22 = vld [vmem:[#allocation2 + $0x78] sm:$0xff] }
 0x22c   : > { %1473 = vst.msk [vmem:[#allocation2 + $0xa8] sm:$0xff] %vm1465_vm3, %v5759_v33  ;;  %v1507_v40 = vrot.slane %v5759_v33, 1  ;;  %v1559_v41 = vrot.slane %v5759_v33, 2  ;;  %1827 = vmatmul.mubr.f32.gmra.mrb[58].mxu0 %v1606_v39  ;;  %2209 = vmatmul.mubr.f32.gmra.mrb[58].mxu1 %v1606_v39  ;;  %v1728_v31 = vld [vmem:[%s6654_s6 + $0x2e0] sm:$0xff]  ;;  %v1730_v32 = vld [vmem:[%s6654_s6 + $0x2f0] sm:$0xff] }
 0x22d   : > { %v1194_v45 = vpop.f32.mrb[42].mxu0  ;;  %v1389_v46 = vpop.f32.mrb[42].mxu1  ;;  %4008 = vmatpush1.bf16.msra.mxu0 %v4007_v19  ;;  %4104 = vmatpush1.bf16.msra.mxu1 %v4103_v25  ;;  %v4019_v25 = vpack.c.bf16 %v5841_v4, %v5836_v3  ;;  %v2122_v39 = vld [vmem:[%s6655_s7 + $0x2e0] sm:$0xff] }
 0x22e   : > { %v1508_v53 = vsel %vm1493_vm4, %v1505_v17, %v1507_v40  ;;  %v1560_v54 = vsel %vm1545_vm5, %v1557_v18, %v1559_v41  ;;  %v5815_v55 = vmax.f32 %v1194_v45, %v1389_v46  ;;  %v1196_v56 = vpop.f32.mrb[43].mxu0  ;;  %v1391_v57 = vpop.f32.mrb[43].mxu1  ;;  %v1610_v59 = vld [vmem:[#allocation2 + $0x68] sm:$0xff]  ;;  %4010 = vmatprep.subr.bf16.mxu0 %v4009_v26  ;;  %4106 = vmatprep.subr.bf16.mxu1 %v4105_v27 }
 0x22f   : > { %1538 = vst.msk [vmem:[#allocation2 + $0x98] sm:$0xff] %vm1465_vm3, %v1508_v53  ;;  %1590 = vst.msk [vmem:[#allocation2 + $0xa0] sm:$0xff] %vm1465_vm3, %v1560_v54  ;;  %1832 = vmatprep.mubr.f32.mxu0 %v1610_v59  ;;  %2214 = vmatprep.mubr.f32.mxu1 %v1610_v59  ;;  %v4023_v45 = vpack.c.bf16 %v1730_v32, %v1728_v31  ;;  %v2743_v32 = vld [vmem:[%s6659_s11 + $0x8] sm:$0xff] }
 0x230   : > { %1474 = vst.msk [vmem:[#allocation2 + $0xc0] sm:$0xff] %vm1465_vm3, %v5815_v55  ;;  %v1509_v0 = vrot.slane %v5815_v55, 1  ;;  %v1561_v1 = vrot.slane %v5815_v55, 2  ;;  %1833 = vmatmul.mubr.f32.gmra.mrb[60].mxu0 %v1609_v63  ;;  %2215 = vmatmul.mubr.f32.gmra.mrb[60].mxu1 %v1609_v63 }
 0x231   : > { %v1199_v6 = vpop.f32.mrb[44].mxu0  ;;  %v1394_v7 = vpop.f32.mrb[44].mxu1  ;;  %4012 = vmatpush1.bf16.msra.mxu0 %v4011_v61  ;;  %4108 = vmatpush1.bf16.msra.mxu1 %v4107_v47 }
 0x232   : > { %v1510_v14 = vsel %vm1493_vm4, %v1507_v40, %v1509_v0  ;;  %v1562_v15 = vsel %vm1545_vm5, %v1559_v41, %v1561_v1  ;;  %v1422_v16 = vmax.f32 %v1199_v6, %v1394_v7  ;;  %v1201_v17 = vpop.f32.mrb[45].mxu0  ;;  %v1396_v18 = vpop.f32.mrb[45].mxu1  ;;  %v1613_v19 = vld [vmem:[#allocation2 + $0x80] sm:$0xff]  ;;  %4014 = vmatprep.subr.bf16.mxu0 %v4013_v48  ;;  %4110 = vmatprep.subr.bf16.mxu1 %v4109_v49  ;;  %v2124_v40 = vld [vmem:[%s6655_s7 + $0x2f0] sm:$0xff]  ;;  %v1614_v20 = vld [vmem:[#allocation2 + $0x88] sm:$0xff] }
 0x233   : > { %1539 = vst.msk [vmem:[#allocation2 + $0xb0] sm:$0xff] %vm1465_vm3, %v1510_v14  ;;  %1591 = vst.msk [vmem:[#allocation2 + $0xb8] sm:$0xff] %vm1465_vm3, %v1562_v15  ;;  %1838 = vmatprep.mubr.f32.mxu0 %v1613_v19  ;;  %2220 = vmatprep.mubr.f32.mxu1 %v1613_v19  ;;  %v1615_v41 = vld [vmem:[#allocation2 + $0x90] sm:$0xff]  ;;  %v4119_v46 = vpack.c.bf16 %v2124_v40, %v2122_v39  ;;  %v1618_v53 = vld [vmem:[#allocation2 + $0xa8] sm:$0xff]  ;;  %v1734_v39 = vlaneseq }
 0x234   : > { %1475 = vst.msk [vmem:[#allocation2 + $0xd8] sm:$0xff] %vm1465_vm3, %v1422_v16  ;;  %v1511_v23 = vrot.slane %v1422_v16, 1  ;;  %v1563_v24 = vrot.slane %v1422_v16, 2  ;;  %1839 = vmatmul.mubr.f32.gmra.mrb[62].mxu0 %v1612_v22  ;;  %2221 = vmatmul.mubr.f32.gmra.mrb[62].mxu1 %v1612_v22  ;;  %v1599_v15 = vld [vmem:[#allocation2 + $0x10] sm:$0xff]  ;;  %v1602_v16 = vld [vmem:[#allocation2 + $0x28] sm:$0xff]  ;;  %v1605_v17 = vld [vmem:[#allocation2 + $0x40] sm:$0xff] }
 0x235   : > { %v1204_v26 = vpop.f32.mrb[46].mxu0  ;;  %v1399_v27 = vpop.f32.mrb[46].mxu1  ;;  %4016 = vmatpush1.bf16.msra.mxu0 %v4015_v2  ;;  %4112 = vmatpush1.bf16.msra.mxu1 %v4111_v8  ;;  %v1608_v18 = vld [vmem:[#allocation2 + $0x58] sm:$0xff]  ;;  %v1611_v19 = vld [vmem:[#allocation2 + $0x70] sm:$0xff]  ;;  %v1735_v40 = vshrl.u32 %v1734_v39, 7 }
 0x236   : > { %v1512_v33 = vsel %vm1493_vm4, %v1509_v0, %v1511_v23  ;;  %v1564_v34 = vsel %vm1545_vm5, %v1561_v1, %v1563_v24  ;;  %v1423_v35 = vmax.f32 %v1204_v26, %v1399_v27  ;;  %v1206_v36 = vpop.f32.mrb[47].mxu0  ;;  %v1401_v37 = vpop.f32.mrb[47].mxu1  ;;  %v1616_v38 = vld [vmem:[#allocation2 + $0x98] sm:$0xff]  ;;  %4018 = vmatprep.subr.bf16.mxu0 %v4017_v9  ;;  %4114 = vmatprep.subr.bf16.mxu1 %v4113_v10  ;;  %v1617_v21 = vld [vmem:[#allocation2 + $0xa0] sm:$0xff] }
 0x237   : > { %1540 = vst.msk [vmem:[#allocation2 + $0xc8] sm:$0xff] %vm1465_vm3, %v1512_v33  ;;  %1592 = vst.msk [vmem:[#allocation2 + $0xd0] sm:$0xff] %vm1465_vm3, %v1564_v34  ;;  %1844 = vmatprep.mubr.f32.mxu0 %v1616_v38  ;;  %2226 = vmatprep.mubr.f32.mxu1 %v1616_v38  ;;  %v1621_v2 = vld [vmem:[#allocation2 + $0xc0] sm:$0xff]  ;;  %v2761_v33 = vld [vmem:[%s6659_s11 + $0x98] sm:$0xff] }
 0x238   : > { %1476 = vst.msk [vmem:[#allocation2 + $0xf0] sm:$0xff] %vm1465_vm3, %v1423_v35  ;;  %v1513_v61 = vrot.slane %v1423_v35, 1  ;;  %v1565_v42 = vrot.slane %v1423_v35, 2  ;;  %1845 = vmatmul.mubr.f32.gmra.mrb[64].mxu0 %v1615_v41  ;;  %2227 = vmatmul.mubr.f32.gmra.mrb[64].mxu1 %v1615_v41  ;;  %v2744_v36 = vld [vmem:[%s6659_s11 + $0x10] sm:$0xff]  ;;  %v2745_v37 = vld [vmem:[%s6659_s11 + $0x18] sm:$0xff]  ;;  %v1736_v41 = vsub.s32 0, %v1735_v40 }
 0x239   : > { %v1209_v43 = vpop.f32.mrb[48].mxu0  ;;  %v1404_v44 = vpop.f32.mrb[48].mxu1  ;;  %4020 = vmatpush1.bf16.msra.mxu0 %v4019_v25  ;;  %4116 = vmatpush1.bf16.msra.mxu1 %v4115_v28  ;;  %v2758_v28 = vld [vmem:[%s6659_s11 + $0x80] sm:$0xff]  ;;  %v4175_v38 = vpack.c.bf16 %v2745_v37, %v2744_v36 }
 0x23a   : > { %v1514_v47 = vsel %vm1493_vm4, %v1511_v23, %v1513_v61  ;;  %v1566_v48 = vsel %vm1545_vm5, %v1563_v24, %v1565_v42  ;;  %v1424_v49 = vmax.f32 %v1209_v43, %v1404_v44  ;;  %v1211_v50 = vpop.f32.mrb[49].mxu0  ;;  %v1406_v58 = vpop.f32.mrb[49].mxu1  ;;  %v1619_v52 = vld [vmem:[#allocation2 + $0xb0] sm:$0xff]  ;;  %4022 = vmatprep.subr.bf16.mxu0 %v4021_v29  ;;  %4118 = vmatprep.subr.bf16.mxu1 %v4117_v30  ;;  %v1620_v22 = vld [vmem:[#allocation2 + $0xb8] sm:$0xff]  ;;  %v2759_v29 = vld [vmem:[%s6659_s11 + $0x88] sm:$0xff] }
 0x23b   : > { %1541 = vst.msk [vmem:[#allocation2 + $0xe0] sm:$0xff] %vm1465_vm3, %v1514_v47  ;;  %1593 = vst.msk [vmem:[#allocation2 + $0xe8] sm:$0xff] %vm1465_vm3, %v1566_v48  ;;  %1850 = vmatprep.mubr.f32.mxu0 %v1619_v52  ;;  %2232 = vmatprep.mubr.f32.mxu1 %v1619_v52  ;;  %v1624_v8 = vld [vmem:[#allocation2 + $0xd8] sm:$0xff]  ;;  %v2742_v30 = vld [vmem:[%s6659_s11] sm:$0xff]  ;;  %v4169_v31 = vpack.c.bf16 %v2759_v29, %v2758_v28 }
 0x23c   : > { %1477 = vst.msk [vmem:[#allocation2 + $0x108] sm:$0xff] %vm1465_vm3, %v1424_v49  ;;  %v1515_v54 = vrot.slane %v1424_v49, 1  ;;  %v1567_v55 = vrot.slane %v1424_v49, 2  ;;  %1851 = vmatmul.mubr.f32.gmra.mrb[66].mxu0 %v1618_v53  ;;  %2233 = vmatmul.mubr.f32.gmra.mrb[66].mxu1 %v1618_v53  ;;  %v4171_v34 = vpack.c.bf16 %v2743_v32, %v2742_v30 }
 0x23d   : > { %v1214_v56 = vpop.f32.mrb[50].mxu0  ;;  %v1409_v57 = vpop.f32.mrb[50].mxu1  ;;  %4024 = vmatpush1.bf16.msra.mxu0 %v4023_v45  ;;  %4120 = vmatpush1.bf16.msra.mxu1 %v4119_v46 }
 0x23e   : > { %v1516_v59 = vsel %vm1493_vm4, %v1513_v61, %v1515_v54  ;;  %v1568_v60 = vsel %vm1545_vm5, %v1565_v42, %v1567_v55  ;;  %v1425_v62 = vmax.f32 %v1214_v56, %v1409_v57  ;;  %v1216_v63 = vpop.f32.mrb[51].mxu0  ;;  %v1411_v0 = vpop.f32.mrb[51].mxu1  ;;  %v1622_v1 = vld [vmem:[#allocation2 + $0xc8] sm:$0xff]  ;;  %v1623_v23 = vld [vmem:[#allocation2 + $0xd0] sm:$0xff]  ;;  %4170 = vmatprep.subr.bf16.mxu0 %v4169_v31  ;;  %v1732_v61 = vld [vmem:[%s6656_s8] sm:$0x3] }
 0x23f   : > { %1542 = vst.msk [vmem:[#allocation2 + $0xf8] sm:$0xff] %vm1465_vm3, %v1516_v59  ;;  %1594 = vst.msk [vmem:[#allocation2 + $0x100] sm:$0xff] %vm1465_vm3, %v1568_v60  ;;  %1856 = vmatprep.mubr.f32.mxu0 %v1622_v1  ;;  %2238 = vmatprep.mubr.f32.mxu1 %v1622_v1  ;;  %v1627_v10 = vld [vmem:[#allocation2 + $0xf0] sm:$0xff]  ;;  %v1740_v42 = vsub.s32 1, %v1735_v40  ;;  %v5968_v43 = vrot.slane %v1732_v61, %v1736_v41 }
 0x240   : > { %1479 = vst.msk [vmem:[#allocation2 + $0x120] sm:$0x3f] %vm1478_vm6, %v1425_v62  ;;  %v1517_v3 = vrot.slane %v1425_v62, 1  ;;  %v1569_v4 = vrot.slane %v1425_v62, 2  ;;  %1857 = vmatmul.mubr.f32.gmra.mrb[68].mxu0 %v1621_v2  ;;  %2239 = vmatmul.mubr.f32.gmra.mrb[68].mxu1 %v1621_v2 }
 0x241   : > { %v5970_v44 = vrot.slane %v1732_v61, %v1740_v42 }
 0x242   : > { %v1518_v5 = vsel %vm1493_vm4, %v1515_v54, %v1517_v3  ;;  %1544 = vst.msk [vmem:[#allocation2 + $0x128] sm:$0x3f] %vm1478_vm6, %v1517_v3  ;;  %v1570_v6 = vsel %vm1545_vm5, %v1567_v55, %v1569_v4  ;;  %1596 = vst.msk [vmem:[#allocation2 + $0x130] sm:$0x3f] %vm1478_vm6, %v1569_v4  ;;  %v1625_v7 = vld [vmem:[#allocation2 + $0xe0] sm:$0xff]  ;;  %v1626_v24 = vld [vmem:[#allocation2 + $0xe8] sm:$0xff] }
 0x243   : > { %1543 = vst.msk [vmem:[#allocation2 + $0x110] sm:$0xff] %vm1465_vm3, %v1518_v5  ;;  %1595 = vst.msk [vmem:[#allocation2 + $0x118] sm:$0xff] %vm1465_vm3, %v1570_v6  ;;  %1862 = vmatprep.mubr.f32.mxu0 %v1625_v7  ;;  %2244 = vmatprep.mubr.f32.mxu1 %v1625_v7  ;;  %v1630_v12 = vld [vmem:[#allocation2 + $0x108] sm:$0xff] }
 0x244   : > { %1863 = vmatmul.mubr.f32.gmra.mrb[70].mxu0 %v1624_v8  ;;  %2245 = vmatmul.mubr.f32.gmra.mrb[70].mxu1 %v1624_v8 }
 0x246   : > { %v1628_v9 = vld [vmem:[#allocation2 + $0xf8] sm:$0xff]  ;;  %v1629_v25 = vld [vmem:[#allocation2 + $0x100] sm:$0xff] }
 0x247   : > { %1868 = vmatprep.mubr.f32.mxu0 %v1628_v9  ;;  %2250 = vmatprep.mubr.f32.mxu1 %v1628_v9  ;;  %v1633_v14 = vld [vmem:[#allocation2 + $0x120] sm:$0x3f] }
 0x248   : > { %1869 = vmatmul.mubr.f32.gmra.mrb[72].mxu0 %v1627_v10  ;;  %2251 = vmatmul.mubr.f32.gmra.mrb[72].mxu1 %v1627_v10 }
 0x249   : > { %v1634_v13 = vld [vmem:[#allocation2 + $0x128] sm:$0x3f]  ;;  %v1635_v27 = vld [vmem:[#allocation2 + $0x130] sm:$0x3f] }
 0x24a   : > { %v1631_v11 = vld [vmem:[#allocation2 + $0x110] sm:$0xff]  ;;  %v1632_v26 = vld [vmem:[#allocation2 + $0x118] sm:$0xff] }
 0x24b   : > { %1874 = vmatprep.mubr.f32.mxu0 %v1631_v11  ;;  %2256 = vmatprep.mubr.f32.mxu1 %v1631_v11 }
 0x24c   : > { %1875 = vmatmul.mubr.f32.gmra.mrb[74].mxu0 %v1630_v12  ;;  %2257 = vmatmul.mubr.f32.gmra.mrb[74].mxu1 %v1630_v12 }
 0x24d   : > { %1880 = vmatprep.mubr.f32.mxu0 %v1634_v13  ;;  %2262 = vmatprep.mubr.f32.mxu1 %v1634_v13 }
 0x250   : > { %1881 = vmatmul.mubr.f32.gmra.mrb[76].mxu0 %v1633_v14  ;;  %2263 = vmatmul.mubr.f32.gmra.mrb[76].mxu1 %v1633_v14 }
 0x251   : > { %1951 = vmatprep.mubr.f32.mxu0 %v4541_v51  ;;  %2333 = vmatprep.mubr.f32.mxu1 %v4541_v51 }
 0x254   : > { %1952 = vmatmul.mubr.f32.vlgmr.msra.gmra.mrb[52].mxu0 %v1599_v15  ;;  %2334 = vmatmul.mubr.f32.vlgmr.msra.gmra.mrb[52].mxu1 %v1599_v15 }
 0x255   : > { %1957 = vmatprep.mubr.f32.mxu0 %v4541_v51  ;;  %2339 = vmatprep.mubr.f32.mxu1 %v4541_v51 }
 0x256   : > { %4172 = vmatpush3.bf16.msra.mxu0 %v4171_v34 }
 0x258   : > { %1958 = vmatmul.mubr.f32.gmra.mrb[54].mxu0 %v1602_v16  ;;  %2340 = vmatmul.mubr.f32.gmra.mrb[54].mxu1 %v1602_v16 }
 0x259   : > { %1963 = vmatprep.mubr.f32.mxu0 %v4541_v51  ;;  %2345 = vmatprep.mubr.f32.mxu1 %v4541_v51 }
 0x25c   : > { %1964 = vmatmul.mubr.f32.gmra.mrb[56].mxu0 %v1605_v17  ;;  %2346 = vmatmul.mubr.f32.gmra.mrb[56].mxu1 %v1605_v17 }
 0x25d   : > { %1969 = vmatprep.mubr.f32.mxu0 %v4541_v51  ;;  %2351 = vmatprep.mubr.f32.mxu1 %v4541_v51 }
 0x260   : > { %1970 = vmatmul.mubr.f32.gmra.mrb[58].mxu0 %v1608_v18  ;;  %2352 = vmatmul.mubr.f32.gmra.mrb[58].mxu1 %v1608_v18 }
 0x261   : > { %1975 = vmatprep.mubr.f32.mxu0 %v4541_v51  ;;  %2357 = vmatprep.mubr.f32.mxu1 %v4541_v51 }
 0x264   : > { %1976 = vmatmul.mubr.f32.gmra.mrb[60].mxu0 %v1611_v19  ;;  %2358 = vmatmul.mubr.f32.gmra.mrb[60].mxu1 %v1611_v19 }
 0x265   : > { %1981 = vmatprep.mubr.f32.mxu0 %v4541_v51  ;;  %2363 = vmatprep.mubr.f32.mxu1 %v4541_v51 }
 0x268   : > { %1982 = vmatmul.mubr.f32.gmra.mrb[62].mxu0 %v1614_v20  ;;  %2364 = vmatmul.mubr.f32.gmra.mrb[62].mxu1 %v1614_v20 }
 0x269   : > { %1987 = vmatprep.mubr.f32.mxu0 %v4541_v51  ;;  %2369 = vmatprep.mubr.f32.mxu1 %v4541_v51 }
 0x26c   : > { %1988 = vmatmul.mubr.f32.gmra.mrb[64].mxu0 %v1617_v21  ;;  %2370 = vmatmul.mubr.f32.gmra.mrb[64].mxu1 %v1617_v21 }
 0x26d   : > { %1993 = vmatprep.mubr.f32.mxu0 %v4541_v51  ;;  %2375 = vmatprep.mubr.f32.mxu1 %v4541_v51 }
 0x270   : > { %1994 = vmatmul.mubr.f32.gmra.mrb[66].mxu0 %v1620_v22  ;;  %2376 = vmatmul.mubr.f32.gmra.mrb[66].mxu1 %v1620_v22 }
 0x271   : > { %1999 = vmatprep.mubr.f32.mxu0 %v4541_v51  ;;  %2381 = vmatprep.mubr.f32.mxu1 %v4541_v51 }
 0x274   : > { %2000 = vmatmul.mubr.f32.gmra.mrb[68].mxu0 %v1623_v23  ;;  %2382 = vmatmul.mubr.f32.gmra.mrb[68].mxu1 %v1623_v23 }
 0x275   : > { %2005 = vmatprep.mubr.f32.mxu0 %v4541_v51  ;;  %2387 = vmatprep.mubr.f32.mxu1 %v4541_v51 }
 0x278   : > { %2006 = vmatmul.mubr.f32.gmra.mrb[70].mxu0 %v1626_v24  ;;  %2388 = vmatmul.mubr.f32.gmra.mrb[70].mxu1 %v1626_v24 }
 0x279   : > { %2011 = vmatprep.mubr.f32.mxu0 %v4541_v51  ;;  %2393 = vmatprep.mubr.f32.mxu1 %v4541_v51 }
 0x27c   : > { %2012 = vmatmul.mubr.f32.gmra.mrb[72].mxu0 %v1629_v25  ;;  %2394 = vmatmul.mubr.f32.gmra.mrb[72].mxu1 %v1629_v25 }
 0x27d   : > { %2017 = vmatprep.mubr.f32.mxu0 %v4541_v51  ;;  %2399 = vmatprep.mubr.f32.mxu1 %v4541_v51 }
 0x280   : > { %2018 = vmatmul.mubr.f32.gmra.mrb[74].mxu0 %v1632_v26  ;;  %2400 = vmatmul.mubr.f32.gmra.mrb[74].mxu1 %v1632_v26 }
 0x281   : > { %2023 = vmatprep.mubr.f32.mxu0 %v4541_v51  ;;  %2405 = vmatprep.mubr.f32.mxu1 %v4541_v51 }
 0x284   : > { %2024 = vmatmul.mubr.f32.gmra.mrb[76].mxu0 %v1635_v27  ;;  %2406 = vmatmul.mubr.f32.gmra.mrb[76].mxu1 %v1635_v27 }
 0x285   : > { %2555 = vmatprep.mubr.f32.mxu1 %v4541_v51  ;;  %v2760_v51 = vld [vmem:[%s6659_s11 + $0x90] sm:$0xff] }
 0x286   : > { %v4173_v35 = vpack.c.bf16 %v2761_v33, %v2760_v51 }
 0x288   : > { %4174 = vmatprep.subr.bf16.mxu0 %v4173_v35 }
 0x289   : > { %4176 = vmatpush3.bf16.msra.mxu0 %v4175_v38 }
 0x327   : > { %v1953_v45 = vpop.f32.mrb[52].mxu0  ;;  %v2335_v46 = vpop.f32.mrb[52].mxu1 }
 0x328   : > { %v4329_v47 = vadd.f32 %v1953_v45, %v5968_v43  ;;  %v4355_v48 = vadd.f32 %v2335_v46, %v5968_v43  ;;  %v1955_v49 = vpop.f32.mrb[53].mxu0  ;;  %v2337_v50 = vpop.f32.mrb[53].mxu1 }
 0x329   : > { %v4330_v58 = vadd.f32 %v1955_v49, %v5970_v44  ;;  %v4356_v52 = vadd.f32 %v2337_v50, %v5970_v44 }
 0x32a   : > { %v2412_v53 = vmax.f32 %v4329_v47, %v4355_v48 }
 0x32b   : > { %v2413_v54 = vmax.f32 %v4330_v58, %v4356_v52  ;;  %v1959_v55 = vpop.f32.mrb[54].mxu0  ;;  %v2341_v56 = vpop.f32.mrb[54].mxu1 }
 0x32c   : > { %v4331_v57 = vadd.f32 %v1959_v55, %v5968_v43  ;;  %v4357_v59 = vadd.f32 %v2341_v56, %v5968_v43  ;;  %v1961_v60 = vpop.f32.mrb[55].mxu0  ;;  %v2343_v62 = vpop.f32.mrb[55].mxu1  ;;  %v2438_v5 = vmax.f32 %v2412_v53, 0.0 }
 0x32d   : > { %v4332_v63 = vadd.f32 %v1961_v60, %v5970_v44  ;;  %v4358_v0 = vadd.f32 %v2343_v62, %v5970_v44  ;;  %v2439_v11 = vmax.f32 %v2413_v54, 0.0 }
 0x32e   : > { %v2414_v1 = vmax.f32 %v4331_v57, %v4357_v59 }
 0x32f   : > { %v2415_v2 = vmax.f32 %v4332_v63, %v4358_v0  ;;  %v1965_v3 = vpop.f32.mrb[56].mxu0  ;;  %v2347_v4 = vpop.f32.mrb[56].mxu1 }
 0x330   : > { %v2440_v6 = vmax.f32 %v2414_v1, 0.0  ;;  %v4333_v7 = vadd.f32 %v1965_v3, %v5968_v43  ;;  %v4359_v8 = vadd.f32 %v2347_v4, %v5968_v43  ;;  %v1967_v9 = vpop.f32.mrb[57].mxu0  ;;  %v2349_v10 = vpop.f32.mrb[57].mxu1 }
 0x331   : > { %v2441_v12 = vmax.f32 %v2415_v2, 0.0  ;;  %v4334_v13 = vadd.f32 %v1967_v9, %v5970_v44  ;;  %v4360_v14 = vadd.f32 %v2349_v10, %v5970_v44 }
 0x332   : > { %v5984_v15 = vpack.c.bf16 %v2440_v6, %v2438_v5  ;;  %v2416_v16 = vmax.f32 %v4333_v7, %v4359_v8 }
 0x333   : > { %v2417_v17 = vmax.f32 %v4334_v13, %v4360_v14  ;;  %v1971_v18 = vpop.f32.mrb[58].mxu0  ;;  %v2353_v19 = vpop.f32.mrb[58].mxu1  ;;  %v5986_v20 = vpack.c.bf16 %v2441_v12, %v2439_v11 }
 0x334   : > { %v4335_v21 = vadd.f32 %v1971_v18, %v5968_v43  ;;  %v4361_v22 = vadd.f32 %v2353_v19, %v5968_v43  ;;  %v1973_v23 = vpop.f32.mrb[59].mxu0  ;;  %v2355_v24 = vpop.f32.mrb[59].mxu1  ;;  %v2442_v31 = vmax.f32 %v2416_v16, 0.0 }
 0x335   : > { %v4336_v25 = vadd.f32 %v1973_v23, %v5970_v44  ;;  %v4362_v26 = vadd.f32 %v2355_v24, %v5970_v44  ;;  %4122 = vmatprep.subr.bf16.mxu1 %v5986_v20  ;;  %v2443_v36 = vmax.f32 %v2417_v17, 0.0 }
 0x336   : > { %v2418_v27 = vmax.f32 %v4335_v21, %v4361_v22  ;;  %4124 = vmatpush1.bf16.msra.mxu1 %v5984_v15 }
 0x337   : > { %v2419_v28 = vmax.f32 %v4336_v25, %v4362_v26  ;;  %v1977_v29 = vpop.f32.mrb[60].mxu0  ;;  %v2359_v30 = vpop.f32.mrb[60].mxu1 }
 0x338   : > { %v2444_v32 = vmax.f32 %v2418_v27, 0.0  ;;  %v4337_v51 = vadd.f32 %v1977_v29, %v5968_v43  ;;  %v4363_v33 = vadd.f32 %v2359_v30, %v5968_v43  ;;  %v1979_v34 = vpop.f32.mrb[61].mxu0  ;;  %v2361_v35 = vpop.f32.mrb[61].mxu1 }
 0x339   : > { %v2445_v37 = vmax.f32 %v2419_v28, 0.0  ;;  %v4338_v38 = vadd.f32 %v1979_v34, %v5970_v44  ;;  %v4364_v39 = vadd.f32 %v2361_v35, %v5970_v44 }
 0x33a   : > { %v5998_v40 = vpack.c.bf16 %v2444_v32, %v2442_v31  ;;  %v2420_v41 = vmax.f32 %v4337_v51, %v4363_v33 }
 0x33b   : > { %v2421_v61 = vmax.f32 %v4338_v38, %v4364_v39  ;;  %v1983_v42 = vpop.f32.mrb[62].mxu0  ;;  %v2365_v45 = vpop.f32.mrb[62].mxu1  ;;  %v6000_v46 = vpack.c.bf16 %v2445_v37, %v2443_v36 }
 0x33c   : > { %v4339_v47 = vadd.f32 %v1983_v42, %v5968_v43  ;;  %v4365_v48 = vadd.f32 %v2365_v45, %v5968_v43  ;;  %v1985_v49 = vpop.f32.mrb[63].mxu0  ;;  %v2367_v50 = vpop.f32.mrb[63].mxu1  ;;  %v2446_v57 = vmax.f32 %v2420_v41, 0.0 }
 0x33d   : > { %v4340_v58 = vadd.f32 %v1985_v49, %v5970_v44  ;;  %v4366_v52 = vadd.f32 %v2367_v50, %v5970_v44  ;;  %4126 = vmatprep.subr.bf16.mxu1 %v6000_v46  ;;  %v2447_v1 = vmax.f32 %v2421_v61, 0.0 }
 0x33e   : > { %v2422_v53 = vmax.f32 %v4339_v47, %v4365_v48  ;;  %4128 = vmatpush1.bf16.msra.mxu1 %v5998_v40 }
 0x33f   : > { %v2423_v54 = vmax.f32 %v4340_v58, %v4366_v52  ;;  %v1989_v55 = vpop.f32.mrb[64].mxu0  ;;  %v2371_v56 = vpop.f32.mrb[64].mxu1 }
 0x340   : > { %v2448_v59 = vmax.f32 %v2422_v53, 0.0  ;;  %v4341_v60 = vadd.f32 %v1989_v55, %v5968_v43  ;;  %v4367_v62 = vadd.f32 %v2371_v56, %v5968_v43  ;;  %v1991_v63 = vpop.f32.mrb[65].mxu0  ;;  %v2373_v0 = vpop.f32.mrb[65].mxu1 }
 0x341   : > { %v2449_v2 = vmax.f32 %v2423_v54, 0.0  ;;  %v4342_v3 = vadd.f32 %v1991_v63, %v5970_v44  ;;  %v4368_v4 = vadd.f32 %v2373_v0, %v5970_v44 }
 0x342   : > { %v6012_v5 = vpack.c.bf16 %v2448_v59, %v2446_v57  ;;  %v2424_v6 = vmax.f32 %v4341_v60, %v4367_v62 }
 0x343   : > { %v2425_v7 = vmax.f32 %v4342_v3, %v4368_v4  ;;  %v1995_v8 = vpop.f32.mrb[66].mxu0  ;;  %v2377_v9 = vpop.f32.mrb[66].mxu1  ;;  %v6014_v10 = vpack.c.bf16 %v2449_v2, %v2447_v1 }
 0x344   : > { %v4343_v11 = vadd.f32 %v1995_v8, %v5968_v43  ;;  %v4369_v12 = vadd.f32 %v2377_v9, %v5968_v43  ;;  %v1997_v13 = vpop.f32.mrb[67].mxu0  ;;  %v2379_v14 = vpop.f32.mrb[67].mxu1  ;;  %v2450_v23 = vmax.f32 %v2424_v6, 0.0 }
 0x345   : > { %v4344_v16 = vadd.f32 %v1997_v13, %v5970_v44  ;;  %v4370_v17 = vadd.f32 %v2379_v14, %v5970_v44  ;;  %4130 = vmatprep.subr.bf16.mxu1 %v6014_v10  ;;  %v2451_v29 = vmax.f32 %v2425_v7, 0.0 }
 0x346   : > { %v2426_v18 = vmax.f32 %v4343_v11, %v4369_v12  ;;  %4132 = vmatpush1.bf16.msra.mxu1 %v6012_v5 }
 0x347   : > { %v2427_v19 = vmax.f32 %v4344_v16, %v4370_v17  ;;  %v2001_v21 = vpop.f32.mrb[68].mxu0  ;;  %v2383_v22 = vpop.f32.mrb[68].mxu1 }
 0x348   : > { %v2452_v24 = vmax.f32 %v2426_v18, 0.0  ;;  %v4345_v25 = vadd.f32 %v2001_v21, %v5968_v43  ;;  %v4371_v26 = vadd.f32 %v2383_v22, %v5968_v43  ;;  %v2003_v27 = vpop.f32.mrb[69].mxu0  ;;  %v2385_v28 = vpop.f32.mrb[69].mxu1 }
 0x349   : > { %v2453_v30 = vmax.f32 %v2427_v19, 0.0  ;;  %v4346_v31 = vadd.f32 %v2003_v27, %v5970_v44  ;;  %v4372_v32 = vadd.f32 %v2385_v28, %v5970_v44 }
 0x34a   : > { %v6026_v51 = vpack.c.bf16 %v2452_v24, %v2450_v23  ;;  %v2428_v33 = vmax.f32 %v4345_v25, %v4371_v26 }
 0x34b   : > { %v2429_v34 = vmax.f32 %v4346_v31, %v4372_v32  ;;  %v2007_v35 = vpop.f32.mrb[70].mxu0  ;;  %v2389_v36 = vpop.f32.mrb[70].mxu1  ;;  %v6028_v37 = vpack.c.bf16 %v2453_v30, %v2451_v29 }
 0x34c   : > { %v4347_v38 = vadd.f32 %v2007_v35, %v5968_v43  ;;  %v4373_v39 = vadd.f32 %v2389_v36, %v5968_v43  ;;  %v2009_v41 = vpop.f32.mrb[71].mxu0  ;;  %v2391_v61 = vpop.f32.mrb[71].mxu1  ;;  %v2454_v58 = vmax.f32 %v2428_v33, 0.0  ;;  %v2465_v35 = vld [vmem:[%s6657_s9 + $0x8] sm:$0xff]  ;;  %v2590_v36 = vld [vmem:[%s6658_s10 + $0x20] sm:$0xff] }
 0x34d   : > { %v4348_v42 = vadd.f32 %v2009_v41, %v5970_v44  ;;  %v4374_v45 = vadd.f32 %v2391_v61, %v5970_v44  ;;  %4134 = vmatprep.subr.bf16.mxu1 %v6028_v37  ;;  %v2455_v57 = vmax.f32 %v2429_v34, 0.0  ;;  %v2746_v41 = vld [vmem:[%s6659_s11 + $0x20] sm:$0xff]  ;;  %v2747_v61 = vld [vmem:[%s6659_s11 + $0x28] sm:$0xff] }
 0x34e   : > { %v2430_v47 = vmax.f32 %v4347_v38, %v4373_v39  ;;  %4136 = vmatpush1.bf16.msra.mxu1 %v6026_v51  ;;  %v2763_v38 = vld [vmem:[%s6659_s11 + $0xa8] sm:$0xff] }
 0x34f   : > { %v2431_v48 = vmax.f32 %v4348_v42, %v4374_v45  ;;  %v2013_v49 = vpop.f32.mrb[72].mxu0  ;;  %v2395_v50 = vpop.f32.mrb[72].mxu1  ;;  %v2790_v42 = vld [vmem:[%s6659_s11 + $0x180] sm:$0xff]  ;;  %v4179_v45 = vpack.c.bf16 %v2747_v61, %v2746_v41  ;;  %v2773_v41 = vld [vmem:[%s6659_s11 + $0xf8] sm:$0xff] }
 0x350   : > { %v2456_v52 = vmax.f32 %v2430_v47, 0.0  ;;  %v4349_v53 = vadd.f32 %v2013_v49, %v5968_v43  ;;  %v4375_v54 = vadd.f32 %v2395_v50, %v5968_v43  ;;  %v2015_v55 = vpop.f32.mrb[73].mxu0  ;;  %v2397_v56 = vpop.f32.mrb[73].mxu1  ;;  %v2791_v47 = vld [vmem:[%s6659_s11 + $0x188] sm:$0xff]  ;;  %v2802_v61 = vld [vmem:[%s6659_s11 + $0x1e0] sm:$0xff] }
 0x351   : > { %v2457_v59 = vmax.f32 %v2431_v48, 0.0  ;;  %v4350_v60 = vadd.f32 %v2015_v55, %v5970_v44  ;;  %v4376_v62 = vadd.f32 %v2397_v56, %v5970_v44  ;;  %v2774_v48 = vld [vmem:[%s6659_s11 + $0x100] sm:$0xff]  ;;  %v2775_v49 = vld [vmem:[%s6659_s11 + $0x108] sm:$0xff]  ;;  %v4201_v50 = vpack.c.bf16 %v2791_v47, %v2790_v42  ;;  %v2793_v56 = vld [vmem:[%s6659_s11 + $0x198] sm:$0xff] }
 0x352   : > { %v6040_v63 = vpack.c.bf16 %v2456_v52, %v2454_v58  ;;  %v2432_v0 = vmax.f32 %v4349_v53, %v4375_v54  ;;  %v4203_v58 = vpack.c.bf16 %v2775_v49, %v2774_v48  ;;  %v2764_v52 = vld [vmem:[%s6659_s11 + $0xb0] sm:$0xff]  ;;  %v2765_v53 = vld [vmem:[%s6659_s11 + $0xb8] sm:$0xff] }
 0x353   : > { %v2433_v1 = vmax.f32 %v4350_v60, %v4376_v62  ;;  %v2019_v2 = vpop.f32.mrb[74].mxu0  ;;  %v2401_v3 = vpop.f32.mrb[74].mxu1  ;;  %v4137_v4 = vpack.c.bf16 %v2457_v59, %v2455_v57  ;;  %v2792_v54 = vld [vmem:[%s6659_s11 + $0x190] sm:$0xff]  ;;  %v4181_v55 = vpack.c.bf16 %v2765_v53, %v2764_v52  ;;  %v2749_v59 = vld [vmem:[%s6659_s11 + $0x38] sm:$0xff]  ;;  %v2787_v52 = vld [vmem:[%s6659_s11 + $0x168] sm:$0xff] }
 0x354   : > { %v4351_v6 = vadd.f32 %v2019_v2, %v5968_v43  ;;  %v4377_v7 = vadd.f32 %v2401_v3, %v5968_v43  ;;  %v2021_v8 = vpop.f32.mrb[75].mxu0  ;;  %v2403_v9 = vpop.f32.mrb[75].mxu1  ;;  %v2458_v18 = vmax.f32 %v2432_v0, 0.0  ;;  %v2748_v57 = vld [vmem:[%s6659_s11 + $0x30] sm:$0xff]  ;;  %v4205_v60 = vpack.c.bf16 %v2793_v56, %v2792_v54  ;;  %v2777_v0 = vld [vmem:[%s6659_s11 + $0x118] sm:$0xff]  ;;  %v2795_v3 = vld [vmem:[%s6659_s11 + $0x1a8] sm:$0xff] }
 0x355   : > { %v4352_v11 = vadd.f32 %v2021_v8, %v5970_v44  ;;  %v4378_v12 = vadd.f32 %v2403_v9, %v5970_v44  ;;  %4138 = vmatprep.subr.bf16.mxu1 %v4137_v4  ;;  %v2459_v25 = vmax.f32 %v2433_v1, 0.0  ;;  %v4183_v62 = vpack.c.bf16 %v2749_v59, %v2748_v57  ;;  %v2794_v1 = vld [vmem:[%s6659_s11 + $0x1a0] sm:$0xff]  ;;  %v2767_v9 = vld [vmem:[%s6659_s11 + $0xc8] sm:$0xff]  ;;  %v2756_v47 = vld [vmem:[%s6659_s11 + $0x70] sm:$0xff] }
 0x356   : > { %v2434_v13 = vmax.f32 %v4351_v6, %v4377_v7  ;;  %4140 = vmatpush1.bf16.msra.mxu1 %v6040_v63  ;;  %v2778_v6 = vld [vmem:[%s6659_s11 + $0x120] sm:$0xff]  ;;  %v2779_v7 = vld [vmem:[%s6659_s11 + $0x128] sm:$0xff]  ;;  %v2757_v48 = vld [vmem:[%s6659_s11 + $0x78] sm:$0xff] }
 0x357   : > { %v2435_v14 = vmax.f32 %v4352_v11, %v4378_v12  ;;  %v2025_v16 = vpop.f32.mrb[76].mxu0  ;;  %v2407_v17 = vpop.f32.mrb[76].mxu1  ;;  %v2766_v8 = vld [vmem:[%s6659_s11 + $0xc0] sm:$0xff]  ;;  %v2804_v54 = vld [vmem:[%s6659_s11 + $0x1f0] sm:$0xff]  ;;  %v2823_v59 = vld [vmem:[%s6659_s11 + $0x288] sm:$0xff] }
 0x358   : > { %v2460_v19 = vmax.f32 %v2434_v13, 0.0  ;;  %v4353_v21 = vadd.f32 %v2025_v16, %v5968_v43  ;;  %v4379_v22 = vadd.f32 %v2407_v17, %v5968_v43  ;;  %v2027_v23 = vpop.f32.mrb[77].mxu0  ;;  %v2409_v24 = vpop.f32.mrb[77].mxu1  ;;  %v2464_v43 = vld [vmem:[%s6657_s9] sm:$0xff]  ;;  %v4185_v11 = vpack.c.bf16 %v2767_v9, %v2766_v8  ;;  %v2751_v13 = vld [vmem:[%s6659_s11 + $0x48] sm:$0xff]  ;;  %v2796_v17 = vld [vmem:[%s6659_s11 + $0x1b0] sm:$0xff] }
 0x359   : > { %v2461_v26 = vmax.f32 %v2435_v14, 0.0  ;;  %v4354_v27 = vadd.f32 %v2027_v23, %v5970_v44  ;;  %v4380_v28 = vadd.f32 %v2409_v24, %v5970_v44  ;;  %v4475_v44 = vld [vmem:[#allocation3 + $0x8] sm:$0xff]  ;;  %v4211_v14 = vpack.c.bf16 %v2779_v7, %v2778_v6  ;;  %v2768_v24 = vld [vmem:[%s6659_s11 + $0xd0] sm:$0xff] }
 0x35a   : > { %v4143_v29 = vpack.c.bf16 %v2460_v19, %v2458_v18  ;;  %v2436_v30 = vmax.f32 %v4353_v21, %v4379_v22  ;;  %v2750_v12 = vld [vmem:[%s6659_s11 + $0x40] sm:$0xff]  ;;  %v2797_v18 = vld [vmem:[%s6659_s11 + $0x1b8] sm:$0xff]  ;;  %v2780_v21 = vld [vmem:[%s6659_s11 + $0x130] sm:$0xff] }
 0x35b   : > { %v2437_v31 = vmax.f32 %v4354_v27, %v4380_v28  ;;  %v4141_v32 = vpack.c.bf16 %v2461_v26, %v2459_v25  ;;  %v4187_v16 = vpack.c.bf16 %v2751_v13, %v2750_v12  ;;  %v4213_v19 = vpack.c.bf16 %v2797_v18, %v2796_v17  ;;  %v2781_v22 = vld [vmem:[%s6659_s11 + $0x138] sm:$0xff]  ;;  %v2798_v26 = vld [vmem:[%s6659_s11 + $0x1c0] sm:$0xff]  ;;  %v2799_v28 = vld [vmem:[%s6659_s11 + $0x1c8] sm:$0xff] }
 0x35c   : > { %v2462_v34 = vmax.f32 %v2436_v30, 0.0  ;;  %v4215_v23 = vpack.c.bf16 %v2781_v22, %v2780_v21  ;;  %v2769_v25 = vld [vmem:[%s6659_s11 + $0xd8] sm:$0xff]  ;;  %v2822_v56 = vld [vmem:[%s6659_s11 + $0x280] sm:$0xff] }
 0x35d   : > { %v2463_v33 = vmax.f32 %v2437_v31, 0.0  ;;  %4142 = vmatprep.subr.bf16.mxu1 %v4141_v32  ;;  %v4189_v27 = vpack.c.bf16 %v2769_v25, %v2768_v24  ;;  %v2753_v30 = vld [vmem:[%s6659_s11 + $0x58] sm:$0xff]  ;;  %v4217_v31 = vpack.c.bf16 %v2799_v28, %v2798_v26  ;;  %v2806_v26 = vld [vmem:[%s6659_s11 + $0x200] sm:$0xff] }
 0x35e   : > { %4144 = vmatpush1.bf16.msra.mxu1 %v4143_v29 }
 0x35f   : > { %3421 = vmatprep.subr.msk.mxu1 %vm1545_vm5, %v2463_v33 }
 0x362   : > { %3422 = vmatpush1.msk.msra.mxu1 %vm1545_vm5, %v2462_v34 }
 0x363   : > { %4146 = vmatprep.subr.bf16.mxu1 %v5986_v20  ;;  %3423 = vmatmul.mubr.msk.f32.vlgmr.msra.gmra.mrb[78].mxu1 %vm2469_vm7, %v2464_v43  ;;  %v2466_v20 = vld [vmem:[%s6657_s9 + $0x10] sm:$0xff] }
 0x364   : > { %4148 = vmatpush1.bf16.msra.mxu1 %v5984_v15  ;;  %2561 = vmatprep.mubr.f32.mxu1 %v4475_v44  ;;  %v2467_v15 = vld [vmem:[%s6657_s9 + $0x18] sm:$0xff] }
 0x365   : > { %4150 = vmatprep.subr.bf16.mxu1 %v6000_v46  ;;  %v2586_v46 = vld [vmem:[%s6658_s10] sm:$0xff] }
 0x367   : > { %3424 = vmatmul.mubr.msk.f32.gmra.mrb[80].mxu1 %vm2469_vm7, %v2465_v35  ;;  %v2771_v35 = vld [vmem:[%s6659_s11 + $0xe8] sm:$0xff] }
 0x368   : > { %4152 = vmatpush1.bf16.msra.mxu1 %v5998_v40  ;;  %2567 = vmatprep.mubr.f32.mxu1 %v4475_v44  ;;  %v2468_v40 = vld [vmem:[%s6657_s9 + $0x20] sm:$0xff] }
 0x369   : > { %4154 = vmatprep.subr.bf16.mxu1 %v6014_v10  ;;  %v2588_v10 = vld [vmem:[%s6658_s10 + $0x10] sm:$0xff] }
 0x36b   : > { %3425 = vmatmul.mubr.msk.f32.gmra.mrb[82].mxu1 %vm2469_vm7, %v2466_v20  ;;  %v2800_v20 = vld [vmem:[%s6659_s11 + $0x1d0] sm:$0xff] }
 0x36c   : > { %4156 = vmatpush1.bf16.msra.mxu1 %v6012_v5  ;;  %2573 = vmatprep.mubr.f32.mxu1 %v4475_v44  ;;  %v2587_v5 = vld [vmem:[%s6658_s10 + $0x8] sm:$0xff] }
 0x36d   : > { %4158 = vmatprep.subr.bf16.mxu1 %v6028_v37  ;;  %v2762_v37 = vld [vmem:[%s6659_s11 + $0xa0] sm:$0xff] }
 0x36e   : > { %v4177_v39 = vpack.c.bf16 %v2763_v38, %v2762_v37  ;;  %v2785_v37 = vld [vmem:[%s6659_s11 + $0x158] sm:$0xff] }
 0x36f   : > { %3426 = vmatmul.mubr.msk.f32.gmra.mrb[84].mxu1 %vm2469_vm7, %v2467_v15 }
 0x370   : > { %4160 = vmatpush1.bf16.msra.mxu1 %v6026_v51  ;;  %2579 = vmatprep.mubr.f32.mxu1 %v4475_v44  ;;  %v2589_v51 = vld [vmem:[%s6658_s10 + $0x18] sm:$0xff] }
 0x371   : > { %4162 = vmatprep.subr.bf16.mxu1 %v4137_v4  ;;  %4178 = vmatprep.subr.bf16.mxu0 %v4177_v39  ;;  %v4209_v4 = vpack.c.bf16 %v2795_v3, %v2794_v1  ;;  %v2772_v39 = vld [vmem:[%s6659_s11 + $0xf0] sm:$0xff]  ;;  %v2854_v1 = vld [vmem:[%s6659_s11 + $0x380] sm:$0xff] }
 0x372   : > { %4180 = vmatpush3.bf16.msra.mxu0 %v4179_v45  ;;  %v4197_v42 = vpack.c.bf16 %v2773_v41, %v2772_v39  ;;  %v2803_v45 = vld [vmem:[%s6659_s11 + $0x1e8] sm:$0xff] }
 0x373   : > { %3427 = vmatmul.mubr.msk.f32.gmra.mrb[86].mxu1 %vm2469_vm7, %v2468_v40  ;;  %4182 = vmatprep.subr.bf16.mxu0 %v4181_v55  ;;  %v2801_v40 = vld [vmem:[%s6659_s11 + $0x1d8] sm:$0xff]  ;;  %v4225_v49 = vpack.c.bf16 %v2803_v45, %v2802_v61  ;;  %v2811_v45 = vld [vmem:[%s6659_s11 + $0x228] sm:$0xff] }
 0x374   : > { %4164 = vmatpush1.bf16.msra.mxu1 %v6040_v63  ;;  %2670 = vmatprep.mubr.f32.mxu1 %v4475_v44  ;;  %v2776_v63 = vld [vmem:[%s6659_s11 + $0x110] sm:$0xff]  ;;  %v2805_v55 = vld [vmem:[%s6659_s11 + $0x1f8] sm:$0xff] }
 0x375   : > { %4166 = vmatprep.subr.bf16.mxu1 %v4141_v32  ;;  %v4207_v2 = vpack.c.bf16 %v2777_v0, %v2776_v63  ;;  %v4229_v57 = vpack.c.bf16 %v2805_v55, %v2804_v54  ;;  %v4233_v63 = vpack.c.bf16 %v2823_v59, %v2822_v56  ;;  %v2829_v54 = vld [vmem:[%s6659_s11 + $0x2b8] sm:$0xff]  ;;  %v2858_v55 = vld [vmem:[%s6659_s11 + $0x3a0] sm:$0xff]  ;;  %v2859_v56 = vld [vmem:[%s6659_s11 + $0x3a8] sm:$0xff] }
 0x376   : > { %4184 = vmatpush3.bf16.msra.mxu0 %v4183_v62  ;;  %v2789_v62 = vld [vmem:[%s6659_s11 + $0x178] sm:$0xff] }
 0x377   : > { %4186 = vmatprep.subr.bf16.mxu0 %v4185_v11 }
 0x378   : > { %4168 = vmatpush1.bf16.msra.mxu1 %v4143_v29  ;;  %v2752_v29 = vld [vmem:[%s6659_s11 + $0x50] sm:$0xff] }
 0x379   : > { %3428 = vmatprep.subr.msk.mxu1 %vm1545_vm5, %v2463_v33  ;;  %v4191_v32 = vpack.c.bf16 %v2753_v30, %v2752_v29  ;;  %v2782_v33 = vld [vmem:[%s6659_s11 + $0x140] sm:$0xff]  ;;  %v2824_v29 = vld [vmem:[%s6659_s11 + $0x290] sm:$0xff]  ;;  %v2825_v30 = vld [vmem:[%s6659_s11 + $0x298] sm:$0xff] }
 0x37a   : > { %4188 = vmatpush3.bf16.msra.mxu0 %v4187_v16 }
 0x37b   : > { %4190 = vmatprep.subr.bf16.mxu0 %v4189_v27  ;;  %v2807_v27 = vld [vmem:[%s6659_s11 + $0x208] sm:$0xff] }
 0x37c   : > { %3429 = vmatpush1.msk.msra.mxu1 %vm1545_vm5, %v2462_v34  ;;  %v2783_v34 = vld [vmem:[%s6659_s11 + $0x148] sm:$0xff] }
 0x37d   : > { %3430 = vmatmul.mubr.msk.f32.vlgmr.msra.gmra.mrb[88].mxu1 %vm2469_vm7, %v2586_v46  ;;  %4202 = vmatprep.subr.bf16.mxu1 %v4201_v50  ;;  %v4219_v43 = vpack.c.bf16 %v2783_v34, %v2782_v33  ;;  %v2754_v46 = vld [vmem:[%s6659_s11 + $0x60] sm:$0xff]  ;;  %v4199_v50 = vpack.c.bf16 %v2757_v48, %v2756_v47  ;;  %v4235_v34 = vpack.c.bf16 %v2807_v27, %v2806_v26  ;;  %v2840_v47 = vld [vmem:[%s6659_s11 + $0x310] sm:$0xff]  ;;  %v2845_v26 = vld [vmem:[%s6659_s11 + $0x338] sm:$0xff] }
 0x37e   : > { %2676 = vmatprep.mubr.f32.mxu1 %v4475_v44  ;;  %4204 = vmatpush3.bf16.msra.mxu1 %v4203_v58  ;;  %v2786_v58 = vld [vmem:[%s6659_s11 + $0x160] sm:$0xff]  ;;  %v2832_v27 = vld [vmem:[%s6659_s11 + $0x2d0] sm:$0xff] }
 0x37f   : > { %4206 = vmatprep.subr.bf16.mxu1 %v4205_v60  ;;  %4192 = vmatpush3.bf16.msra.mxu0 %v4191_v32  ;;  %v4227_v53 = vpack.c.bf16 %v2787_v52, %v2786_v58  ;;  %v2788_v60 = vld [vmem:[%s6659_s11 + $0x170] sm:$0xff]  ;;  %v2841_v58 = vld [vmem:[%s6659_s11 + $0x318] sm:$0xff] }
 0x380   : > { %v4231_v0 = vpack.c.bf16 %v2789_v62, %v2788_v60  ;;  %v2828_v52 = vld [vmem:[%s6659_s11 + $0x2b0] sm:$0xff] }
 0x381   : > { %3431 = vmatmul.mubr.msk.f32.gmra.mrb[90].mxu1 %vm2469_vm7, %v2587_v5  ;;  %v2755_v5 = vld [vmem:[%s6659_s11 + $0x68] sm:$0xff] }
 0x382   : > { %2682 = vmatprep.mubr.f32.mxu1 %v4475_v44  ;;  %4208 = vmatpush3.bf16.msra.mxu1 %v4207_v2  ;;  %v2855_v2 = vld [vmem:[%s6659_s11 + $0x388] sm:$0xff] }
 0x383   : > { %4210 = vmatprep.subr.bf16.mxu1 %v4209_v4  ;;  %v4265_v3 = vpack.c.bf16 %v2855_v2, %v2854_v1  ;;  %v2813_v1 = vld [vmem:[%s6659_s11 + $0x238] sm:$0xff]  ;;  %v2842_v2 = vld [vmem:[%s6659_s11 + $0x320] sm:$0xff] }
 0x385   : > { %3432 = vmatmul.mubr.msk.f32.gmra.mrb[92].mxu1 %vm2469_vm7, %v2588_v10  ;;  %v4221_v10 = vpack.c.bf16 %v2801_v40, %v2800_v20  ;;  %v2839_v40 = vld [vmem:[%s6659_s11 + $0x308] sm:$0xff] }
 0x386   : > { %2688 = vmatprep.mubr.f32.mxu1 %v4475_v44  ;;  %4212 = vmatpush3.bf16.msra.mxu1 %v4211_v14 }
 0x387   : > { %4214 = vmatprep.subr.bf16.mxu1 %v4213_v19 }
 0x389   : > { %3433 = vmatmul.mubr.msk.f32.gmra.mrb[94].mxu1 %vm2469_vm7, %v2589_v51  ;;  %v4195_v51 = vpack.c.bf16 %v2755_v5, %v2754_v46  ;;  %v2826_v46 = vld [vmem:[%s6659_s11 + $0x2a0] sm:$0xff] }
 0x38a   : > { %2694 = vmatprep.mubr.f32.mxu1 %v4475_v44  ;;  %4216 = vmatpush3.bf16.msra.mxu1 %v4215_v23  ;;  %v2770_v44 = vld [vmem:[%s6659_s11 + $0xe0] sm:$0xff] }
 0x38b   : > { %4218 = vmatprep.subr.bf16.mxu1 %v4217_v31  ;;  %v4193_v15 = vpack.c.bf16 %v2771_v35, %v2770_v44  ;;  %v2809_v44 = vld [vmem:[%s6659_s11 + $0x218] sm:$0xff]  ;;  %v2838_v35 = vld [vmem:[%s6659_s11 + $0x300] sm:$0xff] }
 0x38c   : > { %v4267_v61 = vpack.c.bf16 %v2839_v40, %v2838_v35  ;;  %v2847_v40 = vld [vmem:[%s6659_s11 + $0x348] sm:$0xff] }
 0x38d   : > { %3434 = vmatmul.mubr.msk.f32.gmra.mrb[96].mxu1 %vm2469_vm7, %v2590_v36  ;;  %v2784_v36 = vld [vmem:[%s6659_s11 + $0x150] sm:$0xff]  ;;  %4194 = vmatprep.subr.bf16.mxu0 %v4193_v15  ;;  %v4237_v15 = vpack.c.bf16 %v2825_v30, %v2824_v29  ;;  %v2833_v29 = vld [vmem:[%s6659_s11 + $0x2d8] sm:$0xff]  ;;  %v2862_v30 = vld [vmem:[%s6659_s11 + $0x3c0] sm:$0xff] }
 0x38e   : > { %4220 = vmatpush3.bf16.msra.mxu1 %v4219_v43  ;;  %v4223_v38 = vpack.c.bf16 %v2785_v37, %v2784_v36  ;;  %4196 = vmatpush3.bf16.msra.mxu0 %v4195_v51  ;;  %v2808_v43 = vld [vmem:[%s6659_s11 + $0x210] sm:$0xff]  ;;  %v2857_v36 = vld [vmem:[%s6659_s11 + $0x398] sm:$0xff]  ;;  %v4253_v35 = vpack.c.bf16 %v2833_v29, %v2832_v27  ;;  %v2890_v27 = vld [vmem:[%s6659_s11 + $0x4a0] sm:$0xff] }
 0x38f   : > { %4222 = vmatprep.subr.bf16.mxu1 %v4221_v10  ;;  %4198 = vmatprep.subr.bf16.mxu0 %v4197_v42  ;;  %v2827_v10 = vld [vmem:[%s6659_s11 + $0x2a8] sm:$0xff]  ;;  %v2856_v51 = vld [vmem:[%s6659_s11 + $0x390] sm:$0xff]  ;;  %v4239_v41 = vpack.c.bf16 %v2809_v44, %v2808_v43  ;;  %v2810_v42 = vld [vmem:[%s6659_s11 + $0x220] sm:$0xff] }
 0x390   : > { %v4243_v62 = vpack.c.bf16 %v2811_v45, %v2810_v42  ;;  %v2816_v43 = vld [vmem:[%s6659_s11 + $0x250] sm:$0xff]  ;;  %v2817_v44 = vld [vmem:[%s6659_s11 + $0x258] sm:$0xff]  ;;  %v2891_v29 = vld [vmem:[%s6659_s11 + $0x4a8] sm:$0xff] }
 0x392   : > { %4224 = vmatpush3.bf16.msra.mxu1 %v4223_v38  ;;  %4200 = vmatpush3.bf16.msra.mxu0 %v4199_v50  ;;  %v4269_v50 = vpack.c.bf16 %v2857_v36, %v2856_v51  ;;  %v2864_v51 = vld [vmem:[%s6659_s11 + $0x3d0] sm:$0xff]  ;;  %v2865_v36 = vld [vmem:[%s6659_s11 + $0x3d8] sm:$0xff] }
 0x393   : > { %4226 = vmatprep.subr.bf16.mxu1 %v4225_v49  ;;  %4234 = vmatprep.subr.bf16.mxu0 %v4233_v63  ;;  %v4241_v49 = vpack.c.bf16 %v2827_v10, %v2826_v46  ;;  %v4271_v63 = vpack.c.bf16 %v2841_v58, %v2840_v47  ;;  %v2834_v46 = vld [vmem:[%s6659_s11 + $0x2e0] sm:$0xff]  ;;  %v2835_v10 = vld [vmem:[%s6659_s11 + $0x2e8] sm:$0xff]  ;;  %v4285_v45 = vpack.c.bf16 %v2865_v36, %v2864_v51  ;;  %v2848_v47 = vld [vmem:[%s6659_s11 + $0x350] sm:$0xff] }
 0x394   : > { %v4257_v42 = vpack.c.bf16 %v2835_v10, %v2834_v46  ;;  %v2866_v58 = vld [vmem:[%s6659_s11 + $0x3e0] sm:$0xff]  ;;  %v2879_v46 = vld [vmem:[%s6659_s11 + $0x448] sm:$0xff]  ;;  %v2896_v10 = vld [vmem:[%s6659_s11 + $0x4d0] sm:$0xff] }
 0x395   : > { %v2897_v51 = vld [vmem:[%s6659_s11 + $0x4d8] sm:$0xff] }
 0x396   : > { %4228 = vmatpush3.bf16.msra.mxu1 %v4227_v53 }
 0x397   : > { %4230 = vmatprep.subr.bf16.mxu1 %v4229_v57 }
 0x39a   : > { %4232 = vmatpush3.bf16.msra.mxu1 %v4231_v0  ;;  %v2812_v0 = vld [vmem:[%s6659_s11 + $0x230] sm:$0xff] }
 0x39b   : > { %4266 = vmatprep.subr.bf16.mxu1 %v4265_v3 }
 0x436   : > { %v2557_v4 = vpop.f32.mrb[78].mxu1 }
 0x437   : > { %v2559_v6 = vpop.f32.mrb[79].mxu1 }
 0x43a   : > { %v6284_v7 = vpop.f32.mrb[80].mxu1 }
 0x43b   : > { %v2565_v8 = vpop.f32.mrb[81].mxu1 }
 0x43e   : > { %v6286_v9 = vpop.f32.mrb[82].mxu1 }
 0x43f   : > { %v2571_v11 = vpop.f32.mrb[83].mxu1 }
 0x442   : > { %v6288_v12 = vpop.f32.mrb[84].mxu1 }
 0x443   : > { %v2577_v13 = vpop.f32.mrb[85].mxu1 }
 0x446   : > { %v6290_v14 = vpop.f32.mrb[86].mxu1 }
 0x447   : > { %v6292_v16 = vpop.f32.mrb[87].mxu1 }
 0x450   : > { %v2672_v17 = vpop.f32.mrb[88].mxu1 }
 0x451   : > { %v2701_v18 = vmax.f32 %v2557_v4, %v2672_v17  ;;  %v2674_v19 = vpop.f32.mrb[89].mxu1  ;;  %v4245_v4 = vpack.c.bf16 %v2829_v54, %v2828_v52  ;;  %v4247_v17 = vpack.c.bf16 %v2813_v1, %v2812_v0  ;;  %v2867_v52 = vld [vmem:[%s6659_s11 + $0x3e8] sm:$0xff]  ;;  %v2868_v1 = vld [vmem:[%s6659_s11 + $0x3f0] sm:$0xff] }
 0x452   : > { %v2702_v21 = vmax.f32 %v2559_v6, %v2674_v19  ;;  %v4273_v6 = vpack.c.bf16 %v2859_v56, %v2858_v55  ;;  %v2814_v19 = vld [vmem:[%s6659_s11 + $0x240] sm:$0xff]  ;;  %v2820_v56 = vld [vmem:[%s6659_s11 + $0x270] sm:$0xff]  ;;  %v2851_v0 = vld [vmem:[%s6659_s11 + $0x368] sm:$0xff] }
 0x454   : > { %2723 = vst.msk [vmem:[#allocation3 + $0x8] sm:$0xff] %vm2722_vm8, %v2702_v21  ;;  %v2678_v22 = vpop.f32.mrb[90].mxu1  ;;  %v2815_v21 = vld [vmem:[%s6659_s11 + $0x248] sm:$0xff] }
 0x455   : > { %v2703_v23 = vmax.f32 %v6284_v7, %v2678_v22  ;;  %v2680_v24 = vpop.f32.mrb[91].mxu1  ;;  %v2843_v7 = vld [vmem:[%s6659_s11 + $0x328] sm:$0xff]  ;;  %v2844_v22 = vld [vmem:[%s6659_s11 + $0x330] sm:$0xff] }
 0x456   : > { %v2704_v25 = vmax.f32 %v2565_v8, %v2680_v24  ;;  %v2830_v8 = vld [vmem:[%s6659_s11 + $0x2c0] sm:$0xff] }
 0x458   : > { %2725 = vst.msk [vmem:[#allocation3 + $0x18] sm:$0xff] %vm2722_vm8, %v2704_v25  ;;  %v6303_v28 = vpop.f32.mrb[92].mxu1 }
 0x459   : > { %v2705_v31 = vmax.f32 %v6286_v9, %v6303_v28  ;;  %v2686_v32 = vpop.f32.mrb[93].mxu1  ;;  %v2892_v9 = vld [vmem:[%s6659_s11 + $0x4b0] sm:$0xff]  ;;  %v2893_v28 = vld [vmem:[%s6659_s11 + $0x4b8] sm:$0xff] }
 0x45a   : > { %v2706_v33 = vmax.f32 %v2571_v11, %v2686_v32  ;;  %v2831_v11 = vld [vmem:[%s6659_s11 + $0x2c8] sm:$0xff] }
 0x45b   : > { %v2733_v20 = vld [vmem:[#allocation3 + $0x8] sm:$0xff]  ;;  %v4249_v24 = vpack.c.bf16 %v2831_v11, %v2830_v8  ;;  %v2863_v32 = vld [vmem:[%s6659_s11 + $0x3c8] sm:$0xff]  ;;  %v2852_v8 = vld [vmem:[%s6659_s11 + $0x370] sm:$0xff] }
 0x45c   : > { %2727 = vst.msk [vmem:[#allocation3 + $0x28] sm:$0xff] %vm2722_vm8, %v2706_v33  ;;  %v6329_v5 = vpop.f32.mrb[94].mxu1  ;;  %2973 = vmatprep.mubr.f32.mxu0 %v2733_v20  ;;  %v4251_v33 = vpack.c.bf16 %v2815_v21, %v2814_v19  ;;  %v4281_v20 = vpack.c.bf16 %v2863_v32, %v2862_v30  ;;  %v2888_v19 = vld [vmem:[%s6659_s11 + $0x490] sm:$0xff]  ;;  %v2889_v21 = vld [vmem:[%s6659_s11 + $0x498] sm:$0xff] }
 0x45d   : > { %v2707_v37 = vmax.f32 %v6288_v12, %v6329_v5  ;;  %v2692_v38 = vpop.f32.mrb[95].mxu1  ;;  %2974 = vmatmul.mubr.f32.vlgmr.msra.gmra.mrb[78].mxu0 %v2701_v18  ;;  %v4275_v18 = vpack.c.bf16 %v2843_v7, %v2842_v2  ;;  %v2869_v2 = vld [vmem:[%s6659_s11 + $0x3f8] sm:$0xff]  ;;  %v2895_v12 = vld [vmem:[%s6659_s11 + $0x4c8] sm:$0xff] }
 0x45e   : > { %v2708_v39 = vmax.f32 %v2577_v13, %v2692_v38  ;;  %4236 = vmatpush3.bf16.msra.mxu0 %v4235_v34  ;;  %v2860_v13 = vld [vmem:[%s6659_s11 + $0x3b0] sm:$0xff]  ;;  %v4279_v34 = vpack.c.bf16 %v2845_v26, %v2844_v22  ;;  %v4255_v38 = vpack.c.bf16 %v2817_v44, %v2816_v43  ;;  %v4293_v11 = vpack.c.bf16 %v2869_v2, %v2868_v1  ;;  %v2873_v26 = vld [vmem:[%s6659_s11 + $0x418] sm:$0xff]  ;;  %v2875_v43 = vld [vmem:[%s6659_s11 + $0x428] sm:$0xff] }
 0x45f   : > { %v2735_v48 = vld [vmem:[#allocation3 + $0x18] sm:$0xff]  ;;  %4238 = vmatprep.subr.bf16.mxu0 %v4237_v15  ;;  %v2846_v15 = vld [vmem:[%s6659_s11 + $0x340] sm:$0xff]  ;;  %v4309_v44 = vpack.c.bf16 %v2893_v28, %v2892_v9 }
 0x460   : > { %2729 = vst.msk [vmem:[#allocation3 + $0x38] sm:$0xff] %vm2722_vm8, %v2708_v39  ;;  %v6358_v53 = vpop.f32.mrb[96].mxu1  ;;  %3043 = vmatprep.mubr.f32.mxu1 %v2735_v48  ;;  %v4283_v39 = vpack.c.bf16 %v2847_v40, %v2846_v15  ;;  %v2849_v48 = vld [vmem:[%s6659_s11 + $0x358] sm:$0xff]  ;;  %v2894_v15 = vld [vmem:[%s6659_s11 + $0x4c0] sm:$0xff] }
 0x461   : > { %v2709_v57 = vmax.f32 %v6290_v14, %v6358_v53  ;;  %v2698_v59 = vpop.f32.mrb[97].mxu1  ;;  %3044 = vmatmul.mubr.f32.vlgmr.msra.gmra.mrb[98].mxu1 %v2703_v23  ;;  %v4287_v55 = vpack.c.bf16 %v2849_v48, %v2848_v47  ;;  %v2878_v40 = vld [vmem:[%s6659_s11 + $0x440] sm:$0xff] }
 0x462   : > { %v2710_v60 = vmax.f32 %v6292_v16, %v2698_v59  ;;  %4240 = vmatpush3.bf16.msra.mxu0 %v4239_v41  ;;  %4268 = vmatpush3.bf16.msra.mxu1 %v4267_v61  ;;  %v2861_v16 = vld [vmem:[%s6659_s11 + $0x3b8] sm:$0xff]  ;;  %v2818_v41 = vld [vmem:[%s6659_s11 + $0x260] sm:$0xff]  ;;  %v2819_v61 = vld [vmem:[%s6659_s11 + $0x268] sm:$0xff]  ;;  %v4315_v36 = vpack.c.bf16 %v2879_v46, %v2878_v40 }
 0x463   : > { %4242 = vmatprep.subr.bf16.mxu0 %v4241_v49  ;;  %v2737_v3 = vld [vmem:[#allocation3 + $0x28] sm:$0xff]  ;;  %4270 = vmatprep.subr.bf16.mxu1 %v4269_v50  ;;  %v4277_v25 = vpack.c.bf16 %v2861_v16, %v2860_v13  ;;  %v2836_v49 = vld [vmem:[%s6659_s11 + $0x2f0] sm:$0xff]  ;;  %v2837_v50 = vld [vmem:[%s6659_s11 + $0x2f8] sm:$0xff]  ;;  %v4259_v54 = vpack.c.bf16 %v2819_v61, %v2818_v41 }
 0x464   : > { %2731 = vst.msk [vmem:[#allocation3 + $0x48] sm:$0xff] %vm2722_vm8, %v2710_v60  ;;  %3113 = vmatprep.mubr.f32.mxu0 %v2737_v3  ;;  %v2821_v59 = vld [vmem:[%s6659_s11 + $0x278] sm:$0xff]  ;;  %v4261_v60 = vpack.c.bf16 %v2837_v50, %v2836_v49  ;;  %v2886_v3 = vld [vmem:[%s6659_s11 + $0x480] sm:$0xff]  ;;  %v2883_v49 = vld [vmem:[%s6659_s11 + $0x468] sm:$0xff] }
 0x465   : > { %v2853_v16 = vld [vmem:[%s6659_s11 + $0x378] sm:$0xff]  ;;  %v2898_v61 = vld [vmem:[%s6659_s11 + $0x4e0] sm:$0xff]  ;;  %v2900_v50 = vld [vmem:[%s6659_s11 + $0x4f0] sm:$0xff] }
 0x466   : > { %4244 = vmatpush3.bf16.msra.mxu0 %v4243_v62  ;;  %4272 = vmatpush3.bf16.msra.mxu1 %v4271_v63  ;;  %v4289_v62 = vpack.c.bf16 %v2867_v52, %v2866_v58  ;;  %v2850_v63 = vld [vmem:[%s6659_s11 + $0x360] sm:$0xff]  ;;  %v4295_v22 = vpack.c.bf16 %v2853_v16, %v2852_v8  ;;  %v2881_v41 = vld [vmem:[%s6659_s11 + $0x458] sm:$0xff] }
 0x467   : > { %4246 = vmatprep.subr.bf16.mxu0 %v4245_v4  ;;  %4274 = vmatprep.subr.bf16.mxu1 %v4273_v6  ;;  %v2739_v23 = vld [vmem:[#allocation3 + $0x38] sm:$0xff]  ;;  %v2887_v4 = vld [vmem:[%s6659_s11 + $0x488] sm:$0xff]  ;;  %v4263_v6 = vpack.c.bf16 %v2821_v59, %v2820_v56  ;;  %v4291_v7 = vpack.c.bf16 %v2851_v0, %v2850_v63  ;;  %v2882_v48 = vld [vmem:[%s6659_s11 + $0x460] sm:$0xff] }
 0x468   : > { %3183 = vmatprep.mubr.f32.mxu1 %v2739_v23  ;;  %v4297_v13 = vpack.c.bf16 %v2887_v4, %v2886_v3  ;;  %v2901_v58 = vld [vmem:[%s6659_s11 + $0x4f8] sm:$0xff]  ;;  %v4323_v52 = vpack.c.bf16 %v2883_v49, %v2882_v48  ;;  %v3435_v0 = vld [vmem:[%s6660_s12] ss:$0 sm:$0xff] }
 0x469   : > { %v2885_v56 = vld [vmem:[%s6659_s11 + $0x478] sm:$0xff] }
 0x46a   : > { %4248 = vmatpush3.bf16.msra.mxu0 %v4247_v17  ;;  %4276 = vmatpush3.bf16.msra.mxu1 %v4275_v18  ;;  %v2870_v17 = vld [vmem:[%s6659_s11 + $0x400] sm:$0xff]  ;;  %v2871_v18 = vld [vmem:[%s6659_s11 + $0x408] sm:$0xff] }
 0x46b   : > { %4250 = vmatprep.subr.bf16.mxu0 %v4249_v24  ;;  %4278 = vmatprep.subr.bf16.mxu1 %v4277_v25  ;;  %v4299_v23 = vpack.c.bf16 %v2871_v18, %v2870_v17  ;;  %v4301_v24 = vpack.c.bf16 %v2889_v21, %v2888_v19  ;;  %v2872_v25 = vld [vmem:[%s6659_s11 + $0x410] sm:$0xff]  ;;  %v2741_v30 = vld [vmem:[#allocation3 + $0x48] sm:$0xff] }
 0x46c   : > { %v4303_v32 = vpack.c.bf16 %v2873_v26, %v2872_v25 }
 0x46e   : > { %4252 = vmatpush3.bf16.msra.mxu0 %v4251_v33  ;;  %4280 = vmatpush3.bf16.msra.mxu1 %v4279_v34  ;;  %v4305_v33 = vpack.c.bf16 %v2891_v29, %v2890_v27  ;;  %v2874_v34 = vld [vmem:[%s6659_s11 + $0x420] sm:$0xff] }
 0x46f   : > { %4254 = vmatprep.subr.bf16.mxu0 %v4253_v35  ;;  %4282 = vmatprep.subr.bf16.mxu1 %v4281_v20  ;;  %v2876_v35 = vld [vmem:[%s6659_s11 + $0x430] sm:$0xff]  ;;  %v2877_v20 = vld [vmem:[%s6659_s11 + $0x438] sm:$0xff] }
 0x470   : > { %v4311_v5 = vpack.c.bf16 %v2877_v20, %v2876_v35 }
 0x472   : > { %4256 = vmatpush3.bf16.msra.mxu0 %v4255_v38  ;;  %4284 = vmatpush3.bf16.msra.mxu1 %v4283_v39  ;;  %v4317_v38 = vpack.c.bf16 %v2897_v51, %v2896_v10  ;;  %v2880_v39 = vld [vmem:[%s6659_s11 + $0x450] sm:$0xff] }
 0x473   : > { %4258 = vmatprep.subr.bf16.mxu0 %v4257_v42  ;;  %4286 = vmatprep.subr.bf16.mxu1 %v4285_v45  ;;  %v2899_v42 = vld [vmem:[%s6659_s11 + $0x4e8] sm:$0xff]  ;;  %v4319_v45 = vpack.c.bf16 %v2881_v41, %v2880_v39 }
 0x474   : > { %v4321_v47 = vpack.c.bf16 %v2899_v42, %v2898_v61 }
 0x476   : > { %4260 = vmatpush3.bf16.msra.mxu0 %v4259_v54  ;;  %4288 = vmatpush3.bf16.msra.mxu1 %v4287_v55  ;;  %v4325_v54 = vpack.c.bf16 %v2901_v58, %v2900_v50  ;;  %v2884_v55 = vld [vmem:[%s6659_s11 + $0x470] sm:$0xff] }
 0x477   : > { %4262 = vmatprep.subr.bf16.mxu0 %v4261_v60  ;;  %4290 = vmatprep.subr.bf16.mxu1 %v4289_v62  ;;  %v4327_v59 = vpack.c.bf16 %v2885_v56, %v2884_v55 }
 0x47a   : > { %4264 = vmatpush3.bf16.msra.mxu0 %v4263_v6  ;;  %4292 = vmatpush3.bf16.msra.mxu1 %v4291_v7 }
 0x47b   : > { %4294 = vmatprep.subr.bf16.mxu1 %v4293_v11  ;;  %4298 = vmatprep.subr.bf16.mxu0 %v4297_v13 }
 0x47d   : > { %3114 = vmatmul.mubr.f32.vlgmr.msra.gmra.mrb[80].mxu0 %v2705_v31  ;;  %v4307_v31 = vpack.c.bf16 %v2875_v43, %v2874_v34 }
 0x47e   : > { %4296 = vmatpush3.bf16.msra.mxu1 %v4295_v22  ;;  %4300 = vmatpush3.bf16.msra.mxu0 %v4299_v23 }
 0x47f   : > { %3253 = vmatprep.mubr.f32.mxu0 %v2741_v30  ;;  %4302 = vmatprep.subr.bf16.mxu0 %v4301_v24 }
 0x481   : > { %3184 = vmatmul.mubr.f32.vlgmr.msra.gmra.mrb[100].mxu1 %v2707_v37  ;;  %v4313_v37 = vpack.c.bf16 %v2895_v12, %v2894_v15 }
 0x482   : > { %4304 = vmatpush3.bf16.msra.mxu0 %v4303_v32 }
 0x483   : > { %4306 = vmatprep.subr.bf16.mxu0 %v4305_v33 }
 0x486   : > { %4308 = vmatpush3.bf16.msra.mxu0 %v4307_v31 }
 0x487   : > { %4310 = vmatprep.subr.bf16.mxu0 %v4309_v44 }
 0x48a   : > { %4312 = vmatpush3.bf16.msra.mxu0 %v4311_v5 }
 0x48b   : > { %4314 = vmatprep.subr.bf16.mxu0 %v4313_v37 }
 0x48e   : > { %4316 = vmatpush3.bf16.msra.mxu0 %v4315_v36 }
 0x48f   : > { %4318 = vmatprep.subr.bf16.mxu0 %v4317_v38 }
 0x492   : > { %4320 = vmatpush3.bf16.msra.mxu0 %v4319_v45 }
 0x493   : > { %4322 = vmatprep.subr.bf16.mxu0 %v4321_v47 }
 0x496   : > { %4324 = vmatpush3.bf16.msra.mxu0 %v4323_v52 }
 0x497   : > { %4326 = vmatprep.subr.bf16.mxu0 %v4325_v54 }
 0x49a   : > { %4328 = vmatpush3.bf16.msra.mxu0 %v4327_v59 }
 0x49d   : > { %3254 = vmatmul.mubr.f32.vlgmr.msra.gmra.mrb[82].mxu0 %v2709_v57 }
 0x530   : > { %v3546_v60 = vpop.f32.mrb[78].mxu0 }
 0x531   : > { %v3547_v62 = vpop.f32.mrb[79].mxu0 }
 0x532   : > { %v3548_v63 = vadd.f32 %v3547_v62, %v3546_v60 }
 0x534   : > { %v3581_v1 = vpop.f32.mrb[98].mxu1  ;;  %v2976_v3 = vadd.f32 %v3548_v63, %v3435_v0 }
 0x535   : > { %v3582_v2 = vpop.f32.mrb[99].mxu1 }
 0x536   : > { %v3583_v4 = vadd.f32 %v3582_v2, %v3581_v1 }
 0x538   : > { %v3046_v6 = vadd.f32 %v3583_v4, %v2976_v3 }
 0x550   : > { %v3616_v7 = vpop.f32.mrb[80].mxu0 }
 0x551   : > { %v3617_v8 = vpop.f32.mrb[81].mxu0 }
 0x552   : > { %v3618_v11 = vadd.f32 %v3617_v8, %v3616_v7 }
 0x554   : > { %v3116_v13 = vadd.f32 %v3618_v11, %v3046_v6  ;;  %v3651_v14 = vpop.f32.mrb[100].mxu1 }
 0x555   : > { %v3652_v53 = vpop.f32.mrb[101].mxu1 }
 0x556   : > { %v3653_v57 = vadd.f32 %v3652_v53, %v3651_v14 }
 0x558   : > { %v3186_v16 = vadd.f32 %v3653_v57, %v3116_v13 }
 0x570   : > { %v3686_v17 = vpop.f32.mrb[82].mxu0 }
 0x571   : > { %v3687_v18 = vpop.f32.mrb[83].mxu0 }
 0x572   : > { %v3688_v19 = vadd.f32 %v3687_v18, %v3686_v17 }
 0x574   : > { %v3256_v21 = vadd.f32 %v3688_v19, %v3186_v16 }
 0x576   : > { %3260 = vst.msk [vmem:[%s433_s22] sm:$0xff] %vm3259_vm9, %v3256_v21 }
 0x577   : > { %4489 = shalt.err (!%p4486_p3)
}
 0x578   : > { %s4490_s17 = scalar_lea.hbm %s6606_s15, 128  ;;  %s4494_s22 = scalar_lea.hbm %s6661_s13, 256 }
 0x579   : > { %p4491_p4 = scmp.ne.s32.totalorder %s6606_s15, %s4490_s17  ;;  %p4495_p9 = scmp.lt.u32.totalorder %s6606_s15, %s6661_s13 }
 0x57a   : > { %p4496_p10 = scmp.lt.u32.totalorder %s4494_s22, %s4490_s17  ;;  %p4498_p12 = scmp.lt.u32.totalorder %s4490_s17, %s6606_s15 }
 0x57b   : > { %p4492_p7 = pnand %p4491_p4, %p4651_p5 }
 0x57c   : > { %p4497_p11 = por %p4496_p10, %p4495_p9 }
 0x57d   : > { %p4493_p8 = pneg %p4492_p7 }
 0x57e   : > { %p4499_p13 = por %p4498_p12, %p4497_p11 }
 0x580   : > { %p4500_p0 = pnand %p4499_p13, %p4493_p8 }
 0x582   : > { %4503 = shalt.err (!%p4500_p0)
}
 0x583   : > { %4434 = dma.vmem_to_hbm [thread:$0]  (%p4651_p5), %s6608_s23, 128, %s6606_s15, %s3262_s16  }
 0x584 PF: > { %p4440_p1 = scmp.ge.s32.totalorder %s4538_s28, 2  ;;  %s3287_s29 = sand.u32 1, %s4526_s25  }
 0x585   : > { %s3288_s21 = scalar_lea.sflag [#allocation5], %s3287_s29 }
 0x586   : > { %p4437_p2 = pnand %p4440_p1, %p4655_p6 }
 0x588   : > { %4521 = dma.done.wait (!%p4437_p2), %s3288_s21, 128  }
 0x589   : > { %4523 = vsyncadd (!%p4437_p2), %s3288_s21, 4294967168  ;;  %s6673_s28 = sld [smem:[#allocation8_spill]]  ;;  %s6674_s14 = sld [smem:[#allocation7_spill]] }
 0x58a   : > { %s6675_s27 = sld [smem:[#allocation9_spill]]  ;;  %s6676_s25 = smov %s4530_s26 }
 0x58f   : > { %p23_p3 = scmp.ge.s32.totalorder %s6673_s28, 4   ;;  %s6677_s26 = smov %s6674_s14 }
 0x591   :  { %25 = sbr.rel (!%p23_p3) target bundleno = 3 (0x3), region = 107 }
 0x598   :  { %3293 = vsyncpa [#allocation5], 1 }
 0x599   :  { %3295 = vsyncpa [#allocation5 + $0x1], 1 }

</bundles_post_ra>
